<compile_context>
chip_gen: v7x
topology: tpu7x:2x2x1
jax: 0.10.0
libtpu: 0.0.40
codegen_flags: <defaults>
</compile_context>

<pallas_src>
import math
from functools import partial

import jax
import jax.numpy as jnp
from jax import lax
from jax.experimental import pallas as pl
from jax.experimental.pallas import tpu as pltpu

COMPUTE_DTYPE = jnp.bfloat16          # MXU input / intermediate activation dtype


# ----------------------------------------------------------------------------
# Activations (only the selected one is traced into the kernel).
# All supported activations satisfy act(0) == 0 (relied on for padded columns).
# ----------------------------------------------------------------------------
def _apply_act(x, act):
    if act is None or act == "none":
        return x
    act = act.lower()
    if act == "relu":
        return jnp.maximum(x, 0.0)
    if act in ("silu", "swish"):
        return x * jax.nn.sigmoid(x)
    if act == "mish":
        return x * jnp.tanh(jax.nn.softplus(x))
    if act == "gelu":
        return jax.nn.gelu(x, approximate=False)
    raise ValueError(f"Unsupported activation function: {act}")


# ----------------------------------------------------------------------------
# VMEM budgeting (layout-padded, double-buffered)
# ----------------------------------------------------------------------------
_VMEM_CAP = None


def _budgets():
    """(per-step working-set budget, vmem_limit_bytes) derived from chip VMEM."""
    global _VMEM_CAP
    if _VMEM_CAP is None:
        try:
            _VMEM_CAP = int(pltpu.get_tpu_info().vmem_capacity_bytes)
        except Exception:
            _VMEM_CAP = 64 * 1024 * 1024          # conservative (v7x per-core)
    limit = min(int(_VMEM_CAP * 0.85), 96 * 1024 * 1024)
    budget = min(int(_VMEM_CAP * 0.70), 48 * 1024 * 1024)
    return budget, limit


def _pad2_bytes(rows, cols, itemsize):
    """VMEM bytes of a (rows, cols) tile after (sublane, 128-lane) padding."""
    sub = {4: 8, 2: 16, 1: 32}[itemsize]
    return (-(-rows // sub) * sub) * (-(-cols // 128) * 128) * itemsize


# ----------------------------------------------------------------------------
# Conv kernel: 3*stride bf16 matmuls against resident banded weight matrices.
# Optionally fuses: pre-BatchNorm (scale/shift) + activation on the input,
# bias, residual skip, output activation and per-channel (sum, sumsq) stats.
# ----------------------------------------------------------------------------
def _conv_kernel(*refs, s, th, wo, cout, act_pre, act_out,
                 has_pre, has_skip, has_stats):
    it = iter(refs)
    x_ref = next(it)          # (1, s, s, th + 2//s, Wph*Cin)   bf16
    w_ref = next(it)          # (3, s, Wph*Cin, wo*cout)        bf16 (resident)
    b_ref = next(it)          # (1, wo*cout)                    f32  (resident)
    scale_ref = next(it) if has_pre else None
    shift_ref = next(it) if has_pre else None
    skip_ref = next(it) if has_skip else None
    o_ref = next(it)          # (1, th, wo*cout)
    st_ref = next(it) if has_stats else None

    halo = 2 // s
    tile_rows = th + halo
    wocout = wo * cout

    if has_pre:
        # Fused BatchNorm-apply + activation on the (zero-padded) input.
        xin = x_ref[0, 0, 0].astype(jnp.float32)
        xin = _apply_act(xin * scale_ref[...] + shift_ref[...], act_pre)
        # Re-zero padded rows.  Padded columns are handled by host-zeroed
        # scale/shift and act(0) == 0 for all supported activations.
        r = lax.broadcasted_iota(jnp.int32, (tile_rows, 1), 0)
        top = pl.program_id(1) == 0
        bot = pl.program_id(1) == pl.num_programs(1) - 1
        border = ((r == 0) & top) | ((r == tile_rows - 1) & bot)
        xin = jnp.where(border, 0.0, xin).astype(w_ref.dtype)

    acc = jnp.zeros((th, wocout), jnp.float32)
    for kh in range(3):
        ph, r0 = kh % s, kh // s
        for pw in range(s):
            if has_pre:
                lhs = xin[r0:r0 + th, :]
            else:
                lhs = x_ref[0, ph, pw, r0:r0 + th, :]
            acc = acc + jnp.dot(lhs, w_ref[kh, pw],
                                preferred_element_type=jnp.float32)

    acc = acc + b_ref[...]
    if has_skip:
        acc = acc + skip_ref[0].astype(jnp.float32)       # fused residual add
    acc = _apply_act(acc, act_out)
    out = acc.astype(o_ref.dtype)
    o_ref[0] = out                                        # lane-dense store

    if has_stats:
        # Per-channel sum / sum-of-squares of this output tile (BN statistics),
        # computed from the values actually stored (bf16-rounded).
        of = out.astype(jnp.float32)
        li = lax.broadcasted_iota(jnp.int32, (wocout, cout), 0)
        ci = lax.broadcasted_iota(jnp.int32, (wocout, cout), 1)
        sel = (li % cout == ci).astype(jnp.float32)       # (wo*cout, cout)
        ch_sum = jnp.sum(jnp.dot(of, sel, preferred_element_type=jnp.float32),
                         axis=0, keepdims=True)
        ch_ssq = jnp.sum(jnp.dot(of * of, sel, preferred_element_type=jnp.float32),
                         axis=0, keepdims=True)
        st_ref[0] = jnp.concatenate([ch_sum, ch_ssq], axis=0)


def conv3x3(x, w, b=None, *, stride=1, padding="zeros", act_out="none",
            pre_bn=None, act_pre="none", skip=None, want_stats=False,
            out_dtype=COMPUTE_DTYPE):
    """3x3 conv (padding=1, stride in {1,2}) on NHWC input.

    Optional fusions: `pre_bn=(scale, shift)` + `act_pre` applied to the input,
    bias `b`, residual `skip`, output activation `act_out`, and per-channel
    (sum, sumsq) output stats (`want_stats`).  Returns (out_nhwc, stats|None).
    """
    n, h, wdim, cin = x.shape
    cout = w.shape[0]
    s = stride
    assert s in (1, 2)
    if s == 2:
        assert h % 2 == 0 and wdim % 2 == 0, "stride-2 conv expects even H, W"
        assert pre_bn is None and skip is None

    x = x.astype(COMPUTE_DTYPE)
    mode = "reflect" if padding == "reflect" else "constant"
    x_pad = jnp.pad(x, ((0, 0), (1, 1), (1, 1), (0, 0)), mode=mode)

    ho = (h - 1) // s + 1
    wo = (wdim - 1) // s + 1
    if s == 1:
        x_ph = x_pad[:, None, None]                        # (n,1,1,H+2,W+2,cin)
    else:
        # Phase decomposition so every tap is a contiguous static row slice.
        x_ph = jnp.stack(
            [jnp.stack([x_pad[:, ph::2, pw::2, :] for pw in range(2)], axis=1)
             for ph in range(2)], axis=1)                  # (n,2,2,Hph,Wph,cin)
    hph, wph = x_ph.shape[3], x_ph.shape[4]
    wphc = wph * cin
    x_ph = x_ph.reshape(n, s, s, hph, wphc)                # lane-fused (W, C)
    halo = 2 // s
    wocout = wo * cout
    out_isize = jnp.dtype(out_dtype).itemsize

    # Banded weight matrices: B[kh, pw][(c, ci), (jo, co)] = w[co, ci, kh, kw]
    # with kw = s*(c - jo) + pw (zero outside the 3-tap band).
    wt = jnp.transpose(w, (2, 3, 1, 0)).astype(COMPUTE_DTYPE)   # (3,3,cin,cout)
    c_idx = jnp.arange(wph)[:, None]
    j_idx = jnp.arange(wo)[None, :]
    bmat = jnp.zeros((3, s, wph, cin, wo, cout), COMPUTE_DTYPE)
    for kh in range(3):
        for kw in range(3):
            pw, dj = kw % s, kw // s
            band = (c_idx - j_idx == dj).astype(COMPUTE_DTYPE)   # (wph, wo)
            bmat = bmat.at[kh, pw].add(
                band[:, None, :, None] * wt[kh, kw][None, :, None, :])
    bmat = bmat.reshape(3, s, wphc, wocout)

    bvec = (b if b is not None else jnp.zeros((cout,), jnp.float32))
    bias_v = jnp.tile(bvec.astype(jnp.float32), wo).reshape(1, wocout)

    # ---- VMEM-aware output-row tile (prefer the whole image: no halo dup) ----
    budget, vmem_limit = _budgets()

    def footprint(th_):
        tr = th_ + halo
        fp = s * s * _pad2_bytes(tr, wphc, 2) + _pad2_bytes(th_, wocout, out_isize)
        if skip is not None:
            fp += _pad2_bytes(th_, wocout, 2)
        if want_stats:
            fp += _pad2_bytes(2, cout, 4)
        resident = 3 * s * _pad2_bytes(wphc, wocout, 2) + _pad2_bytes(1, wocout, 4)
        if pre_bn is not None:
            resident += 2 * _pad2_bytes(1, wphc, 4)
        return 2 * (fp + resident)           # x2: double-buffered pipelining

    th = 1
    for cand in range(ho, 0, -1):
        if ho % cand == 0 and footprint(cand) <= budget:
            th = cand
            break
    n_tiles = ho // th
    tile_rows = th + halo

    if n_tiles == 1:
        x_in = x_ph                                        # no HBM duplication
    else:
        # TODO(synk): manual make_async_copy halo pipeline would avoid this
        #             HBM duplication of `halo` rows per tile.
        x_in = jnp.concatenate(
            [lax.dynamic_slice_in_dim(x_ph, t * th, tile_rows, axis=3)[:, None]
             for t in range(n_tiles)], axis=1,
        ).reshape(n * n_tiles, s, s, tile_rows, wphc)

    in_specs = [
        pl.BlockSpec((1, s, s, tile_rows, wphc),
                     lambda i, t: (i * n_tiles + t, 0, 0, 0, 0)),
        pl.BlockSpec((3, s, wphc, wocout), lambda i, t: (0, 0, 0, 0)),   # resident
        pl.BlockSpec((1, wocout), lambda i, t: (0, 0)),                  # resident
    ]
    args = [x_in, bmat, bias_v]

    if pre_bn is not None:
        sc, sh = pre_bn
        colm = jnp.ones((wph,), jnp.float32).at[0].set(0.0).at[wph - 1].set(0.0)
        colm = jnp.repeat(colm, cin)                       # zero pad columns
        scale_v = (jnp.tile(sc.astype(jnp.float32), wph) * colm).reshape(1, wphc)
        shift_v = (jnp.tile(sh.astype(jnp.float32), wph) * colm).reshape(1, wphc)
        in_specs += [pl.BlockSpec((1, wphc), lambda i, t: (0, 0)),
                     pl.BlockSpec((1, wphc), lambda i, t: (0, 0))]
        args += [scale_v, shift_v]

    if skip is not None:
        skip_in = skip.astype(COMPUTE_DTYPE).reshape(n * n_tiles, th, wocout)
        in_specs.append(pl.BlockSpec((1, th, wocout),
                                     lambda i, t: (i * n_tiles + t, 0, 0)))
        args.append(skip_in)

    out_map = lambda i, t: (i * n_tiles + t, 0, 0)
    if want_stats:
        out_shape = (jax.ShapeDtypeStruct((n * n_tiles, th, wocout), out_dtype),
                     jax.ShapeDtypeStruct((n * n_tiles, 2, cout), jnp.float32))
        out_specs = (pl.BlockSpec((1, th, wocout), out_map),
                     pl.BlockSpec((1, 2, cout), out_map))
    else:
        out_shape = jax.ShapeDtypeStruct((n * n_tiles, th, wocout), out_dtype)
        out_specs = pl.BlockSpec((1, th, wocout), out_map)

    kern = partial(_conv_kernel, s=s, th=th, wo=wo, cout=cout,
                   act_pre=act_pre, act_out=act_out,
                   has_pre=pre_bn is not None, has_skip=skip is not None,
                   has_stats=want_stats)

    res = pl.pallas_call(
        kern,
        out_shape=out_shape,
        grid=(n, n_tiles),
        in_specs=in_specs,
        out_specs=out_specs,
        compiler_params=pltpu.CompilerParams(
            dimension_semantics=("parallel", "parallel"),
            vmem_limit_bytes=vmem_limit),
    )(*args)

    if want_stats:
        out, st = res
        stats = jnp.sum(st, axis=0)                        # (2, cout): [sum, sumsq]
    else:
        out, stats = res, None
    return out.reshape(n, ho, wo, cout), stats


# ----------------------------------------------------------------------------
# BatchNorm2d (training-mode statistics) folded into scale/shift
# ----------------------------------------------------------------------------
def _bn_scale_shift(stats, count, gamma, beta, eps=1e-5):
    mean = stats[0] / count
    # NOTE: single-pass E[x^2]-E[x]^2 in f32 with a clamp; post-conv activations
    # here are ~zero-mean so cancellation is not a concern at these scales.
    var = jnp.maximum(stats[1] / count - mean * mean, 0.0)
    scale = gamma * lax.rsqrt(var + eps)
    shift = beta - mean * scale
    return scale, shift


# ----------------------------------------------------------------------------
# Module forward (AutoencoderBlock2d + Encoder2d), NHWC internally
# ----------------------------------------------------------------------------
def autoencoder_block2d_forward(x, p, act):
    # conv = [Conv3x3 reflect no-bias, BN, act, Conv3x3 no-bias, BN, act,
    #         Conv3x3 bias]; skip = Identity; out = act(conv(x) + x).
    # Both BatchNorms are fused: stats come out of the producing conv, the
    # scale/shift + activation is applied inside the consuming conv.
    n, h, w, _ = x.shape
    count = n * h * w
    h1, st1 = conv3x3(x, p["w1"], None, stride=1, padding="reflect",
                      want_stats=True)
    sc1, sh1 = _bn_scale_shift(st1, count, p["g1"], p["b1"])
    h2, st2 = conv3x3(h1, p["w2"], None, stride=1, padding="zeros",
                      pre_bn=(sc1, sh1), act_pre=act, want_stats=True)
    sc2, sh2 = _bn_scale_shift(st2, count, p["g2"], p["b2"])
    out, _ = conv3x3(h2, p["w3"], p["bias3"], stride=1, padding="zeros",
                     pre_bn=(sc2, sh2), act_pre=act, skip=x, act_out=act)
    return out


def encoder2d_forward(x_nchw, params, act):
    x = jnp.transpose(x_nchw, (0, 2, 3, 1))                # NCHW -> NHWC
    for i, stage in enumerate(params["stages"]):
        if i == 0:
            x, _ = conv3x3(x, stage["conv_w"], stage["conv_b"],
                           stride=1, padding="zeros")
        else:
            x, _ = conv3x3(x, stage["conv_w"], None, stride=2, padding="zeros")
        for bp in stage["blocks"]:
            x = autoencoder_block2d_forward(x, bp, act)
    x, _ = conv3x3(x, params["final_w"], params["final_b"],
                   stride=1, padding="zeros", out_dtype=jnp.float32)
    return jnp.transpose(x, (0, 3, 1, 2))                  # NHWC -> NCHW


# ----------------------------------------------------------------------------
# Deterministic parameter initialization (shapes per Encoder2d.__init__)
# ----------------------------------------------------------------------------
def init_encoder2d_params(key, in_channels, out_channels, num_blocks,
                          block_out_channels):
    assert len(num_blocks) == len(block_out_channels)
    keys = iter(jax.random.split(key, 512))

    def conv_w(cin, cout):
        bound = 1.0 / math.sqrt(cin * 9)
        return jax.random.uniform(next(keys), (cout, cin, 3, 3), jnp.float32,
                                  -bound, bound)

    def conv_b(cin, cout):
        bound = 1.0 / math.sqrt(cin * 9)
        return jax.random.uniform(next(keys), (cout,), jnp.float32, -bound, bound)

    stages = []
    for i, nb in enumerate(num_blocks):
        c = block_out_channels[i]
        if i == 0:
            stage = {"conv_w": conv_w(in_channels, c), "conv_b": conv_b(in_channels, c)}
        else:
            stage = {"conv_w": conv_w(c, c), "conv_b": None}   # stride-2, bias=False
        blocks = []
        for _ in range(nb):
            blocks.append({
                "w1": conv_w(c, c),
                "g1": jnp.ones((c,), jnp.float32), "b1": jnp.zeros((c,), jnp.float32),
                "w2": conv_w(c, c),
                "g2": jnp.ones((c,), jnp.float32), "b2": jnp.zeros((c,), jnp.float32),
                "w3": conv_w(c, c), "bias3": conv_b(c, c),
            })
        stage["blocks"] = blocks
        stages.append(stage)
    return {
        "stages": stages,
        "final_w": conv_w(block_out_channels[-1], out_channels),
        "final_b": conv_b(block_out_channels[-1], out_channels),
    }


# ----------------------------------------------------------------------------
if __name__ == "__main__":
    key = jax.random.PRNGKey(0)
    kp, kx = jax.random.split(key)

    in_channels, out_channels = 3, 4
    num_blocks = (1, 1)
    block_out_channels = (8, 8)
    act_fn = "relu"

    params = init_encoder2d_params(kp, in_channels, out_channels,
                                   num_blocks, block_out_channels)

    # PyTorch-style NCHW input
    x = jax.random.normal(kx, (2, in_channels, 16, 16), jnp.float32)

    fwd = jax.jit(partial(encoder2d_forward, act=act_fn))
    y = jax.block_until_ready(fwd(x, params))

    downsample = 2 ** (len(num_blocks) - 1)
    assert y.shape == (2, out_channels, 16 // downsample, 16 // downsample), y.shape
    assert y.dtype == jnp.float32
    assert bool(jnp.all(jnp.isfinite(y)))
    print("KERNEL_OK")
</pallas_src>

<mosaic_0001>
module attributes {stable_mosaic.version = 11 : i64} {
  func.func @_conv_kernel(%arg0: i32, %arg1: i32, %arg2: memref<1x1x1x18x54xbf16, #tpu.memory_space<vmem>>, %arg3: memref<3x1x54x128xbf16, #tpu.memory_space<vmem>>, %arg4: memref<1x128xf32, #tpu.memory_space<vmem>>, %arg5: memref<1x16x128xbf16, #tpu.memory_space<vmem>>) attributes {dimension_semantics = [#tpu.dimension_semantics<parallel>, #tpu.dimension_semantics<parallel>], iteration_bounds = array<i64: 2, 1>, scalar_prefetch = 0 : i64, scratch_operands = 0 : i64, tpu.core_type = #tpu.core_type<tc>, window_params = [{transform_indices = @transform_0, window_bounds = array<i64: 1, 1, 1, 18, 54>}, {pipeline_mode = #tpu.pipeline_mode<synchronous>, transform_indices = @transform_1, window_bounds = array<i64: 3, 1, 54, 128>}, {pipeline_mode = #tpu.pipeline_mode<synchronous>, transform_indices = @transform_2, window_bounds = array<i64: 1, 128>}, {transform_indices = @transform_3, window_bounds = array<i64: 1, 16, 128>}]} {
    %cst = arith.constant 0.000000e+00 : f32
    %0 = vector.broadcast %cst : f32 to vector<16x128xf32>
    %c0 = arith.constant 0 : index
    %c0_0 = arith.constant 0 : index
    %c0_1 = arith.constant 0 : index
    %c0_2 = arith.constant 0 : index
    %c0_3 = arith.constant 0 : index
    %1 = vector.load %arg2[%c0, %c0_0, %c0_1, %c0_2, %c0_3] : memref<1x1x1x18x54xbf16, #tpu.memory_space<vmem>>, vector<1x1x1x16x54xbf16>
    %2 = vector.shape_cast %1 : vector<1x1x1x16x54xbf16> to vector<16x54xbf16>
    %c0_4 = arith.constant 0 : index
    %c0_5 = arith.constant 0 : index
    %c0_6 = arith.constant 0 : index
    %c0_7 = arith.constant 0 : index
    %3 = vector.load %arg3[%c0_4, %c0_5, %c0_6, %c0_7] : memref<3x1x54x128xbf16, #tpu.memory_space<vmem>>, vector<1x1x54x128xbf16>
    %4 = vector.shape_cast %3 : vector<1x1x54x128xbf16> to vector<54x128xbf16>
    %cst_8 = arith.constant dense<0.000000e+00> : vector<16x128xf32>
    %5 = tpu.matmul %2, %4, %cst_8 {dimension_numbers = #tpu.dot_dimension_numbers<[1], [0], [0], [1], [0, 0, 1, 1], [], []>} : vector<16x54xbf16>, vector<54x128xbf16>, vector<16x128xf32> -> vector<16x128xf32>
    %6 = arith.addf %0, %5 : vector<16x128xf32>
    %c0_9 = arith.constant 0 : index
    %c0_10 = arith.constant 0 : index
    %c0_11 = arith.constant 0 : index
    %c1 = arith.constant 1 : index
    %c0_12 = arith.constant 0 : index
    %7 = vector.load %arg2[%c0_9, %c0_10, %c0_11, %c1, %c0_12] : memref<1x1x1x18x54xbf16, #tpu.memory_space<vmem>>, vector<1x1x1x16x54xbf16>
    %8 = vector.shape_cast %7 : vector<1x1x1x16x54xbf16> to vector<16x54xbf16>
    %c1_13 = arith.constant 1 : index
    %c0_14 = arith.constant 0 : index
    %c0_15 = arith.constant 0 : index
    %c0_16 = arith.constant 0 : index
    %9 = vector.load %arg3[%c1_13, %c0_14, %c0_15, %c0_16] : memref<3x1x54x128xbf16, #tpu.memory_space<vmem>>, vector<1x1x54x128xbf16>
    %10 = vector.shape_cast %9 : vector<1x1x54x128xbf16> to vector<54x128xbf16>
    %cst_17 = arith.constant dense<0.000000e+00> : vector<16x128xf32>
    %11 = tpu.matmul %8, %10, %cst_17 {dimension_numbers = #tpu.dot_dimension_numbers<[1], [0], [0], [1], [0, 0, 1, 1], [], []>} : vector<16x54xbf16>, vector<54x128xbf16>, vector<16x128xf32> -> vector<16x128xf32>
    %12 = arith.addf %6, %11 : vector<16x128xf32>
    %c0_18 = arith.constant 0 : index
    %c0_19 = arith.constant 0 : index
    %c0_20 = arith.constant 0 : index
    %c2 = arith.constant 2 : index
    %c0_21 = arith.constant 0 : index
    %13 = vector.load %arg2[%c0_18, %c0_19, %c0_20, %c2, %c0_21] : memref<1x1x1x18x54xbf16, #tpu.memory_space<vmem>>, vector<1x1x1x16x54xbf16>
    %14 = vector.shape_cast %13 : vector<1x1x1x16x54xbf16> to vector<16x54xbf16>
    %c2_22 = arith.constant 2 : index
    %c0_23 = arith.constant 0 : index
    %c0_24 = arith.constant 0 : index
    %c0_25 = arith.constant 0 : index
    %15 = vector.load %arg3[%c2_22, %c0_23, %c0_24, %c0_25] : memref<3x1x54x128xbf16, #tpu.memory_space<vmem>>, vector<1x1x54x128xbf16>
    %16 = vector.shape_cast %15 : vector<1x1x54x128xbf16> to vector<54x128xbf16>
    %cst_26 = arith.constant dense<0.000000e+00> : vector<16x128xf32>
    %17 = tpu.matmul %14, %16, %cst_26 {dimension_numbers = #tpu.dot_dimension_numbers<[1], [0], [0], [1], [0, 0, 1, 1], [], []>} : vector<16x54xbf16>, vector<54x128xbf16>, vector<16x128xf32> -> vector<16x128xf32>
    %18 = arith.addf %12, %17 : vector<16x128xf32>
    %c0_27 = arith.constant 0 : index
    %c0_28 = arith.constant 0 : index
    %19 = vector.load %arg4[%c0_27, %c0_28] : memref<1x128xf32, #tpu.memory_space<vmem>>, vector<1x128xf32>
    %20 = vector.broadcast %19 : vector<1x128xf32> to vector<16x128xf32>
    %21 = arith.addf %18, %20 : vector<16x128xf32>
    %22 = arith.truncf %21 : vector<16x128xf32> to vector<16x128xbf16>
    %c0_29 = arith.constant 0 : index
    %c0_30 = arith.constant 0 : index
    %c0_31 = arith.constant 0 : index
    %23 = vector.load %arg5[%c0_29, %c0_30, %c0_31] : memref<1x16x128xbf16, #tpu.memory_space<vmem>>, vector<1x16x128xbf16>
    %24 = vector.shape_cast %23 : vector<1x16x128xbf16> to vector<16x128xbf16>
    %25 = vector.shape_cast %22 : vector<16x128xbf16> to vector<1x16x128xbf16>
    tpu.vector_store %arg5[%c0_29, %c0_30, %c0_31], %25 {strides = array<i32>} : memref<1x16x128xbf16, #tpu.memory_space<vmem>>, vector<1x16x128xbf16>,
    return
  }
  func.func @transform_0(%arg0: i32, %arg1: i32) -> (i32, i32, i32, i32, i32) {
    %c1_i32 = arith.constant 1 : i32
    %0 = arith.muli %arg0, %c1_i32 : i32
    %1 = arith.addi %0, %arg1 : i32
    %c0_i32 = arith.constant 0 : i32
    %c0_i32_0 = arith.constant 0 : i32
    %c0_i32_1 = arith.constant 0 : i32
    %c0_i32_2 = arith.constant 0 : i32
    %c0_i32_3 = arith.constant 0 : i32
    return %1, %c0_i32, %c0_i32_0, %c0_i32_1, %c0_i32_2 : i32, i32, i32, i32, i32
  }
  func.func @transform_1(%arg0: i32, %arg1: i32) -> (i32, i32, i32, i32) {
    %c0_i32 = arith.constant 0 : i32
    %c0_i32_0 = arith.constant 0 : i32
    %c0_i32_1 = arith.constant 0 : i32
    %c0_i32_2 = arith.constant 0 : i32
    %c0_i32_3 = arith.constant 0 : i32
    return %c0_i32, %c0_i32_0, %c0_i32_1, %c0_i32_2 : i32, i32, i32, i32
  }
  func.func @transform_2(%arg0: i32, %arg1: i32) -> (i32, i32) {
    %c0_i32 = arith.constant 0 : i32
    %c0_i32_0 = arith.constant 0 : i32
    %c0_i32_1 = arith.constant 0 : i32
    return %c0_i32, %c0_i32_0 : i32, i32
  }
  func.func @transform_3(%arg0: i32, %arg1: i32) -> (i32, i32, i32) {
    %c1_i32 = arith.constant 1 : i32
    %0 = arith.muli %arg0, %c1_i32 : i32
    %1 = arith.addi %0, %arg1 : i32
    %c0_i32 = arith.constant 0 : i32
    %c0_i32_0 = arith.constant 0 : i32
    %c0_i32_1 = arith.constant 0 : i32
    return %1, %c0_i32, %c0_i32_0 : i32, i32, i32
  }
}

module attributes {stable_mosaic.version = 11 : i64} {
  func.func @_conv_kernel(%arg0: i32, %arg1: i32, %arg2: memref<1x1x1x18x144xbf16, #tpu.memory_space<vmem>>, %arg3: memref<3x1x144x128xbf16, #tpu.memory_space<vmem>>, %arg4: memref<1x128xf32, #tpu.memory_space<vmem>>, %arg5: memref<1x16x128xbf16, #tpu.memory_space<vmem>>, %arg6: memref<1x2x8xf32, #tpu.memory_space<vmem>>) attributes {dimension_semantics = [#tpu.dimension_semantics<parallel>, #tpu.dimension_semantics<parallel>], iteration_bounds = array<i64: 2, 1>, scalar_prefetch = 0 : i64, scratch_operands = 0 : i64, tpu.core_type = #tpu.core_type<tc>, window_params = [{transform_indices = @transform_0, window_bounds = array<i64: 1, 1, 1, 18, 144>}, {pipeline_mode = #tpu.pipeline_mode<synchronous>, transform_indices = @transform_1, window_bounds = array<i64: 3, 1, 144, 128>}, {pipeline_mode = #tpu.pipeline_mode<synchronous>, transform_indices = @transform_2, window_bounds = array<i64: 1, 128>}, {transform_indices = @transform_3, window_bounds = array<i64: 1, 16, 128>}, {transform_indices = @transform_4, window_bounds = array<i64: 1, 2, 8>}]} {
    %cst = arith.constant 0.000000e+00 : f32
    %0 = vector.broadcast %cst : f32 to vector<16x128xf32>
    %c0 = arith.constant 0 : index
    %c0_0 = arith.constant 0 : index
    %c0_1 = arith.constant 0 : index
    %c0_2 = arith.constant 0 : index
    %c0_3 = arith.constant 0 : index
    %1 = vector.load %arg2[%c0, %c0_0, %c0_1, %c0_2, %c0_3] : memref<1x1x1x18x144xbf16, #tpu.memory_space<vmem>>, vector<1x1x1x16x144xbf16>
    %2 = vector.shape_cast %1 : vector<1x1x1x16x144xbf16> to vector<16x144xbf16>
    %c0_4 = arith.constant 0 : index
    %c0_5 = arith.constant 0 : index
    %c0_6 = arith.constant 0 : index
    %c0_7 = arith.constant 0 : index
    %3 = vector.load %arg3[%c0_4, %c0_5, %c0_6, %c0_7] : memref<3x1x144x128xbf16, #tpu.memory_space<vmem>>, vector<1x1x144x128xbf16>
    %4 = vector.shape_cast %3 : vector<1x1x144x128xbf16> to vector<144x128xbf16>
    %cst_8 = arith.constant dense<0.000000e+00> : vector<16x128xf32>
    %5 = tpu.matmul %2, %4, %cst_8 {dimension_numbers = #tpu.dot_dimension_numbers<[1], [0], [0], [1], [0, 0, 1, 1], [], []>} : vector<16x144xbf16>, vector<144x128xbf16>, vector<16x128xf32> -> vector<16x128xf32>
    %6 = arith.addf %0, %5 : vector<16x128xf32>
    %c0_9 = arith.constant 0 : index
    %c0_10 = arith.constant 0 : index
    %c0_11 = arith.constant 0 : index
    %c1 = arith.constant 1 : index
    %c0_12 = arith.constant 0 : index
    %7 = vector.load %arg2[%c0_9, %c0_10, %c0_11, %c1, %c0_12] : memref<1x1x1x18x144xbf16, #tpu.memory_space<vmem>>, vector<1x1x1x16x144xbf16>
    %8 = vector.shape_cast %7 : vector<1x1x1x16x144xbf16> to vector<16x144xbf16>
    %c1_13 = arith.constant 1 : index
    %c0_14 = arith.constant 0 : index
    %c0_15 = arith.constant 0 : index
    %c0_16 = arith.constant 0 : index
    %9 = vector.load %arg3[%c1_13, %c0_14, %c0_15, %c0_16] : memref<3x1x144x128xbf16, #tpu.memory_space<vmem>>, vector<1x1x144x128xbf16>
    %10 = vector.shape_cast %9 : vector<1x1x144x128xbf16> to vector<144x128xbf16>
    %cst_17 = arith.constant dense<0.000000e+00> : vector<16x128xf32>
    %11 = tpu.matmul %8, %10, %cst_17 {dimension_numbers = #tpu.dot_dimension_numbers<[1], [0], [0], [1], [0, 0, 1, 1], [], []>} : vector<16x144xbf16>, vector<144x128xbf16>, vector<16x128xf32> -> vector<16x128xf32>
    %12 = arith.addf %6, %11 : vector<16x128xf32>
    %c0_18 = arith.constant 0 : index
    %c0_19 = arith.constant 0 : index
    %c0_20 = arith.constant 0 : index
    %c2 = arith.constant 2 : index
    %c0_21 = arith.constant 0 : index
    %13 = vector.load %arg2[%c0_18, %c0_19, %c0_20, %c2, %c0_21] : memref<1x1x1x18x144xbf16, #tpu.memory_space<vmem>>, vector<1x1x1x16x144xbf16>
    %14 = vector.shape_cast %13 : vector<1x1x1x16x144xbf16> to vector<16x144xbf16>
    %c2_22 = arith.constant 2 : index
    %c0_23 = arith.constant 0 : index
    %c0_24 = arith.constant 0 : index
    %c0_25 = arith.constant 0 : index
    %15 = vector.load %arg3[%c2_22, %c0_23, %c0_24, %c0_25] : memref<3x1x144x128xbf16, #tpu.memory_space<vmem>>, vector<1x1x144x128xbf16>
    %16 = vector.shape_cast %15 : vector<1x1x144x128xbf16> to vector<144x128xbf16>
    %cst_26 = arith.constant dense<0.000000e+00> : vector<16x128xf32>
    %17 = tpu.matmul %14, %16, %cst_26 {dimension_numbers = #tpu.dot_dimension_numbers<[1], [0], [0], [1], [0, 0, 1, 1], [], []>} : vector<16x144xbf16>, vector<144x128xbf16>, vector<16x128xf32> -> vector<16x128xf32>
    %18 = arith.addf %12, %17 : vector<16x128xf32>
    %c0_27 = arith.constant 0 : index
    %c0_28 = arith.constant 0 : index
    %19 = vector.load %arg4[%c0_27, %c0_28] : memref<1x128xf32, #tpu.memory_space<vmem>>, vector<1x128xf32>
    %20 = vector.broadcast %19 : vector<1x128xf32> to vector<16x128xf32>
    %21 = arith.addf %18, %20 : vector<16x128xf32>
    %22 = arith.truncf %21 : vector<16x128xf32> to vector<16x128xbf16>
    %c0_29 = arith.constant 0 : index
    %c0_30 = arith.constant 0 : index
    %c0_31 = arith.constant 0 : index
    %23 = vector.load %arg5[%c0_29, %c0_30, %c0_31] : memref<1x16x128xbf16, #tpu.memory_space<vmem>>, vector<1x16x128xbf16>
    %24 = vector.shape_cast %23 : vector<1x16x128xbf16> to vector<16x128xbf16>
    %25 = vector.shape_cast %22 : vector<16x128xbf16> to vector<1x16x128xbf16>
    tpu.vector_store %arg5[%c0_29, %c0_30, %c0_31], %25 {strides = array<i32>} : memref<1x16x128xbf16, #tpu.memory_space<vmem>>, vector<1x16x128xbf16>,
    %26 = arith.extf %22 : vector<16x128xbf16> to vector<16x128xf32>
    %27 = tpu.iota {dimensions = array<i32: 0>} : vector<128x8xi32>
    %28 = tpu.iota {dimensions = array<i32: 1>} : vector<128x8xi32>
    %c8_i32 = arith.constant 8 : i32
    %c0_i32 = arith.constant 0 : i32
    %29 = arith.cmpi eq, %c8_i32, %c0_i32 : i32
    %c1_i32 = arith.constant 1 : i32
    %30 = arith.select %29, %c1_i32, %c8_i32 : i32
    %31 = vector.broadcast %30 : i32 to vector<128x8xi32>
    %32 = arith.remsi %27, %31 : vector<128x8xi32>
    %c0_i32_32 = arith.constant 0 : i32
    %33 = vector.broadcast %c0_i32_32 : i32 to vector<128x8xi32>
    %34 = arith.cmpi ne, %32, %33 : vector<128x8xi32>
    %c0_i32_33 = arith.constant 0 : i32
    %35 = vector.broadcast %c0_i32_33 : i32 to vector<128x8xi32>
    %36 = arith.cmpi slt, %32, %35 : vector<128x8xi32>
    %c0_i32_34 = arith.constant 0 : i32
    %37 = arith.cmpi slt, %30, %c0_i32_34 : i32
    %38 = vector.broadcast %37 : i1 to vector<128x8xi1>
    %39 = vector.broadcast %38 : vector<128x8xi1> to vector<128x8xi1>
    %40 = arith.xori %36, %39 : vector<128x8xi1>
    %41 = arith.andi %40, %34 : vector<128x8xi1>
    %42 = vector.broadcast %30 : i32 to vector<128x8xi32>
    %43 = arith.addi %32, %42 : vector<128x8xi32>
    %44 = arith.select %41, %43, %32 : vector<128x8xi1>, vector<128x8xi32>
    %45 = arith.cmpi eq, %44, %28 : vector<128x8xi32>
    %46 = arith.extui %45 : vector<128x8xi1> to vector<128x8xi32>
    %47 = arith.sitofp %46 : vector<128x8xi32> to vector<128x8xf32>
    %cst_35 = arith.constant dense<0.000000e+00> : vector<16x8xf32>
    %48 = tpu.matmul %26, %47, %cst_35 {dimension_numbers = #tpu.dot_dimension_numbers<[1], [0], [0], [1], [0, 0, 1, 1], [], []>} : vector<16x128xf32>, vector<128x8xf32>, vector<16x8xf32> -> vector<16x8xf32>
    %cst_36 = arith.constant dense<0.000000e+00> : vector<8xf32>
    %49 = vector.multi_reduction <add>, %48, %cst_36 [0] : vector<16x8xf32> to vector<8xf32>
    %50 = vector.shape_cast %49 : vector<8xf32> to vector<1x8xf32>
    %51 = arith.mulf %26, %26 : vector<16x128xf32>
    %cst_37 = arith.constant dense<0.000000e+00> : vector<16x8xf32>
    %52 = tpu.matmul %51, %47, %cst_37 {dimension_numbers = #tpu.dot_dimension_numbers<[1], [0], [0], [1], [0, 0, 1, 1], [], []>} : vector<16x128xf32>, vector<128x8xf32>, vector<16x8xf32> -> vector<16x8xf32>
    %cst_38 = arith.constant dense<0.000000e+00> : vector<8xf32>
    %53 = vector.multi_reduction <add>, %52, %cst_38 [0] : vector<16x8xf32> to vector<8xf32>
    %54 = vector.shape_cast %53 : vector<8xf32> to vector<1x8xf32>
    %55 = tpu.concatenate %50, %54 in 0 : vector<1x8xf32>, vector<1x8xf32> -> vector<2x8xf32>
    %c0_39 = arith.constant 0 : index
    %c0_40 = arith.constant 0 : index
    %c0_41 = arith.constant 0 : index
    %56 = vector.load %arg6[%c0_39, %c0_40, %c0_41] : memref<1x2x8xf32, #tpu.memory_space<vmem>>, vector<1x2x8xf32>
    %57 = vector.shape_cast %56 : vector<1x2x8xf32> to vector<2x8xf32>
    %58 = vector.shape_cast %55 : vector<2x8xf32> to vector<1x2x8xf32>
    tpu.vector_store %arg6[%c0_39, %c0_40, %c0_41], %58 {strides = array<i32>} : memref<1x2x8xf32, #tpu.memory_space<vmem>>, vector<1x2x8xf32>,
    return
  }
  func.func @transform_0(%arg0: i32, %arg1: i32) -> (i32, i32, i32, i32, i32) {
    %c1_i32 = arith.constant 1 : i32
    %0 = arith.muli %arg0, %c1_i32 : i32
    %1 = arith.addi %0, %arg1 : i32
    %c0_i32 = arith.constant 0 : i32
    %c0_i32_0 = arith.constant 0 : i32
    %c0_i32_1 = arith.constant 0 : i32
    %c0_i32_2 = arith.constant 0 : i32
    %c0_i32_3 = arith.constant 0 : i32
    return %1, %c0_i32, %c0_i32_0, %c0_i32_1, %c0_i32_2 : i32, i32, i32, i32, i32
  }
  func.func @transform_1(%arg0: i32, %arg1: i32) -> (i32, i32, i32, i32) {
    %c0_i32 = arith.constant 0 : i32
    %c0_i32_0 = arith.constant 0 : i32
    %c0_i32_1 = arith.constant 0 : i32
    %c0_i32_2 = arith.constant 0 : i32
    %c0_i32_3 = arith.constant 0 : i32
    return %c0_i32, %c0_i32_0, %c0_i32_1, %c0_i32_2 : i32, i32, i32, i32
  }
  func.func @transform_2(%arg0: i32, %arg1: i32) -> (i32, i32) {
    %c0_i32 = arith.constant 0 : i32
    %c0_i32_0 = arith.constant 0 : i32
    %c0_i32_1 = arith.constant 0 : i32
    return %c0_i32, %c0_i32_0 : i32, i32
  }
  func.func @transform_3(%arg0: i32, %arg1: i32) -> (i32, i32, i32) {
    %c1_i32 = arith.constant 1 : i32
    %0 = arith.muli %arg0, %c1_i32 : i32
    %1 = arith.addi %0, %arg1 : i32
    %c0_i32 = arith.constant 0 : i32
    %c0_i32_0 = arith.constant 0 : i32
    %c0_i32_1 = arith.constant 0 : i32
    return %1, %c0_i32, %c0_i32_0 : i32, i32, i32
  }
  func.func @transform_4(%arg0: i32, %arg1: i32) -> (i32, i32, i32) {
    %c1_i32 = arith.constant 1 : i32
    %0 = arith.muli %arg0, %c1_i32 : i32
    %1 = arith.addi %0, %arg1 : i32
    %c0_i32 = arith.constant 0 : i32
    %c0_i32_0 = arith.constant 0 : i32
    %c0_i32_1 = arith.constant 0 : i32
    return %1, %c0_i32, %c0_i32_0 : i32, i32, i32
  }
}

module attributes {stable_mosaic.version = 11 : i64} {
  func.func @_conv_kernel(%arg0: i32, %arg1: i32, %arg2: memref<1x1x1x18x144xbf16, #tpu.memory_space<vmem>>, %arg3: memref<3x1x144x128xbf16, #tpu.memory_space<vmem>>, %arg4: memref<1x128xf32, #tpu.memory_space<vmem>>, %arg5: memref<1x144xf32, #tpu.memory_space<vmem>>, %arg6: memref<1x144xf32, #tpu.memory_space<vmem>>, %arg7: memref<1x16x128xbf16, #tpu.memory_space<vmem>>, %arg8: memref<1x16x128xbf16, #tpu.memory_space<vmem>>) attributes {dimension_semantics = [#tpu.dimension_semantics<parallel>, #tpu.dimension_semantics<parallel>], iteration_bounds = array<i64: 2, 1>, scalar_prefetch = 0 : i64, scratch_operands = 0 : i64, tpu.core_type = #tpu.core_type<tc>, window_params = [{transform_indices = @transform_0, window_bounds = array<i64: 1, 1, 1, 18, 144>}, {pipeline_mode = #tpu.pipeline_mode<synchronous>, transform_indices = @transform_1, window_bounds = array<i64: 3, 1, 144, 128>}, {pipeline_mode = #tpu.pipeline_mode<synchronous>, transform_indices = @transform_2, window_bounds = array<i64: 1, 128>}, {pipeline_mode = #tpu.pipeline_mode<synchronous>, transform_indices = @transform_3, window_bounds = array<i64: 1, 144>}, {pipeline_mode = #tpu.pipeline_mode<synchronous>, transform_indices = @transform_4, window_bounds = array<i64: 1, 144>}, {transform_indices = @transform_5, window_bounds = array<i64: 1, 16, 128>}, {transform_indices = @transform_6, window_bounds = array<i64: 1, 16, 128>}]} {
    %c0 = arith.constant 0 : index
    %c0_0 = arith.constant 0 : index
    %c0_1 = arith.constant 0 : index
    %c0_2 = arith.constant 0 : index
    %c0_3 = arith.constant 0 : index
    %0 = vector.load %arg2[%c0, %c0_0, %c0_1, %c0_2, %c0_3] : memref<1x1x1x18x144xbf16, #tpu.memory_space<vmem>>, vector<1x1x1x18x144xbf16>
    %1 = vector.shape_cast %0 : vector<1x1x1x18x144xbf16> to vector<18x144xbf16>
    %2 = arith.extf %1 : vector<18x144xbf16> to vector<18x144xf32>
    %c0_4 = arith.constant 0 : index
    %c0_5 = arith.constant 0 : index
    %3 = vector.load %arg5[%c0_4, %c0_5] : memref<1x144xf32, #tpu.memory_space<vmem>>, vector<1x144xf32>
    %4 = vector.broadcast %3 : vector<1x144xf32> to vector<18x144xf32>
    %5 = arith.mulf %2, %4 : vector<18x144xf32>
    %c0_6 = arith.constant 0 : index
    %c0_7 = arith.constant 0 : index
    %6 = vector.load %arg6[%c0_6, %c0_7] : memref<1x144xf32, #tpu.memory_space<vmem>>, vector<1x144xf32>
    %7 = vector.broadcast %6 : vector<1x144xf32> to vector<18x144xf32>
    %8 = arith.addf %5, %7 : vector<18x144xf32>
    %cst = arith.constant 0.000000e+00 : f32
    %9 = vector.broadcast %cst : f32 to vector<18x144xf32>
    %10 = arith.maximumf %8, %9 : vector<18x144xf32>
    %11 = tpu.iota {dimensions = array<i32: 0>} : vector<18x1xi32>
    %c0_i32 = arith.constant 0 : i32
    %12 = arith.cmpi eq, %arg1, %c0_i32 : i32
    %c0_i32_8 = arith.constant 0 : i32
    %13 = arith.cmpi eq, %arg1, %c0_i32_8 : i32
    %c0_i32_9 = arith.constant 0 : i32
    %14 = vector.broadcast %c0_i32_9 : i32 to vector<18x1xi32>
    %15 = arith.cmpi eq, %11, %14 : vector<18x1xi32>
    %16 = vector.broadcast %12 : i1 to vector<18x1xi1>
    %17 = arith.andi %15, %16 : vector<18x1xi1>
    %c17_i32 = arith.constant 17 : i32
    %18 = vector.broadcast %c17_i32 : i32 to vector<18x1xi32>
    %19 = arith.cmpi eq, %11, %18 : vector<18x1xi32>
    %20 = vector.broadcast %13 : i1 to vector<18x1xi1>
    %21 = arith.andi %19, %20 : vector<18x1xi1>
    %22 = arith.ori %17, %21 : vector<18x1xi1>
    %cst_10 = arith.constant 0.000000e+00 : f32
    %23 = vector.shape_cast %22 : vector<18x1xi1> to vector<18x1xi1>
    %24 = vector.broadcast %23 : vector<18x1xi1> to vector<18x144xi1>
    %25 = vector.broadcast %cst_10 : f32 to vector<18x144xf32>
    %26 = arith.select %24, %25, %10 : vector<18x144xi1>, vector<18x144xf32>
    %27 = arith.truncf %26 : vector<18x144xf32> to vector<18x144xbf16>
    %cst_11 = arith.constant 0.000000e+00 : f32
    %28 = vector.broadcast %cst_11 : f32 to vector<16x128xf32>
    %29 = vector.extract_strided_slice %27 {offsets = [0, 0], sizes = [16, 144], strides = [1, 1]} : vector<18x144xbf16> to vector<16x144xbf16>
    %c0_12 = arith.constant 0 : index
    %c0_13 = arith.constant 0 : index
    %c0_14 = arith.constant 0 : index
    %c0_15 = arith.constant 0 : index
    %30 = vector.load %arg3[%c0_12, %c0_13, %c0_14, %c0_15] : memref<3x1x144x128xbf16, #tpu.memory_space<vmem>>, vector<1x1x144x128xbf16>
    %31 = vector.shape_cast %30 : vector<1x1x144x128xbf16> to vector<144x128xbf16>
    %cst_16 = arith.constant dense<0.000000e+00> : vector<16x128xf32>
    %32 = tpu.matmul %29, %31, %cst_16 {dimension_numbers = #tpu.dot_dimension_numbers<[1], [0], [0], [1], [0, 0, 1, 1], [], []>} : vector<16x144xbf16>, vector<144x128xbf16>, vector<16x128xf32> -> vector<16x128xf32>
    %33 = arith.addf %28, %32 : vector<16x128xf32>
    %34 = vector.extract_strided_slice %27 {offsets = [1, 0], sizes = [16, 144], strides = [1, 1]} : vector<18x144xbf16> to vector<16x144xbf16>
    %c1 = arith.constant 1 : index
    %c0_17 = arith.constant 0 : index
    %c0_18 = arith.constant 0 : index
    %c0_19 = arith.constant 0 : index
    %35 = vector.load %arg3[%c1, %c0_17, %c0_18, %c0_19] : memref<3x1x144x128xbf16, #tpu.memory_space<vmem>>, vector<1x1x144x128xbf16>
    %36 = vector.shape_cast %35 : vector<1x1x144x128xbf16> to vector<144x128xbf16>
    %cst_20 = arith.constant dense<0.000000e+00> : vector<16x128xf32>
    %37 = tpu.matmul %34, %36, %cst_20 {dimension_numbers = #tpu.dot_dimension_numbers<[1], [0], [0], [1], [0, 0, 1, 1], [], []>} : vector<16x144xbf16>, vector<144x128xbf16>, vector<16x128xf32> -> vector<16x128xf32>
    %38 = arith.addf %33, %37 : vector<16x128xf32>
    %39 = vector.extract_strided_slice %27 {offsets = [2, 0], sizes = [16, 144], strides = [1, 1]} : vector<18x144xbf16> to vector<16x144xbf16>
    %c2 = arith.constant 2 : index
    %c0_21 = arith.constant 0 : index
    %c0_22 = arith.constant 0 : index
    %c0_23 = arith.constant 0 : index
    %40 = vector.load %arg3[%c2, %c0_21, %c0_22, %c0_23] : memref<3x1x144x128xbf16, #tpu.memory_space<vmem>>, vector<1x1x144x128xbf16>
    %41 = vector.shape_cast %40 : vector<1x1x144x128xbf16> to vector<144x128xbf16>
    %cst_24 = arith.constant dense<0.000000e+00> : vector<16x128xf32>
    %42 = tpu.matmul %39, %41, %cst_24 {dimension_numbers = #tpu.dot_dimension_numbers<[1], [0], [0], [1], [0, 0, 1, 1], [], []>} : vector<16x144xbf16>, vector<144x128xbf16>, vector<16x128xf32> -> vector<16x128xf32>
    %43 = arith.addf %38, %42 : vector<16x128xf32>
    %c0_25 = arith.constant 0 : index
    %c0_26 = arith.constant 0 : index
    %44 = vector.load %arg4[%c0_25, %c0_26] : memref<1x128xf32, #tpu.memory_space<vmem>>, vector<1x128xf32>
    %45 = vector.broadcast %44 : vector<1x128xf32> to vector<16x128xf32>
    %46 = arith.addf %43, %45 : vector<16x128xf32>
    %c0_27 = arith.constant 0 : index
    %c0_28 = arith.constant 0 : index
    %c0_29 = arith.constant 0 : index
    %47 = vector.load %arg7[%c0_27, %c0_28, %c0_29] : memref<1x16x128xbf16, #tpu.memory_space<vmem>>, vector<1x16x128xbf16>
    %48 = vector.shape_cast %47 : vector<1x16x128xbf16> to vector<16x128xbf16>
    %49 = arith.extf %48 : vector<16x128xbf16> to vector<16x128xf32>
    %50 = arith.addf %46, %49 : vector<16x128xf32>
    %cst_30 = arith.constant 0.000000e+00 : f32
    %51 = vector.broadcast %cst_30 : f32 to vector<16x128xf32>
    %52 = arith.maximumf %50, %51 : vector<16x128xf32>
    %53 = arith.truncf %52 : vector<16x128xf32> to vector<16x128xbf16>
    %c0_31 = arith.constant 0 : index
    %c0_32 = arith.constant 0 : index
    %c0_33 = arith.constant 0 : index
    %54 = vector.load %arg8[%c0_31, %c0_32, %c0_33] : memref<1x16x128xbf16, #tpu.memory_space<vmem>>, vector<1x16x128xbf16>
    %55 = vector.shape_cast %54 : vector<1x16x128xbf16> to vector<16x128xbf16>
    %56 = vector.shape_cast %53 : vector<16x128xbf16> to vector<1x16x128xbf16>
    tpu.vector_store %arg8[%c0_31, %c0_32, %c0_33], %56 {strides = array<i32>} : memref<1x16x128xbf16, #tpu.memory_space<vmem>>, vector<1x16x128xbf16>,
    return
  }
  func.func @transform_0(%arg0: i32, %arg1: i32) -> (i32, i32, i32, i32, i32) {
    %c1_i32 = arith.constant 1 : i32
    %0 = arith.muli %arg0, %c1_i32 : i32
    %1 = arith.addi %0, %arg1 : i32
    %c0_i32 = arith.constant 0 : i32
    %c0_i32_0 = arith.constant 0 : i32
    %c0_i32_1 = arith.constant 0 : i32
    %c0_i32_2 = arith.constant 0 : i32
    %c0_i32_3 = arith.constant 0 : i32
    return %1, %c0_i32, %c0_i32_0, %c0_i32_1, %c0_i32_2 : i32, i32, i32, i32, i32
  }
  func.func @transform_1(%arg0: i32, %arg1: i32) -> (i32, i32, i32, i32) {
    %c0_i32 = arith.constant 0 : i32
    %c0_i32_0 = arith.constant 0 : i32
    %c0_i32_1 = arith.constant 0 : i32
    %c0_i32_2 = arith.constant 0 : i32
    %c0_i32_3 = arith.constant 0 : i32
    return %c0_i32, %c0_i32_0, %c0_i32_1, %c0_i32_2 : i32, i32, i32, i32
  }
  func.func @transform_2(%arg0: i32, %arg1: i32) -> (i32, i32) {
    %c0_i32 = arith.constant 0 : i32
    %c0_i32_0 = arith.constant 0 : i32
    %c0_i32_1 = arith.constant 0 : i32
    return %c0_i32, %c0_i32_0 : i32, i32
  }
  func.func @transform_3(%arg0: i32, %arg1: i32) -> (i32, i32) {
    %c0_i32 = arith.constant 0 : i32
    %c0_i32_0 = arith.constant 0 : i32
    %c0_i32_1 = arith.constant 0 : i32
    return %c0_i32, %c0_i32_0 : i32, i32
  }
  func.func @transform_4(%arg0: i32, %arg1: i32) -> (i32, i32) {
    %c0_i32 = arith.constant 0 : i32
    %c0_i32_0 = arith.constant 0 : i32
    %c0_i32_1 = arith.constant 0 : i32
    return %c0_i32, %c0_i32_0 : i32, i32
  }
  func.func @transform_5(%arg0: i32, %arg1: i32) -> (i32, i32, i32) {
    %c1_i32 = arith.constant 1 : i32
    %0 = arith.muli %arg0, %c1_i32 : i32
    %1 = arith.addi %0, %arg1 : i32
    %c0_i32 = arith.constant 0 : i32
    %c0_i32_0 = arith.constant 0 : i32
    %c0_i32_1 = arith.constant 0 : i32
    return %1, %c0_i32, %c0_i32_0 : i32, i32, i32
  }
  func.func @transform_6(%arg0: i32, %arg1: i32) -> (i32, i32, i32) {
    %c1_i32 = arith.constant 1 : i32
    %0 = arith.muli %arg0, %c1_i32 : i32
    %1 = arith.addi %0, %arg1 : i32
    %c0_i32 = arith.constant 0 : i32
    %c0_i32_0 = arith.constant 0 : i32
    %c0_i32_1 = arith.constant 0 : i32
    return %1, %c0_i32, %c0_i32_0 : i32, i32, i32
  }
}

module attributes {stable_mosaic.version = 11 : i64} {
  func.func @_conv_kernel(%arg0: i32, %arg1: i32, %arg2: memref<1x1x1x18x144xbf16, #tpu.memory_space<vmem>>, %arg3: memref<3x1x144x128xbf16, #tpu.memory_space<vmem>>, %arg4: memref<1x128xf32, #tpu.memory_space<vmem>>, %arg5: memref<1x144xf32, #tpu.memory_space<vmem>>, %arg6: memref<1x144xf32, #tpu.memory_space<vmem>>, %arg7: memref<1x16x128xbf16, #tpu.memory_space<vmem>>, %arg8: memref<1x2x8xf32, #tpu.memory_space<vmem>>) attributes {dimension_semantics = [#tpu.dimension_semantics<parallel>, #tpu.dimension_semantics<parallel>], iteration_bounds = array<i64: 2, 1>, scalar_prefetch = 0 : i64, scratch_operands = 0 : i64, tpu.core_type = #tpu.core_type<tc>, window_params = [{transform_indices = @transform_0, window_bounds = array<i64: 1, 1, 1, 18, 144>}, {pipeline_mode = #tpu.pipeline_mode<synchronous>, transform_indices = @transform_1, window_bounds = array<i64: 3, 1, 144, 128>}, {pipeline_mode = #tpu.pipeline_mode<synchronous>, transform_indices = @transform_2, window_bounds = array<i64: 1, 128>}, {pipeline_mode = #tpu.pipeline_mode<synchronous>, transform_indices = @transform_3, window_bounds = array<i64: 1, 144>}, {pipeline_mode = #tpu.pipeline_mode<synchronous>, transform_indices = @transform_4, window_bounds = array<i64: 1, 144>}, {transform_indices = @transform_5, window_bounds = array<i64: 1, 16, 128>}, {transform_indices = @transform_6, window_bounds = array<i64: 1, 2, 8>}]} {
    %c0 = arith.constant 0 : index
    %c0_0 = arith.constant 0 : index
    %c0_1 = arith.constant 0 : index
    %c0_2 = arith.constant 0 : index
    %c0_3 = arith.constant 0 : index
    %0 = vector.load %arg2[%c0, %c0_0, %c0_1, %c0_2, %c0_3] : memref<1x1x1x18x144xbf16, #tpu.memory_space<vmem>>, vector<1x1x1x18x144xbf16>
    %1 = vector.shape_cast %0 : vector<1x1x1x18x144xbf16> to vector<18x144xbf16>
    %2 = arith.extf %1 : vector<18x144xbf16> to vector<18x144xf32>
    %c0_4 = arith.constant 0 : index
    %c0_5 = arith.constant 0 : index
    %3 = vector.load %arg5[%c0_4, %c0_5] : memref<1x144xf32, #tpu.memory_space<vmem>>, vector<1x144xf32>
    %4 = vector.broadcast %3 : vector<1x144xf32> to vector<18x144xf32>
    %5 = arith.mulf %2, %4 : vector<18x144xf32>
    %c0_6 = arith.constant 0 : index
    %c0_7 = arith.constant 0 : index
    %6 = vector.load %arg6[%c0_6, %c0_7] : memref<1x144xf32, #tpu.memory_space<vmem>>, vector<1x144xf32>
    %7 = vector.broadcast %6 : vector<1x144xf32> to vector<18x144xf32>
    %8 = arith.addf %5, %7 : vector<18x144xf32>
    %cst = arith.constant 0.000000e+00 : f32
    %9 = vector.broadcast %cst : f32 to vector<18x144xf32>
    %10 = arith.maximumf %8, %9 : vector<18x144xf32>
    %11 = tpu.iota {dimensions = array<i32: 0>} : vector<18x1xi32>
    %c0_i32 = arith.constant 0 : i32
    %12 = arith.cmpi eq, %arg1, %c0_i32 : i32
    %c0_i32_8 = arith.constant 0 : i32
    %13 = arith.cmpi eq, %arg1, %c0_i32_8 : i32
    %c0_i32_9 = arith.constant 0 : i32
    %14 = vector.broadcast %c0_i32_9 : i32 to vector<18x1xi32>
    %15 = arith.cmpi eq, %11, %14 : vector<18x1xi32>
    %16 = vector.broadcast %12 : i1 to vector<18x1xi1>
    %17 = arith.andi %15, %16 : vector<18x1xi1>
    %c17_i32 = arith.constant 17 : i32
    %18 = vector.broadcast %c17_i32 : i32 to vector<18x1xi32>
    %19 = arith.cmpi eq, %11, %18 : vector<18x1xi32>
    %20 = vector.broadcast %13 : i1 to vector<18x1xi1>
    %21 = arith.andi %19, %20 : vector<18x1xi1>
    %22 = arith.ori %17, %21 : vector<18x1xi1>
    %cst_10 = arith.constant 0.000000e+00 : f32
    %23 = vector.shape_cast %22 : vector<18x1xi1> to vector<18x1xi1>
    %24 = vector.broadcast %23 : vector<18x1xi1> to vector<18x144xi1>
    %25 = vector.broadcast %cst_10 : f32 to vector<18x144xf32>
    %26 = arith.select %24, %25, %10 : vector<18x144xi1>, vector<18x144xf32>
    %27 = arith.truncf %26 : vector<18x144xf32> to vector<18x144xbf16>
    %cst_11 = arith.constant 0.000000e+00 : f32
    %28 = vector.broadcast %cst_11 : f32 to vector<16x128xf32>
    %29 = vector.extract_strided_slice %27 {offsets = [0, 0], sizes = [16, 144], strides = [1, 1]} : vector<18x144xbf16> to vector<16x144xbf16>
    %c0_12 = arith.constant 0 : index
    %c0_13 = arith.constant 0 : index
    %c0_14 = arith.constant 0 : index
    %c0_15 = arith.constant 0 : index
    %30 = vector.load %arg3[%c0_12, %c0_13, %c0_14, %c0_15] : memref<3x1x144x128xbf16, #tpu.memory_space<vmem>>, vector<1x1x144x128xbf16>
    %31 = vector.shape_cast %30 : vector<1x1x144x128xbf16> to vector<144x128xbf16>
    %cst_16 = arith.constant dense<0.000000e+00> : vector<16x128xf32>
    %32 = tpu.matmul %29, %31, %cst_16 {dimension_numbers = #tpu.dot_dimension_numbers<[1], [0], [0], [1], [0, 0, 1, 1], [], []>} : vector<16x144xbf16>, vector<144x128xbf16>, vector<16x128xf32> -> vector<16x128xf32>
    %33 = arith.addf %28, %32 : vector<16x128xf32>
    %34 = vector.extract_strided_slice %27 {offsets = [1, 0], sizes = [16, 144], strides = [1, 1]} : vector<18x144xbf16> to vector<16x144xbf16>
    %c1 = arith.constant 1 : index
    %c0_17 = arith.constant 0 : index
    %c0_18 = arith.constant 0 : index
    %c0_19 = arith.constant 0 : index
    %35 = vector.load %arg3[%c1, %c0_17, %c0_18, %c0_19] : memref<3x1x144x128xbf16, #tpu.memory_space<vmem>>, vector<1x1x144x128xbf16>
    %36 = vector.shape_cast %35 : vector<1x1x144x128xbf16> to vector<144x128xbf16>
    %cst_20 = arith.constant dense<0.000000e+00> : vector<16x128xf32>
    %37 = tpu.matmul %34, %36, %cst_20 {dimension_numbers = #tpu.dot_dimension_numbers<[1], [0], [0], [1], [0, 0, 1, 1], [], []>} : vector<16x144xbf16>, vector<144x128xbf16>, vector<16x128xf32> -> vector<16x128xf32>
    %38 = arith.addf %33, %37 : vector<16x128xf32>
    %39 = vector.extract_strided_slice %27 {offsets = [2, 0], sizes = [16, 144], strides = [1, 1]} : vector<18x144xbf16> to vector<16x144xbf16>
    %c2 = arith.constant 2 : index
    %c0_21 = arith.constant 0 : index
    %c0_22 = arith.constant 0 : index
    %c0_23 = arith.constant 0 : index
    %40 = vector.load %arg3[%c2, %c0_21, %c0_22, %c0_23] : memref<3x1x144x128xbf16, #tpu.memory_space<vmem>>, vector<1x1x144x128xbf16>
    %41 = vector.shape_cast %40 : vector<1x1x144x128xbf16> to vector<144x128xbf16>
    %cst_24 = arith.constant dense<0.000000e+00> : vector<16x128xf32>
    %42 = tpu.matmul %39, %41, %cst_24 {dimension_numbers = #tpu.dot_dimension_numbers<[1], [0], [0], [1], [0, 0, 1, 1], [], []>} : vector<16x144xbf16>, vector<144x128xbf16>, vector<16x128xf32> -> vector<16x128xf32>
    %43 = arith.addf %38, %42 : vector<16x128xf32>
    %c0_25 = arith.constant 0 : index
    %c0_26 = arith.constant 0 : index
    %44 = vector.load %arg4[%c0_25, %c0_26] : memref<1x128xf32, #tpu.memory_space<vmem>>, vector<1x128xf32>
    %45 = vector.broadcast %44 : vector<1x128xf32> to vector<16x128xf32>
    %46 = arith.addf %43, %45 : vector<16x128xf32>
    %47 = arith.truncf %46 : vector<16x128xf32> to vector<16x128xbf16>
    %c0_27 = arith.constant 0 : index
    %c0_28 = arith.constant 0 : index
    %c0_29 = arith.constant 0 : index
    %48 = vector.load %arg7[%c0_27, %c0_28, %c0_29] : memref<1x16x128xbf16, #tpu.memory_space<vmem>>, vector<1x16x128xbf16>
    %49 = vector.shape_cast %48 : vector<1x16x128xbf16> to vector<16x128xbf16>
    %50 = vector.shape_cast %47 : vector<16x128xbf16> to vector<1x16x128xbf16>
    tpu.vector_store %arg7[%c0_27, %c0_28, %c0_29], %50 {strides = array<i32>} : memref<1x16x128xbf16, #tpu.memory_space<vmem>>, vector<1x16x128xbf16>,
    %51 = arith.extf %47 : vector<16x128xbf16> to vector<16x128xf32>
    %52 = tpu.iota {dimensions = array<i32: 0>} : vector<128x8xi32>
    %53 = tpu.iota {dimensions = array<i32: 1>} : vector<128x8xi32>
    %c8_i32 = arith.constant 8 : i32
    %c0_i32_30 = arith.constant 0 : i32
    %54 = arith.cmpi eq, %c8_i32, %c0_i32_30 : i32
    %c1_i32 = arith.constant 1 : i32
    %55 = arith.select %54, %c1_i32, %c8_i32 : i32
    %56 = vector.broadcast %55 : i32 to vector<128x8xi32>
    %57 = arith.remsi %52, %56 : vector<128x8xi32>
    %c0_i32_31 = arith.constant 0 : i32
    %58 = vector.broadcast %c0_i32_31 : i32 to vector<128x8xi32>
    %59 = arith.cmpi ne, %57, %58 : vector<128x8xi32>
    %c0_i32_32 = arith.constant 0 : i32
    %60 = vector.broadcast %c0_i32_32 : i32 to vector<128x8xi32>
    %61 = arith.cmpi slt, %57, %60 : vector<128x8xi32>
    %c0_i32_33 = arith.constant 0 : i32
    %62 = arith.cmpi slt, %55, %c0_i32_33 : i32
    %63 = vector.broadcast %62 : i1 to vector<128x8xi1>
    %64 = vector.broadcast %63 : vector<128x8xi1> to vector<128x8xi1>
    %65 = arith.xori %61, %64 : vector<128x8xi1>
    %66 = arith.andi %65, %59 : vector<128x8xi1>
    %67 = vector.broadcast %55 : i32 to vector<128x8xi32>
    %68 = arith.addi %57, %67 : vector<128x8xi32>
    %69 = arith.select %66, %68, %57 : vector<128x8xi1>, vector<128x8xi32>
    %70 = arith.cmpi eq, %69, %53 : vector<128x8xi32>
    %71 = arith.extui %70 : vector<128x8xi1> to vector<128x8xi32>
    %72 = arith.sitofp %71 : vector<128x8xi32> to vector<128x8xf32>
    %cst_34 = arith.constant dense<0.000000e+00> : vector<16x8xf32>
    %73 = tpu.matmul %51, %72, %cst_34 {dimension_numbers = #tpu.dot_dimension_numbers<[1], [0], [0], [1], [0, 0, 1, 1], [], []>} : vector<16x128xf32>, vector<128x8xf32>, vector<16x8xf32> -> vector<16x8xf32>
    %cst_35 = arith.constant dense<0.000000e+00> : vector<8xf32>
    %74 = vector.multi_reduction <add>, %73, %cst_35 [0] : vector<16x8xf32> to vector<8xf32>
    %75 = vector.shape_cast %74 : vector<8xf32> to vector<1x8xf32>
    %76 = arith.mulf %51, %51 : vector<16x128xf32>
    %cst_36 = arith.constant dense<0.000000e+00> : vector<16x8xf32>
    %77 = tpu.matmul %76, %72, %cst_36 {dimension_numbers = #tpu.dot_dimension_numbers<[1], [0], [0], [1], [0, 0, 1, 1], [], []>} : vector<16x128xf32>, vector<128x8xf32>, vector<16x8xf32> -> vector<16x8xf32>
    %cst_37 = arith.constant dense<0.000000e+00> : vector<8xf32>
    %78 = vector.multi_reduction <add>, %77, %cst_37 [0] : vector<16x8xf32> to vector<8xf32>
    %79 = vector.shape_cast %78 : vector<8xf32> to vector<1x8xf32>
    %80 = tpu.concatenate %75, %79 in 0 : vector<1x8xf32>, vector<1x8xf32> -> vector<2x8xf32>
    %c0_38 = arith.constant 0 : index
    %c0_39 = arith.constant 0 : index
    %c0_40 = arith.constant 0 : index
    %81 = vector.load %arg8[%c0_38, %c0_39, %c0_40] : memref<1x2x8xf32, #tpu.memory_space<vmem>>, vector<1x2x8xf32>
    %82 = vector.shape_cast %81 : vector<1x2x8xf32> to vector<2x8xf32>
    %83 = vector.shape_cast %80 : vector<2x8xf32> to vector<1x2x8xf32>
    tpu.vector_store %arg8[%c0_38, %c0_39, %c0_40], %83 {strides = array<i32>} : memref<1x2x8xf32, #tpu.memory_space<vmem>>, vector<1x2x8xf32>,
    return
  }
  func.func @transform_0(%arg0: i32, %arg1: i32) -> (i32, i32, i32, i32, i32) {
    %c1_i32 = arith.constant 1 : i32
    %0 = arith.muli %arg0, %c1_i32 : i32
    %1 = arith.addi %0, %arg1 : i32
    %c0_i32 = arith.constant 0 : i32
    %c0_i32_0 = arith.constant 0 : i32
    %c0_i32_1 = arith.constant 0 : i32
    %c0_i32_2 = arith.constant 0 : i32
    %c0_i32_3 = arith.constant 0 : i32
    return %1, %c0_i32, %c0_i32_0, %c0_i32_1, %c0_i32_2 : i32, i32, i32, i32, i32
  }
  func.func @transform_1(%arg0: i32, %arg1: i32) -> (i32, i32, i32, i32) {
    %c0_i32 = arith.constant 0 : i32
    %c0_i32_0 = arith.constant 0 : i32
    %c0_i32_1 = arith.constant 0 : i32
    %c0_i32_2 = arith.constant 0 : i32
    %c0_i32_3 = arith.constant 0 : i32
    return %c0_i32, %c0_i32_0, %c0_i32_1, %c0_i32_2 : i32, i32, i32, i32
  }
  func.func @transform_2(%arg0: i32, %arg1: i32) -> (i32, i32) {
    %c0_i32 = arith.constant 0 : i32
    %c0_i32_0 = arith.constant 0 : i32
    %c0_i32_1 = arith.constant 0 : i32
    return %c0_i32, %c0_i32_0 : i32, i32
  }
  func.func @transform_3(%arg0: i32, %arg1: i32) -> (i32, i32) {
    %c0_i32 = arith.constant 0 : i32
    %c0_i32_0 = arith.constant 0 : i32
    %c0_i32_1 = arith.constant 0 : i32
    return %c0_i32, %c0_i32_0 : i32, i32
  }
  func.func @transform_4(%arg0: i32, %arg1: i32) -> (i32, i32) {
    %c0_i32 = arith.constant 0 : i32
    %c0_i32_0 = arith.constant 0 : i32
    %c0_i32_1 = arith.constant 0 : i32
    return %c0_i32, %c0_i32_0 : i32, i32
  }
  func.func @transform_5(%arg0: i32, %arg1: i32) -> (i32, i32, i32) {
    %c1_i32 = arith.constant 1 : i32
    %0 = arith.muli %arg0, %c1_i32 : i32
    %1 = arith.addi %0, %arg1 : i32
    %c0_i32 = arith.constant 0 : i32
    %c0_i32_0 = arith.constant 0 : i32
    %c0_i32_1 = arith.constant 0 : i32
    return %1, %c0_i32, %c0_i32_0 : i32, i32, i32
  }
  func.func @transform_6(%arg0: i32, %arg1: i32) -> (i32, i32, i32) {
    %c1_i32 = arith.constant 1 : i32
    %0 = arith.muli %arg0, %c1_i32 : i32
    %1 = arith.addi %0, %arg1 : i32
    %c0_i32 = arith.constant 0 : i32
    %c0_i32_0 = arith.constant 0 : i32
    %c0_i32_1 = arith.constant 0 : i32
    return %1, %c0_i32, %c0_i32_0 : i32, i32, i32
  }
}

module attributes {stable_mosaic.version = 11 : i64} {
  func.func @_conv_kernel(%arg0: i32, %arg1: i32, %arg2: memref<1x2x2x9x72xbf16, #tpu.memory_space<vmem>>, %arg3: memref<3x2x72x64xbf16, #tpu.memory_space<vmem>>, %arg4: memref<1x64xf32, #tpu.memory_space<vmem>>, %arg5: memref<1x8x64xbf16, #tpu.memory_space<vmem>>) attributes {dimension_semantics = [#tpu.dimension_semantics<parallel>, #tpu.dimension_semantics<parallel>], iteration_bounds = array<i64: 2, 1>, scalar_prefetch = 0 : i64, scratch_operands = 0 : i64, tpu.core_type = #tpu.core_type<tc>, window_params = [{transform_indices = @transform_0, window_bounds = array<i64: 1, 2, 2, 9, 72>}, {pipeline_mode = #tpu.pipeline_mode<synchronous>, transform_indices = @transform_1, window_bounds = array<i64: 3, 2, 72, 64>}, {pipeline_mode = #tpu.pipeline_mode<synchronous>, transform_indices = @transform_2, window_bounds = array<i64: 1, 64>}, {transform_indices = @transform_3, window_bounds = array<i64: 1, 8, 64>}]} {
    %cst = arith.constant 0.000000e+00 : f32
    %0 = vector.broadcast %cst : f32 to vector<8x64xf32>
    %c0 = arith.constant 0 : index
    %c0_0 = arith.constant 0 : index
    %c0_1 = arith.constant 0 : index
    %c0_2 = arith.constant 0 : index
    %c0_3 = arith.constant 0 : index
    %1 = vector.load %arg2[%c0, %c0_0, %c0_1, %c0_2, %c0_3] : memref<1x2x2x9x72xbf16, #tpu.memory_space<vmem>>, vector<1x1x1x8x72xbf16>
    %2 = vector.shape_cast %1 : vector<1x1x1x8x72xbf16> to vector<8x72xbf16>
    %c0_4 = arith.constant 0 : index
    %c0_5 = arith.constant 0 : index
    %c0_6 = arith.constant 0 : index
    %c0_7 = arith.constant 0 : index
    %3 = vector.load %arg3[%c0_4, %c0_5, %c0_6, %c0_7] : memref<3x2x72x64xbf16, #tpu.memory_space<vmem>>, vector<1x1x72x64xbf16>
    %4 = vector.shape_cast %3 : vector<1x1x72x64xbf16> to vector<72x64xbf16>
    %cst_8 = arith.constant dense<0.000000e+00> : vector<8x64xf32>
    %5 = tpu.matmul %2, %4, %cst_8 {dimension_numbers = #tpu.dot_dimension_numbers<[1], [0], [0], [1], [0, 0, 1, 1], [], []>} : vector<8x72xbf16>, vector<72x64xbf16>, vector<8x64xf32> -> vector<8x64xf32>
    %6 = arith.addf %0, %5 : vector<8x64xf32>
    %c0_9 = arith.constant 0 : index
    %c0_10 = arith.constant 0 : index
    %c1 = arith.constant 1 : index
    %c0_11 = arith.constant 0 : index
    %c0_12 = arith.constant 0 : index
    %7 = vector.load %arg2[%c0_9, %c0_10, %c1, %c0_11, %c0_12] : memref<1x2x2x9x72xbf16, #tpu.memory_space<vmem>>, vector<1x1x1x8x72xbf16>
    %8 = vector.shape_cast %7 : vector<1x1x1x8x72xbf16> to vector<8x72xbf16>
    %c0_13 = arith.constant 0 : index
    %c1_14 = arith.constant 1 : index
    %c0_15 = arith.constant 0 : index
    %c0_16 = arith.constant 0 : index
    %9 = vector.load %arg3[%c0_13, %c1_14, %c0_15, %c0_16] : memref<3x2x72x64xbf16, #tpu.memory_space<vmem>>, vector<1x1x72x64xbf16>
    %10 = vector.shape_cast %9 : vector<1x1x72x64xbf16> to vector<72x64xbf16>
    %cst_17 = arith.constant dense<0.000000e+00> : vector<8x64xf32>
    %11 = tpu.matmul %8, %10, %cst_17 {dimension_numbers = #tpu.dot_dimension_numbers<[1], [0], [0], [1], [0, 0, 1, 1], [], []>} : vector<8x72xbf16>, vector<72x64xbf16>, vector<8x64xf32> -> vector<8x64xf32>
    %12 = arith.addf %6, %11 : vector<8x64xf32>
    %c0_18 = arith.constant 0 : index
    %c1_19 = arith.constant 1 : index
    %c0_20 = arith.constant 0 : index
    %c0_21 = arith.constant 0 : index
    %c0_22 = arith.constant 0 : index
    %13 = vector.load %arg2[%c0_18, %c1_19, %c0_20, %c0_21, %c0_22] : memref<1x2x2x9x72xbf16, #tpu.memory_space<vmem>>, vector<1x1x1x8x72xbf16>
    %14 = vector.shape_cast %13 : vector<1x1x1x8x72xbf16> to vector<8x72xbf16>
    %c1_23 = arith.constant 1 : index
    %c0_24 = arith.constant 0 : index
    %c0_25 = arith.constant 0 : index
    %c0_26 = arith.constant 0 : index
    %15 = vector.load %arg3[%c1_23, %c0_24, %c0_25, %c0_26] : memref<3x2x72x64xbf16, #tpu.memory_space<vmem>>, vector<1x1x72x64xbf16>
    %16 = vector.shape_cast %15 : vector<1x1x72x64xbf16> to vector<72x64xbf16>
    %cst_27 = arith.constant dense<0.000000e+00> : vector<8x64xf32>
    %17 = tpu.matmul %14, %16, %cst_27 {dimension_numbers = #tpu.dot_dimension_numbers<[1], [0], [0], [1], [0, 0, 1, 1], [], []>} : vector<8x72xbf16>, vector<72x64xbf16>, vector<8x64xf32> -> vector<8x64xf32>
    %18 = arith.addf %12, %17 : vector<8x64xf32>
    %c0_28 = arith.constant 0 : index
    %c1_29 = arith.constant 1 : index
    %c1_30 = arith.constant 1 : index
    %c0_31 = arith.constant 0 : index
    %c0_32 = arith.constant 0 : index
    %19 = vector.load %arg2[%c0_28, %c1_29, %c1_30, %c0_31, %c0_32] : memref<1x2x2x9x72xbf16, #tpu.memory_space<vmem>>, vector<1x1x1x8x72xbf16>
    %20 = vector.shape_cast %19 : vector<1x1x1x8x72xbf16> to vector<8x72xbf16>
    %c1_33 = arith.constant 1 : index
    %c1_34 = arith.constant 1 : index
    %c0_35 = arith.constant 0 : index
    %c0_36 = arith.constant 0 : index
    %21 = vector.load %arg3[%c1_33, %c1_34, %c0_35, %c0_36] : memref<3x2x72x64xbf16, #tpu.memory_space<vmem>>, vector<1x1x72x64xbf16>
    %22 = vector.shape_cast %21 : vector<1x1x72x64xbf16> to vector<72x64xbf16>
    %cst_37 = arith.constant dense<0.000000e+00> : vector<8x64xf32>
    %23 = tpu.matmul %20, %22, %cst_37 {dimension_numbers = #tpu.dot_dimension_numbers<[1], [0], [0], [1], [0, 0, 1, 1], [], []>} : vector<8x72xbf16>, vector<72x64xbf16>, vector<8x64xf32> -> vector<8x64xf32>
    %24 = arith.addf %18, %23 : vector<8x64xf32>
    %c0_38 = arith.constant 0 : index
    %c0_39 = arith.constant 0 : index
    %c0_40 = arith.constant 0 : index
    %c1_41 = arith.constant 1 : index
    %c0_42 = arith.constant 0 : index
    %25 = vector.load %arg2[%c0_38, %c0_39, %c0_40, %c1_41, %c0_42] : memref<1x2x2x9x72xbf16, #tpu.memory_space<vmem>>, vector<1x1x1x8x72xbf16>
    %26 = vector.shape_cast %25 : vector<1x1x1x8x72xbf16> to vector<8x72xbf16>
    %c2 = arith.constant 2 : index
    %c0_43 = arith.constant 0 : index
    %c0_44 = arith.constant 0 : index
    %c0_45 = arith.constant 0 : index
    %27 = vector.load %arg3[%c2, %c0_43, %c0_44, %c0_45] : memref<3x2x72x64xbf16, #tpu.memory_space<vmem>>, vector<1x1x72x64xbf16>
    %28 = vector.shape_cast %27 : vector<1x1x72x64xbf16> to vector<72x64xbf16>
    %cst_46 = arith.constant dense<0.000000e+00> : vector<8x64xf32>
    %29 = tpu.matmul %26, %28, %cst_46 {dimension_numbers = #tpu.dot_dimension_numbers<[1], [0], [0], [1], [0, 0, 1, 1], [], []>} : vector<8x72xbf16>, vector<72x64xbf16>, vector<8x64xf32> -> vector<8x64xf32>
    %30 = arith.addf %24, %29 : vector<8x64xf32>
    %c0_47 = arith.constant 0 : index
    %c0_48 = arith.constant 0 : index
    %c1_49 = arith.constant 1 : index
    %c1_50 = arith.constant 1 : index
    %c0_51 = arith.constant 0 : index
    %31 = vector.load %arg2[%c0_47, %c0_48, %c1_49, %c1_50, %c0_51] : memref<1x2x2x9x72xbf16, #tpu.memory_space<vmem>>, vector<1x1x1x8x72xbf16>
    %32 = vector.shape_cast %31 : vector<1x1x1x8x72xbf16> to vector<8x72xbf16>
    %c2_52 = arith.constant 2 : index
    %c1_53 = arith.constant 1 : index
    %c0_54 = arith.constant 0 : index
    %c0_55 = arith.constant 0 : index
    %33 = vector.load %arg3[%c2_52, %c1_53, %c0_54, %c0_55] : memref<3x2x72x64xbf16, #tpu.memory_space<vmem>>, vector<1x1x72x64xbf16>
    %34 = vector.shape_cast %33 : vector<1x1x72x64xbf16> to vector<72x64xbf16>
    %cst_56 = arith.constant dense<0.000000e+00> : vector<8x64xf32>
    %35 = tpu.matmul %32, %34, %cst_56 {dimension_numbers = #tpu.dot_dimension_numbers<[1], [0], [0], [1], [0, 0, 1, 1], [], []>} : vector<8x72xbf16>, vector<72x64xbf16>, vector<8x64xf32> -> vector<8x64xf32>
    %36 = arith.addf %30, %35 : vector<8x64xf32>
    %c0_57 = arith.constant 0 : index
    %c0_58 = arith.constant 0 : index
    %37 = vector.load %arg4[%c0_57, %c0_58] : memref<1x64xf32, #tpu.memory_space<vmem>>, vector<1x64xf32>
    %38 = vector.broadcast %37 : vector<1x64xf32> to vector<8x64xf32>
    %39 = arith.addf %36, %38 : vector<8x64xf32>
    %40 = arith.truncf %39 : vector<8x64xf32> to vector<8x64xbf16>
    %c0_59 = arith.constant 0 : index
    %c0_60 = arith.constant 0 : index
    %c0_61 = arith.constant 0 : index
    %41 = vector.load %arg5[%c0_59, %c0_60, %c0_61] : memref<1x8x64xbf16, #tpu.memory_space<vmem>>, vector<1x8x64xbf16>
    %42 = vector.shape_cast %41 : vector<1x8x64xbf16> to vector<8x64xbf16>
    %43 = vector.shape_cast %40 : vector<8x64xbf16> to vector<1x8x64xbf16>
    tpu.vector_store %arg5[%c0_59, %c0_60, %c0_61], %43 {strides = array<i32>} : memref<1x8x64xbf16, #tpu.memory_space<vmem>>, vector<1x8x64xbf16>,
    return
  }
  func.func @transform_0(%arg0: i32, %arg1: i32) -> (i32, i32, i32, i32, i32) {
    %c1_i32 = arith.constant 1 : i32
    %0 = arith.muli %arg0, %c1_i32 : i32
    %1 = arith.addi %0, %arg1 : i32
    %c0_i32 = arith.constant 0 : i32
    %c0_i32_0 = arith.constant 0 : i32
    %c0_i32_1 = arith.constant 0 : i32
    %c0_i32_2 = arith.constant 0 : i32
    %c0_i32_3 = arith.constant 0 : i32
    return %1, %c0_i32, %c0_i32_0, %c0_i32_1, %c0_i32_2 : i32, i32, i32, i32, i32
  }
  func.func @transform_1(%arg0: i32, %arg1: i32) -> (i32, i32, i32, i32) {
    %c0_i32 = arith.constant 0 : i32
    %c0_i32_0 = arith.constant 0 : i32
    %c0_i32_1 = arith.constant 0 : i32
    %c0_i32_2 = arith.constant 0 : i32
    %c0_i32_3 = arith.constant 0 : i32
    return %c0_i32, %c0_i32_0, %c0_i32_1, %c0_i32_2 : i32, i32, i32, i32
  }
  func.func @transform_2(%arg0: i32, %arg1: i32) -> (i32, i32) {
    %c0_i32 = arith.constant 0 : i32
    %c0_i32_0 = arith.constant 0 : i32
    %c0_i32_1 = arith.constant 0 : i32
    return %c0_i32, %c0_i32_0 : i32, i32
  }
  func.func @transform_3(%arg0: i32, %arg1: i32) -> (i32, i32, i32) {
    %c1_i32 = arith.constant 1 : i32
    %0 = arith.muli %arg0, %c1_i32 : i32
    %1 = arith.addi %0, %arg1 : i32
    %c0_i32 = arith.constant 0 : i32
    %c0_i32_0 = arith.constant 0 : i32
    %c0_i32_1 = arith.constant 0 : i32
    return %1, %c0_i32, %c0_i32_0 : i32, i32, i32
  }
}

module attributes {stable_mosaic.version = 11 : i64} {
  func.func @_conv_kernel(%arg0: i32, %arg1: i32, %arg2: memref<1x1x1x10x80xbf16, #tpu.memory_space<vmem>>, %arg3: memref<3x1x80x64xbf16, #tpu.memory_space<vmem>>, %arg4: memref<1x64xf32, #tpu.memory_space<vmem>>, %arg5: memref<1x8x64xbf16, #tpu.memory_space<vmem>>, %arg6: memref<1x2x8xf32, #tpu.memory_space<vmem>>) attributes {dimension_semantics = [#tpu.dimension_semantics<parallel>, #tpu.dimension_semantics<parallel>], iteration_bounds = array<i64: 2, 1>, scalar_prefetch = 0 : i64, scratch_operands = 0 : i64, tpu.core_type = #tpu.core_type<tc>, window_params = [{transform_indices = @transform_0, window_bounds = array<i64: 1, 1, 1, 10, 80>}, {pipeline_mode = #tpu.pipeline_mode<synchronous>, transform_indices = @transform_1, window_bounds = array<i64: 3, 1, 80, 64>}, {pipeline_mode = #tpu.pipeline_mode<synchronous>, transform_indices = @transform_2, window_bounds = array<i64: 1, 64>}, {transform_indices = @transform_3, window_bounds = array<i64: 1, 8, 64>}, {transform_indices = @transform_4, window_bounds = array<i64: 1, 2, 8>}]} {
    %cst = arith.constant 0.000000e+00 : f32
    %0 = vector.broadcast %cst : f32 to vector<8x64xf32>
    %c0 = arith.constant 0 : index
    %c0_0 = arith.constant 0 : index
    %c0_1 = arith.constant 0 : index
    %c0_2 = arith.constant 0 : index
    %c0_3 = arith.constant 0 : index
    %1 = vector.load %arg2[%c0, %c0_0, %c0_1, %c0_2, %c0_3] : memref<1x1x1x10x80xbf16, #tpu.memory_space<vmem>>, vector<1x1x1x8x80xbf16>
    %2 = vector.shape_cast %1 : vector<1x1x1x8x80xbf16> to vector<8x80xbf16>
    %c0_4 = arith.constant 0 : index
    %c0_5 = arith.constant 0 : index
    %c0_6 = arith.constant 0 : index
    %c0_7 = arith.constant 0 : index
    %3 = vector.load %arg3[%c0_4, %c0_5, %c0_6, %c0_7] : memref<3x1x80x64xbf16, #tpu.memory_space<vmem>>, vector<1x1x80x64xbf16>
    %4 = vector.shape_cast %3 : vector<1x1x80x64xbf16> to vector<80x64xbf16>
    %cst_8 = arith.constant dense<0.000000e+00> : vector<8x64xf32>
    %5 = tpu.matmul %2, %4, %cst_8 {dimension_numbers = #tpu.dot_dimension_numbers<[1], [0], [0], [1], [0, 0, 1, 1], [], []>} : vector<8x80xbf16>, vector<80x64xbf16>, vector<8x64xf32> -> vector<8x64xf32>
    %6 = arith.addf %0, %5 : vector<8x64xf32>
    %c0_9 = arith.constant 0 : index
    %c0_10 = arith.constant 0 : index
    %c0_11 = arith.constant 0 : index
    %c1 = arith.constant 1 : index
    %c0_12 = arith.constant 0 : index
    %7 = vector.load %arg2[%c0_9, %c0_10, %c0_11, %c1, %c0_12] : memref<1x1x1x10x80xbf16, #tpu.memory_space<vmem>>, vector<1x1x1x8x80xbf16>
    %8 = vector.shape_cast %7 : vector<1x1x1x8x80xbf16> to vector<8x80xbf16>
    %c1_13 = arith.constant 1 : index
    %c0_14 = arith.constant 0 : index
    %c0_15 = arith.constant 0 : index
    %c0_16 = arith.constant 0 : index
    %9 = vector.load %arg3[%c1_13, %c0_14, %c0_15, %c0_16] : memref<3x1x80x64xbf16, #tpu.memory_space<vmem>>, vector<1x1x80x64xbf16>
    %10 = vector.shape_cast %9 : vector<1x1x80x64xbf16> to vector<80x64xbf16>
    %cst_17 = arith.constant dense<0.000000e+00> : vector<8x64xf32>
    %11 = tpu.matmul %8, %10, %cst_17 {dimension_numbers = #tpu.dot_dimension_numbers<[1], [0], [0], [1], [0, 0, 1, 1], [], []>} : vector<8x80xbf16>, vector<80x64xbf16>, vector<8x64xf32> -> vector<8x64xf32>
    %12 = arith.addf %6, %11 : vector<8x64xf32>
    %c0_18 = arith.constant 0 : index
    %c0_19 = arith.constant 0 : index
    %c0_20 = arith.constant 0 : index
    %c2 = arith.constant 2 : index
    %c0_21 = arith.constant 0 : index
    %13 = vector.load %arg2[%c0_18, %c0_19, %c0_20, %c2, %c0_21] : memref<1x1x1x10x80xbf16, #tpu.memory_space<vmem>>, vector<1x1x1x8x80xbf16>
    %14 = vector.shape_cast %13 : vector<1x1x1x8x80xbf16> to vector<8x80xbf16>
    %c2_22 = arith.constant 2 : index
    %c0_23 = arith.constant 0 : index
    %c0_24 = arith.constant 0 : index
    %c0_25 = arith.constant 0 : index
    %15 = vector.load %arg3[%c2_22, %c0_23, %c0_24, %c0_25] : memref<3x1x80x64xbf16, #tpu.memory_space<vmem>>, vector<1x1x80x64xbf16>
    %16 = vector.shape_cast %15 : vector<1x1x80x64xbf16> to vector<80x64xbf16>
    %cst_26 = arith.constant dense<0.000000e+00> : vector<8x64xf32>
    %17 = tpu.matmul %14, %16, %cst_26 {dimension_numbers = #tpu.dot_dimension_numbers<[1], [0], [0], [1], [0, 0, 1, 1], [], []>} : vector<8x80xbf16>, vector<80x64xbf16>, vector<8x64xf32> -> vector<8x64xf32>
    %18 = arith.addf %12, %17 : vector<8x64xf32>
    %c0_27 = arith.constant 0 : index
    %c0_28 = arith.constant 0 : index
    %19 = vector.load %arg4[%c0_27, %c0_28] : memref<1x64xf32, #tpu.memory_space<vmem>>, vector<1x64xf32>
    %20 = vector.broadcast %19 : vector<1x64xf32> to vector<8x64xf32>
    %21 = arith.addf %18, %20 : vector<8x64xf32>
    %22 = arith.truncf %21 : vector<8x64xf32> to vector<8x64xbf16>
    %c0_29 = arith.constant 0 : index
    %c0_30 = arith.constant 0 : index
    %c0_31 = arith.constant 0 : index
    %23 = vector.load %arg5[%c0_29, %c0_30, %c0_31] : memref<1x8x64xbf16, #tpu.memory_space<vmem>>, vector<1x8x64xbf16>
    %24 = vector.shape_cast %23 : vector<1x8x64xbf16> to vector<8x64xbf16>
    %25 = vector.shape_cast %22 : vector<8x64xbf16> to vector<1x8x64xbf16>
    tpu.vector_store %arg5[%c0_29, %c0_30, %c0_31], %25 {strides = array<i32>} : memref<1x8x64xbf16, #tpu.memory_space<vmem>>, vector<1x8x64xbf16>,
    %26 = arith.extf %22 : vector<8x64xbf16> to vector<8x64xf32>
    %27 = tpu.iota {dimensions = array<i32: 0>} : vector<64x8xi32>
    %28 = tpu.iota {dimensions = array<i32: 1>} : vector<64x8xi32>
    %c8_i32 = arith.constant 8 : i32
    %c0_i32 = arith.constant 0 : i32
    %29 = arith.cmpi eq, %c8_i32, %c0_i32 : i32
    %c1_i32 = arith.constant 1 : i32
    %30 = arith.select %29, %c1_i32, %c8_i32 : i32
    %31 = vector.broadcast %30 : i32 to vector<64x8xi32>
    %32 = arith.remsi %27, %31 : vector<64x8xi32>
    %c0_i32_32 = arith.constant 0 : i32
    %33 = vector.broadcast %c0_i32_32 : i32 to vector<64x8xi32>
    %34 = arith.cmpi ne, %32, %33 : vector<64x8xi32>
    %c0_i32_33 = arith.constant 0 : i32
    %35 = vector.broadcast %c0_i32_33 : i32 to vector<64x8xi32>
    %36 = arith.cmpi slt, %32, %35 : vector<64x8xi32>
    %c0_i32_34 = arith.constant 0 : i32
    %37 = arith.cmpi slt, %30, %c0_i32_34 : i32
    %38 = vector.broadcast %37 : i1 to vector<64x8xi1>
    %39 = vector.broadcast %38 : vector<64x8xi1> to vector<64x8xi1>
    %40 = arith.xori %36, %39 : vector<64x8xi1>
    %41 = arith.andi %40, %34 : vector<64x8xi1>
    %42 = vector.broadcast %30 : i32 to vector<64x8xi32>
    %43 = arith.addi %32, %42 : vector<64x8xi32>
    %44 = arith.select %41, %43, %32 : vector<64x8xi1>, vector<64x8xi32>
    %45 = arith.cmpi eq, %44, %28 : vector<64x8xi32>
    %46 = arith.extui %45 : vector<64x8xi1> to vector<64x8xi32>
    %47 = arith.sitofp %46 : vector<64x8xi32> to vector<64x8xf32>
    %cst_35 = arith.constant dense<0.000000e+00> : vector<8x8xf32>
    %48 = tpu.matmul %26, %47, %cst_35 {dimension_numbers = #tpu.dot_dimension_numbers<[1], [0], [0], [1], [0, 0, 1, 1], [], []>} : vector<8x64xf32>, vector<64x8xf32>, vector<8x8xf32> -> vector<8x8xf32>
    %cst_36 = arith.constant dense<0.000000e+00> : vector<8xf32>
    %49 = vector.multi_reduction <add>, %48, %cst_36 [0] : vector<8x8xf32> to vector<8xf32>
    %50 = vector.shape_cast %49 : vector<8xf32> to vector<1x8xf32>
    %51 = arith.mulf %26, %26 : vector<8x64xf32>
    %cst_37 = arith.constant dense<0.000000e+00> : vector<8x8xf32>
    %52 = tpu.matmul %51, %47, %cst_37 {dimension_numbers = #tpu.dot_dimension_numbers<[1], [0], [0], [1], [0, 0, 1, 1], [], []>} : vector<8x64xf32>, vector<64x8xf32>, vector<8x8xf32> -> vector<8x8xf32>
    %cst_38 = arith.constant dense<0.000000e+00> : vector<8xf32>
    %53 = vector.multi_reduction <add>, %52, %cst_38 [0] : vector<8x8xf32> to vector<8xf32>
    %54 = vector.shape_cast %53 : vector<8xf32> to vector<1x8xf32>
    %55 = tpu.concatenate %50, %54 in 0 : vector<1x8xf32>, vector<1x8xf32> -> vector<2x8xf32>
    %c0_39 = arith.constant 0 : index
    %c0_40 = arith.constant 0 : index
    %c0_41 = arith.constant 0 : index
    %56 = vector.load %arg6[%c0_39, %c0_40, %c0_41] : memref<1x2x8xf32, #tpu.memory_space<vmem>>, vector<1x2x8xf32>
    %57 = vector.shape_cast %56 : vector<1x2x8xf32> to vector<2x8xf32>
    %58 = vector.shape_cast %55 : vector<2x8xf32> to vector<1x2x8xf32>
    tpu.vector_store %arg6[%c0_39, %c0_40, %c0_41], %58 {strides = array<i32>} : memref<1x2x8xf32, #tpu.memory_space<vmem>>, vector<1x2x8xf32>,
    return
  }
  func.func @transform_0(%arg0: i32, %arg1: i32) -> (i32, i32, i32, i32, i32) {
    %c1_i32 = arith.constant 1 : i32
    %0 = arith.muli %arg0, %c1_i32 : i32
    %1 = arith.addi %0, %arg1 : i32
    %c0_i32 = arith.constant 0 : i32
    %c0_i32_0 = arith.constant 0 : i32
    %c0_i32_1 = arith.constant 0 : i32
    %c0_i32_2 = arith.constant 0 : i32
    %c0_i32_3 = arith.constant 0 : i32
    return %1, %c0_i32, %c0_i32_0, %c0_i32_1, %c0_i32_2 : i32, i32, i32, i32, i32
  }
  func.func @transform_1(%arg0: i32, %arg1: i32) -> (i32, i32, i32, i32) {
    %c0_i32 = arith.constant 0 : i32
    %c0_i32_0 = arith.constant 0 : i32
    %c0_i32_1 = arith.constant 0 : i32
    %c0_i32_2 = arith.constant 0 : i32
    %c0_i32_3 = arith.constant 0 : i32
    return %c0_i32, %c0_i32_0, %c0_i32_1, %c0_i32_2 : i32, i32, i32, i32
  }
  func.func @transform_2(%arg0: i32, %arg1: i32) -> (i32, i32) {
    %c0_i32 = arith.constant 0 : i32
    %c0_i32_0 = arith.constant 0 : i32
    %c0_i32_1 = arith.constant 0 : i32
    return %c0_i32, %c0_i32_0 : i32, i32
  }
  func.func @transform_3(%arg0: i32, %arg1: i32) -> (i32, i32, i32) {
    %c1_i32 = arith.constant 1 : i32
    %0 = arith.muli %arg0, %c1_i32 : i32
    %1 = arith.addi %0, %arg1 : i32
    %c0_i32 = arith.constant 0 : i32
    %c0_i32_0 = arith.constant 0 : i32
    %c0_i32_1 = arith.constant 0 : i32
    return %1, %c0_i32, %c0_i32_0 : i32, i32, i32
  }
  func.func @transform_4(%arg0: i32, %arg1: i32) -> (i32, i32, i32) {
    %c1_i32 = arith.constant 1 : i32
    %0 = arith.muli %arg0, %c1_i32 : i32
    %1 = arith.addi %0, %arg1 : i32
    %c0_i32 = arith.constant 0 : i32
    %c0_i32_0 = arith.constant 0 : i32
    %c0_i32_1 = arith.constant 0 : i32
    return %1, %c0_i32, %c0_i32_0 : i32, i32, i32
  }
}

module attributes {stable_mosaic.version = 11 : i64} {
  func.func @_conv_kernel(%arg0: i32, %arg1: i32, %arg2: memref<1x1x1x10x80xbf16, #tpu.memory_space<vmem>>, %arg3: memref<3x1x80x64xbf16, #tpu.memory_space<vmem>>, %arg4: memref<1x64xf32, #tpu.memory_space<vmem>>, %arg5: memref<1x80xf32, #tpu.memory_space<vmem>>, %arg6: memref<1x80xf32, #tpu.memory_space<vmem>>, %arg7: memref<1x8x64xbf16, #tpu.memory_space<vmem>>, %arg8: memref<1x2x8xf32, #tpu.memory_space<vmem>>) attributes {dimension_semantics = [#tpu.dimension_semantics<parallel>, #tpu.dimension_semantics<parallel>], iteration_bounds = array<i64: 2, 1>, scalar_prefetch = 0 : i64, scratch_operands = 0 : i64, tpu.core_type = #tpu.core_type<tc>, window_params = [{transform_indices = @transform_0, window_bounds = array<i64: 1, 1, 1, 10, 80>}, {pipeline_mode = #tpu.pipeline_mode<synchronous>, transform_indices = @transform_1, window_bounds = array<i64: 3, 1, 80, 64>}, {pipeline_mode = #tpu.pipeline_mode<synchronous>, transform_indices = @transform_2, window_bounds = array<i64: 1, 64>}, {pipeline_mode = #tpu.pipeline_mode<synchronous>, transform_indices = @transform_3, window_bounds = array<i64: 1, 80>}, {pipeline_mode = #tpu.pipeline_mode<synchronous>, transform_indices = @transform_4, window_bounds = array<i64: 1, 80>}, {transform_indices = @transform_5, window_bounds = array<i64: 1, 8, 64>}, {transform_indices = @transform_6, window_bounds = array<i64: 1, 2, 8>}]} {
    %c0 = arith.constant 0 : index
    %c0_0 = arith.constant 0 : index
    %c0_1 = arith.constant 0 : index
    %c0_2 = arith.constant 0 : index
    %c0_3 = arith.constant 0 : index
    %0 = vector.load %arg2[%c0, %c0_0, %c0_1, %c0_2, %c0_3] : memref<1x1x1x10x80xbf16, #tpu.memory_space<vmem>>, vector<1x1x1x10x80xbf16>
    %1 = vector.shape_cast %0 : vector<1x1x1x10x80xbf16> to vector<10x80xbf16>
    %2 = arith.extf %1 : vector<10x80xbf16> to vector<10x80xf32>
    %c0_4 = arith.constant 0 : index
    %c0_5 = arith.constant 0 : index
    %3 = vector.load %arg5[%c0_4, %c0_5] : memref<1x80xf32, #tpu.memory_space<vmem>>, vector<1x80xf32>
    %4 = vector.broadcast %3 : vector<1x80xf32> to vector<10x80xf32>
    %5 = arith.mulf %2, %4 : vector<10x80xf32>
    %c0_6 = arith.constant 0 : index
    %c0_7 = arith.constant 0 : index
    %6 = vector.load %arg6[%c0_6, %c0_7] : memref<1x80xf32, #tpu.memory_space<vmem>>, vector<1x80xf32>
    %7 = vector.broadcast %6 : vector<1x80xf32> to vector<10x80xf32>
    %8 = arith.addf %5, %7 : vector<10x80xf32>
    %cst = arith.constant 0.000000e+00 : f32
    %9 = vector.broadcast %cst : f32 to vector<10x80xf32>
    %10 = arith.maximumf %8, %9 : vector<10x80xf32>
    %11 = tpu.iota {dimensions = array<i32: 0>} : vector<10x1xi32>
    %c0_i32 = arith.constant 0 : i32
    %12 = arith.cmpi eq, %arg1, %c0_i32 : i32
    %c0_i32_8 = arith.constant 0 : i32
    %13 = arith.cmpi eq, %arg1, %c0_i32_8 : i32
    %c0_i32_9 = arith.constant 0 : i32
    %14 = vector.broadcast %c0_i32_9 : i32 to vector<10x1xi32>
    %15 = arith.cmpi eq, %11, %14 : vector<10x1xi32>
    %16 = vector.broadcast %12 : i1 to vector<10x1xi1>
    %17 = arith.andi %15, %16 : vector<10x1xi1>
    %c9_i32 = arith.constant 9 : i32
    %18 = vector.broadcast %c9_i32 : i32 to vector<10x1xi32>
    %19 = arith.cmpi eq, %11, %18 : vector<10x1xi32>
    %20 = vector.broadcast %13 : i1 to vector<10x1xi1>
    %21 = arith.andi %19, %20 : vector<10x1xi1>
    %22 = arith.ori %17, %21 : vector<10x1xi1>
    %cst_10 = arith.constant 0.000000e+00 : f32
    %23 = vector.shape_cast %22 : vector<10x1xi1> to vector<10x1xi1>
    %24 = vector.broadcast %23 : vector<10x1xi1> to vector<10x80xi1>
    %25 = vector.broadcast %cst_10 : f32 to vector<10x80xf32>
    %26 = arith.select %24, %25, %10 : vector<10x80xi1>, vector<10x80xf32>
    %27 = arith.truncf %26 : vector<10x80xf32> to vector<10x80xbf16>
    %cst_11 = arith.constant 0.000000e+00 : f32
    %28 = vector.broadcast %cst_11 : f32 to vector<8x64xf32>
    %29 = vector.extract_strided_slice %27 {offsets = [0, 0], sizes = [8, 80], strides = [1, 1]} : vector<10x80xbf16> to vector<8x80xbf16>
    %c0_12 = arith.constant 0 : index
    %c0_13 = arith.constant 0 : index
    %c0_14 = arith.constant 0 : index
    %c0_15 = arith.constant 0 : index
    %30 = vector.load %arg3[%c0_12, %c0_13, %c0_14, %c0_15] : memref<3x1x80x64xbf16, #tpu.memory_space<vmem>>, vector<1x1x80x64xbf16>
    %31 = vector.shape_cast %30 : vector<1x1x80x64xbf16> to vector<80x64xbf16>
    %cst_16 = arith.constant dense<0.000000e+00> : vector<8x64xf32>
    %32 = tpu.matmul %29, %31, %cst_16 {dimension_numbers = #tpu.dot_dimension_numbers<[1], [0], [0], [1], [0, 0, 1, 1], [], []>} : vector<8x80xbf16>, vector<80x64xbf16>, vector<8x64xf32> -> vector<8x64xf32>
    %33 = arith.addf %28, %32 : vector<8x64xf32>
    %34 = vector.extract_strided_slice %27 {offsets = [1, 0], sizes = [8, 80], strides = [1, 1]} : vector<10x80xbf16> to vector<8x80xbf16>
    %c1 = arith.constant 1 : index
    %c0_17 = arith.constant 0 : index
    %c0_18 = arith.constant 0 : index
    %c0_19 = arith.constant 0 : index
    %35 = vector.load %arg3[%c1, %c0_17, %c0_18, %c0_19] : memref<3x1x80x64xbf16, #tpu.memory_space<vmem>>, vector<1x1x80x64xbf16>
    %36 = vector.shape_cast %35 : vector<1x1x80x64xbf16> to vector<80x64xbf16>
    %cst_20 = arith.constant dense<0.000000e+00> : vector<8x64xf32>
    %37 = tpu.matmul %34, %36, %cst_20 {dimension_numbers = #tpu.dot_dimension_numbers<[1], [0], [0], [1], [0, 0, 1, 1], [], []>} : vector<8x80xbf16>, vector<80x64xbf16>, vector<8x64xf32> -> vector<8x64xf32>
    %38 = arith.addf %33, %37 : vector<8x64xf32>
    %39 = vector.extract_strided_slice %27 {offsets = [2, 0], sizes = [8, 80], strides = [1, 1]} : vector<10x80xbf16> to vector<8x80xbf16>
    %c2 = arith.constant 2 : index
    %c0_21 = arith.constant 0 : index
    %c0_22 = arith.constant 0 : index
    %c0_23 = arith.constant 0 : index
    %40 = vector.load %arg3[%c2, %c0_21, %c0_22, %c0_23] : memref<3x1x80x64xbf16, #tpu.memory_space<vmem>>, vector<1x1x80x64xbf16>
    %41 = vector.shape_cast %40 : vector<1x1x80x64xbf16> to vector<80x64xbf16>
    %cst_24 = arith.constant dense<0.000000e+00> : vector<8x64xf32>
    %42 = tpu.matmul %39, %41, %cst_24 {dimension_numbers = #tpu.dot_dimension_numbers<[1], [0], [0], [1], [0, 0, 1, 1], [], []>} : vector<8x80xbf16>, vector<80x64xbf16>, vector<8x64xf32> -> vector<8x64xf32>
    %43 = arith.addf %38, %42 : vector<8x64xf32>
    %c0_25 = arith.constant 0 : index
    %c0_26 = arith.constant 0 : index
    %44 = vector.load %arg4[%c0_25, %c0_26] : memref<1x64xf32, #tpu.memory_space<vmem>>, vector<1x64xf32>
    %45 = vector.broadcast %44 : vector<1x64xf32> to vector<8x64xf32>
    %46 = arith.addf %43, %45 : vector<8x64xf32>
    %47 = arith.truncf %46 : vector<8x64xf32> to vector<8x64xbf16>
    %c0_27 = arith.constant 0 : index
    %c0_28 = arith.constant 0 : index
    %c0_29 = arith.constant 0 : index
    %48 = vector.load %arg7[%c0_27, %c0_28, %c0_29] : memref<1x8x64xbf16, #tpu.memory_space<vmem>>, vector<1x8x64xbf16>
    %49 = vector.shape_cast %48 : vector<1x8x64xbf16> to vector<8x64xbf16>
    %50 = vector.shape_cast %47 : vector<8x64xbf16> to vector<1x8x64xbf16>
    tpu.vector_store %arg7[%c0_27, %c0_28, %c0_29], %50 {strides = array<i32>} : memref<1x8x64xbf16, #tpu.memory_space<vmem>>, vector<1x8x64xbf16>,
    %51 = arith.extf %47 : vector<8x64xbf16> to vector<8x64xf32>
    %52 = tpu.iota {dimensions = array<i32: 0>} : vector<64x8xi32>
    %53 = tpu.iota {dimensions = array<i32: 1>} : vector<64x8xi32>
    %c8_i32 = arith.constant 8 : i32
    %c0_i32_30 = arith.constant 0 : i32
    %54 = arith.cmpi eq, %c8_i32, %c0_i32_30 : i32
    %c1_i32 = arith.constant 1 : i32
    %55 = arith.select %54, %c1_i32, %c8_i32 : i32
    %56 = vector.broadcast %55 : i32 to vector<64x8xi32>
    %57 = arith.remsi %52, %56 : vector<64x8xi32>
    %c0_i32_31 = arith.constant 0 : i32
    %58 = vector.broadcast %c0_i32_31 : i32 to vector<64x8xi32>
    %59 = arith.cmpi ne, %57, %58 : vector<64x8xi32>
    %c0_i32_32 = arith.constant 0 : i32
    %60 = vector.broadcast %c0_i32_32 : i32 to vector<64x8xi32>
    %61 = arith.cmpi slt, %57, %60 : vector<64x8xi32>
    %c0_i32_33 = arith.constant 0 : i32
    %62 = arith.cmpi slt, %55, %c0_i32_33 : i32
    %63 = vector.broadcast %62 : i1 to vector<64x8xi1>
    %64 = vector.broadcast %63 : vector<64x8xi1> to vector<64x8xi1>
    %65 = arith.xori %61, %64 : vector<64x8xi1>
    %66 = arith.andi %65, %59 : vector<64x8xi1>
    %67 = vector.broadcast %55 : i32 to vector<64x8xi32>
    %68 = arith.addi %57, %67 : vector<64x8xi32>
    %69 = arith.select %66, %68, %57 : vector<64x8xi1>, vector<64x8xi32>
    %70 = arith.cmpi eq, %69, %53 : vector<64x8xi32>
    %71 = arith.extui %70 : vector<64x8xi1> to vector<64x8xi32>
    %72 = arith.sitofp %71 : vector<64x8xi32> to vector<64x8xf32>
    %cst_34 = arith.constant dense<0.000000e+00> : vector<8x8xf32>
    %73 = tpu.matmul %51, %72, %cst_34 {dimension_numbers = #tpu.dot_dimension_numbers<[1], [0], [0], [1], [0, 0, 1, 1], [], []>} : vector<8x64xf32>, vector<64x8xf32>, vector<8x8xf32> -> vector<8x8xf32>
    %cst_35 = arith.constant dense<0.000000e+00> : vector<8xf32>
    %74 = vector.multi_reduction <add>, %73, %cst_35 [0] : vector<8x8xf32> to vector<8xf32>
    %75 = vector.shape_cast %74 : vector<8xf32> to vector<1x8xf32>
    %76 = arith.mulf %51, %51 : vector<8x64xf32>
    %cst_36 = arith.constant dense<0.000000e+00> : vector<8x8xf32>
    %77 = tpu.matmul %76, %72, %cst_36 {dimension_numbers = #tpu.dot_dimension_numbers<[1], [0], [0], [1], [0, 0, 1, 1], [], []>} : vector<8x64xf32>, vector<64x8xf32>, vector<8x8xf32> -> vector<8x8xf32>
    %cst_37 = arith.constant dense<0.000000e+00> : vector<8xf32>
    %78 = vector.multi_reduction <add>, %77, %cst_37 [0] : vector<8x8xf32> to vector<8xf32>
    %79 = vector.shape_cast %78 : vector<8xf32> to vector<1x8xf32>
    %80 = tpu.concatenate %75, %79 in 0 : vector<1x8xf32>, vector<1x8xf32> -> vector<2x8xf32>
    %c0_38 = arith.constant 0 : index
    %c0_39 = arith.constant 0 : index
    %c0_40 = arith.constant 0 : index
    %81 = vector.load %arg8[%c0_38, %c0_39, %c0_40] : memref<1x2x8xf32, #tpu.memory_space<vmem>>, vector<1x2x8xf32>
    %82 = vector.shape_cast %81 : vector<1x2x8xf32> to vector<2x8xf32>
    %83 = vector.shape_cast %80 : vector<2x8xf32> to vector<1x2x8xf32>
    tpu.vector_store %arg8[%c0_38, %c0_39, %c0_40], %83 {strides = array<i32>} : memref<1x2x8xf32, #tpu.memory_space<vmem>>, vector<1x2x8xf32>,
    return
  }
  func.func @transform_0(%arg0: i32, %arg1: i32) -> (i32, i32, i32, i32, i32) {
    %c1_i32 = arith.constant 1 : i32
    %0 = arith.muli %arg0, %c1_i32 : i32
    %1 = arith.addi %0, %arg1 : i32
    %c0_i32 = arith.constant 0 : i32
    %c0_i32_0 = arith.constant 0 : i32
    %c0_i32_1 = arith.constant 0 : i32
    %c0_i32_2 = arith.constant 0 : i32
    %c0_i32_3 = arith.constant 0 : i32
    return %1, %c0_i32, %c0_i32_0, %c0_i32_1, %c0_i32_2 : i32, i32, i32, i32, i32
  }
  func.func @transform_1(%arg0: i32, %arg1: i32) -> (i32, i32, i32, i32) {
    %c0_i32 = arith.constant 0 : i32
    %c0_i32_0 = arith.constant 0 : i32
    %c0_i32_1 = arith.constant 0 : i32
    %c0_i32_2 = arith.constant 0 : i32
    %c0_i32_3 = arith.constant 0 : i32
    return %c0_i32, %c0_i32_0, %c0_i32_1, %c0_i32_2 : i32, i32, i32, i32
  }
  func.func @transform_2(%arg0: i32, %arg1: i32) -> (i32, i32) {
    %c0_i32 = arith.constant 0 : i32
    %c0_i32_0 = arith.constant 0 : i32
    %c0_i32_1 = arith.constant 0 : i32
    return %c0_i32, %c0_i32_0 : i32, i32
  }
  func.func @transform_3(%arg0: i32, %arg1: i32) -> (i32, i32) {
    %c0_i32 = arith.constant 0 : i32
    %c0_i32_0 = arith.constant 0 : i32
    %c0_i32_1 = arith.constant 0 : i32
    return %c0_i32, %c0_i32_0 : i32, i32
  }
  func.func @transform_4(%arg0: i32, %arg1: i32) -> (i32, i32) {
    %c0_i32 = arith.constant 0 : i32
    %c0_i32_0 = arith.constant 0 : i32
    %c0_i32_1 = arith.constant 0 : i32
    return %c0_i32, %c0_i32_0 : i32, i32
  }
  func.func @transform_5(%arg0: i32, %arg1: i32) -> (i32, i32, i32) {
    %c1_i32 = arith.constant 1 : i32
    %0 = arith.muli %arg0, %c1_i32 : i32
    %1 = arith.addi %0, %arg1 : i32
    %c0_i32 = arith.constant 0 : i32
    %c0_i32_0 = arith.constant 0 : i32
    %c0_i32_1 = arith.constant 0 : i32
    return %1, %c0_i32, %c0_i32_0 : i32, i32, i32
  }
  func.func @transform_6(%arg0: i32, %arg1: i32) -> (i32, i32, i32) {
    %c1_i32 = arith.constant 1 : i32
    %0 = arith.muli %arg0, %c1_i32 : i32
    %1 = arith.addi %0, %arg1 : i32
    %c0_i32 = arith.constant 0 : i32
    %c0_i32_0 = arith.constant 0 : i32
    %c0_i32_1 = arith.constant 0 : i32
    return %1, %c0_i32, %c0_i32_0 : i32, i32, i32
  }
}

module attributes {stable_mosaic.version = 11 : i64} {
  func.func @_conv_kernel(%arg0: i32, %arg1: i32, %arg2: memref<1x1x1x10x80xbf16, #tpu.memory_space<vmem>>, %arg3: memref<3x1x80x64xbf16, #tpu.memory_space<vmem>>, %arg4: memref<1x64xf32, #tpu.memory_space<vmem>>, %arg5: memref<1x80xf32, #tpu.memory_space<vmem>>, %arg6: memref<1x80xf32, #tpu.memory_space<vmem>>, %arg7: memref<1x8x64xbf16, #tpu.memory_space<vmem>>, %arg8: memref<1x8x64xbf16, #tpu.memory_space<vmem>>) attributes {dimension_semantics = [#tpu.dimension_semantics<parallel>, #tpu.dimension_semantics<parallel>], iteration_bounds = array<i64: 2, 1>, scalar_prefetch = 0 : i64, scratch_operands = 0 : i64, tpu.core_type = #tpu.core_type<tc>, window_params = [{transform_indices = @transform_0, window_bounds = array<i64: 1, 1, 1, 10, 80>}, {pipeline_mode = #tpu.pipeline_mode<synchronous>, transform_indices = @transform_1, window_bounds = array<i64: 3, 1, 80, 64>}, {pipeline_mode = #tpu.pipeline_mode<synchronous>, transform_indices = @transform_2, window_bounds = array<i64: 1, 64>}, {pipeline_mode = #tpu.pipeline_mode<synchronous>, transform_indices = @transform_3, window_bounds = array<i64: 1, 80>}, {pipeline_mode = #tpu.pipeline_mode<synchronous>, transform_indices = @transform_4, window_bounds = array<i64: 1, 80>}, {transform_indices = @transform_5, window_bounds = array<i64: 1, 8, 64>}, {transform_indices = @transform_6, window_bounds = array<i64: 1, 8, 64>}]} {
    %c0 = arith.constant 0 : index
    %c0_0 = arith.constant 0 : index
    %c0_1 = arith.constant 0 : index
    %c0_2 = arith.constant 0 : index
    %c0_3 = arith.constant 0 : index
    %0 = vector.load %arg2[%c0, %c0_0, %c0_1, %c0_2, %c0_3] : memref<1x1x1x10x80xbf16, #tpu.memory_space<vmem>>, vector<1x1x1x10x80xbf16>
    %1 = vector.shape_cast %0 : vector<1x1x1x10x80xbf16> to vector<10x80xbf16>
    %2 = arith.extf %1 : vector<10x80xbf16> to vector<10x80xf32>
    %c0_4 = arith.constant 0 : index
    %c0_5 = arith.constant 0 : index
    %3 = vector.load %arg5[%c0_4, %c0_5] : memref<1x80xf32, #tpu.memory_space<vmem>>, vector<1x80xf32>
    %4 = vector.broadcast %3 : vector<1x80xf32> to vector<10x80xf32>
    %5 = arith.mulf %2, %4 : vector<10x80xf32>
    %c0_6 = arith.constant 0 : index
    %c0_7 = arith.constant 0 : index
    %6 = vector.load %arg6[%c0_6, %c0_7] : memref<1x80xf32, #tpu.memory_space<vmem>>, vector<1x80xf32>
    %7 = vector.broadcast %6 : vector<1x80xf32> to vector<10x80xf32>
    %8 = arith.addf %5, %7 : vector<10x80xf32>
    %cst = arith.constant 0.000000e+00 : f32
    %9 = vector.broadcast %cst : f32 to vector<10x80xf32>
    %10 = arith.maximumf %8, %9 : vector<10x80xf32>
    %11 = tpu.iota {dimensions = array<i32: 0>} : vector<10x1xi32>
    %c0_i32 = arith.constant 0 : i32
    %12 = arith.cmpi eq, %arg1, %c0_i32 : i32
    %c0_i32_8 = arith.constant 0 : i32
    %13 = arith.cmpi eq, %arg1, %c0_i32_8 : i32
    %c0_i32_9 = arith.constant 0 : i32
    %14 = vector.broadcast %c0_i32_9 : i32 to vector<10x1xi32>
    %15 = arith.cmpi eq, %11, %14 : vector<10x1xi32>
    %16 = vector.broadcast %12 : i1 to vector<10x1xi1>
    %17 = arith.andi %15, %16 : vector<10x1xi1>
    %c9_i32 = arith.constant 9 : i32
    %18 = vector.broadcast %c9_i32 : i32 to vector<10x1xi32>
    %19 = arith.cmpi eq, %11, %18 : vector<10x1xi32>
    %20 = vector.broadcast %13 : i1 to vector<10x1xi1>
    %21 = arith.andi %19, %20 : vector<10x1xi1>
    %22 = arith.ori %17, %21 : vector<10x1xi1>
    %cst_10 = arith.constant 0.000000e+00 : f32
    %23 = vector.shape_cast %22 : vector<10x1xi1> to vector<10x1xi1>
    %24 = vector.broadcast %23 : vector<10x1xi1> to vector<10x80xi1>
    %25 = vector.broadcast %cst_10 : f32 to vector<10x80xf32>
    %26 = arith.select %24, %25, %10 : vector<10x80xi1>, vector<10x80xf32>
    %27 = arith.truncf %26 : vector<10x80xf32> to vector<10x80xbf16>
    %cst_11 = arith.constant 0.000000e+00 : f32
    %28 = vector.broadcast %cst_11 : f32 to vector<8x64xf32>
    %29 = vector.extract_strided_slice %27 {offsets = [0, 0], sizes = [8, 80], strides = [1, 1]} : vector<10x80xbf16> to vector<8x80xbf16>
    %c0_12 = arith.constant 0 : index
    %c0_13 = arith.constant 0 : index
    %c0_14 = arith.constant 0 : index
    %c0_15 = arith.constant 0 : index
    %30 = vector.load %arg3[%c0_12, %c0_13, %c0_14, %c0_15] : memref<3x1x80x64xbf16, #tpu.memory_space<vmem>>, vector<1x1x80x64xbf16>
    %31 = vector.shape_cast %30 : vector<1x1x80x64xbf16> to vector<80x64xbf16>
    %cst_16 = arith.constant dense<0.000000e+00> : vector<8x64xf32>
    %32 = tpu.matmul %29, %31, %cst_16 {dimension_numbers = #tpu.dot_dimension_numbers<[1], [0], [0], [1], [0, 0, 1, 1], [], []>} : vector<8x80xbf16>, vector<80x64xbf16>, vector<8x64xf32> -> vector<8x64xf32>
    %33 = arith.addf %28, %32 : vector<8x64xf32>
    %34 = vector.extract_strided_slice %27 {offsets = [1, 0], sizes = [8, 80], strides = [1, 1]} : vector<10x80xbf16> to vector<8x80xbf16>
    %c1 = arith.constant 1 : index
    %c0_17 = arith.constant 0 : index
    %c0_18 = arith.constant 0 : index
    %c0_19 = arith.constant 0 : index
    %35 = vector.load %arg3[%c1, %c0_17, %c0_18, %c0_19] : memref<3x1x80x64xbf16, #tpu.memory_space<vmem>>, vector<1x1x80x64xbf16>
    %36 = vector.shape_cast %35 : vector<1x1x80x64xbf16> to vector<80x64xbf16>
    %cst_20 = arith.constant dense<0.000000e+00> : vector<8x64xf32>
    %37 = tpu.matmul %34, %36, %cst_20 {dimension_numbers = #tpu.dot_dimension_numbers<[1], [0], [0], [1], [0, 0, 1, 1], [], []>} : vector<8x80xbf16>, vector<80x64xbf16>, vector<8x64xf32> -> vector<8x64xf32>
    %38 = arith.addf %33, %37 : vector<8x64xf32>
    %39 = vector.extract_strided_slice %27 {offsets = [2, 0], sizes = [8, 80], strides = [1, 1]} : vector<10x80xbf16> to vector<8x80xbf16>
    %c2 = arith.constant 2 : index
    %c0_21 = arith.constant 0 : index
    %c0_22 = arith.constant 0 : index
    %c0_23 = arith.constant 0 : index
    %40 = vector.load %arg3[%c2, %c0_21, %c0_22, %c0_23] : memref<3x1x80x64xbf16, #tpu.memory_space<vmem>>, vector<1x1x80x64xbf16>
    %41 = vector.shape_cast %40 : vector<1x1x80x64xbf16> to vector<80x64xbf16>
    %cst_24 = arith.constant dense<0.000000e+00> : vector<8x64xf32>
    %42 = tpu.matmul %39, %41, %cst_24 {dimension_numbers = #tpu.dot_dimension_numbers<[1], [0], [0], [1], [0, 0, 1, 1], [], []>} : vector<8x80xbf16>, vector<80x64xbf16>, vector<8x64xf32> -> vector<8x64xf32>
    %43 = arith.addf %38, %42 : vector<8x64xf32>
    %c0_25 = arith.constant 0 : index
    %c0_26 = arith.constant 0 : index
    %44 = vector.load %arg4[%c0_25, %c0_26] : memref<1x64xf32, #tpu.memory_space<vmem>>, vector<1x64xf32>
    %45 = vector.broadcast %44 : vector<1x64xf32> to vector<8x64xf32>
    %46 = arith.addf %43, %45 : vector<8x64xf32>
    %c0_27 = arith.constant 0 : index
    %c0_28 = arith.constant 0 : index
    %c0_29 = arith.constant 0 : index
    %47 = vector.load %arg7[%c0_27, %c0_28, %c0_29] : memref<1x8x64xbf16, #tpu.memory_space<vmem>>, vector<1x8x64xbf16>
    %48 = vector.shape_cast %47 : vector<1x8x64xbf16> to vector<8x64xbf16>
    %49 = arith.extf %48 : vector<8x64xbf16> to vector<8x64xf32>
    %50 = arith.addf %46, %49 : vector<8x64xf32>
    %cst_30 = arith.constant 0.000000e+00 : f32
    %51 = vector.broadcast %cst_30 : f32 to vector<8x64xf32>
    %52 = arith.maximumf %50, %51 : vector<8x64xf32>
    %53 = arith.truncf %52 : vector<8x64xf32> to vector<8x64xbf16>
    %c0_31 = arith.constant 0 : index
    %c0_32 = arith.constant 0 : index
    %c0_33 = arith.constant 0 : index
    %54 = vector.load %arg8[%c0_31, %c0_32, %c0_33] : memref<1x8x64xbf16, #tpu.memory_space<vmem>>, vector<1x8x64xbf16>
    %55 = vector.shape_cast %54 : vector<1x8x64xbf16> to vector<8x64xbf16>
    %56 = vector.shape_cast %53 : vector<8x64xbf16> to vector<1x8x64xbf16>
    tpu.vector_store %arg8[%c0_31, %c0_32, %c0_33], %56 {strides = array<i32>} : memref<1x8x64xbf16, #tpu.memory_space<vmem>>, vector<1x8x64xbf16>,
    return
  }
  func.func @transform_0(%arg0: i32, %arg1: i32) -> (i32, i32, i32, i32, i32) {
    %c1_i32 = arith.constant 1 : i32
    %0 = arith.muli %arg0, %c1_i32 : i32
    %1 = arith.addi %0, %arg1 : i32
    %c0_i32 = arith.constant 0 : i32
    %c0_i32_0 = arith.constant 0 : i32
    %c0_i32_1 = arith.constant 0 : i32
    %c0_i32_2 = arith.constant 0 : i32
    %c0_i32_3 = arith.constant 0 : i32
    return %1, %c0_i32, %c0_i32_0, %c0_i32_1, %c0_i32_2 : i32, i32, i32, i32, i32
  }
  func.func @transform_1(%arg0: i32, %arg1: i32) -> (i32, i32, i32, i32) {
    %c0_i32 = arith.constant 0 : i32
    %c0_i32_0 = arith.constant 0 : i32
    %c0_i32_1 = arith.constant 0 : i32
    %c0_i32_2 = arith.constant 0 : i32
    %c0_i32_3 = arith.constant 0 : i32
    return %c0_i32, %c0_i32_0, %c0_i32_1, %c0_i32_2 : i32, i32, i32, i32
  }
  func.func @transform_2(%arg0: i32, %arg1: i32) -> (i32, i32) {
    %c0_i32 = arith.constant 0 : i32
    %c0_i32_0 = arith.constant 0 : i32
    %c0_i32_1 = arith.constant 0 : i32
    return %c0_i32, %c0_i32_0 : i32, i32
  }
  func.func @transform_3(%arg0: i32, %arg1: i32) -> (i32, i32) {
    %c0_i32 = arith.constant 0 : i32
    %c0_i32_0 = arith.constant 0 : i32
    %c0_i32_1 = arith.constant 0 : i32
    return %c0_i32, %c0_i32_0 : i32, i32
  }
  func.func @transform_4(%arg0: i32, %arg1: i32) -> (i32, i32) {
    %c0_i32 = arith.constant 0 : i32
    %c0_i32_0 = arith.constant 0 : i32
    %c0_i32_1 = arith.constant 0 : i32
    return %c0_i32, %c0_i32_0 : i32, i32
  }
  func.func @transform_5(%arg0: i32, %arg1: i32) -> (i32, i32, i32) {
    %c1_i32 = arith.constant 1 : i32
    %0 = arith.muli %arg0, %c1_i32 : i32
    %1 = arith.addi %0, %arg1 : i32
    %c0_i32 = arith.constant 0 : i32
    %c0_i32_0 = arith.constant 0 : i32
    %c0_i32_1 = arith.constant 0 : i32
    return %1, %c0_i32, %c0_i32_0 : i32, i32, i32
  }
  func.func @transform_6(%arg0: i32, %arg1: i32) -> (i32, i32, i32) {
    %c1_i32 = arith.constant 1 : i32
    %0 = arith.muli %arg0, %c1_i32 : i32
    %1 = arith.addi %0, %arg1 : i32
    %c0_i32 = arith.constant 0 : i32
    %c0_i32_0 = arith.constant 0 : i32
    %c0_i32_1 = arith.constant 0 : i32
    return %1, %c0_i32, %c0_i32_0 : i32, i32, i32
  }
}

module attributes {stable_mosaic.version = 11 : i64} {
  func.func @_conv_kernel(%arg0: i32, %arg1: i32, %arg2: memref<1x1x1x10x80xbf16, #tpu.memory_space<vmem>>, %arg3: memref<3x1x80x32xbf16, #tpu.memory_space<vmem>>, %arg4: memref<1x32xf32, #tpu.memory_space<vmem>>, %arg5: memref<1x8x32xf32, #tpu.memory_space<vmem>>) attributes {dimension_semantics = [#tpu.dimension_semantics<parallel>, #tpu.dimension_semantics<parallel>], iteration_bounds = array<i64: 2, 1>, scalar_prefetch = 0 : i64, scratch_operands = 0 : i64, tpu.core_type = #tpu.core_type<tc>, window_params = [{transform_indices = @transform_0, window_bounds = array<i64: 1, 1, 1, 10, 80>}, {pipeline_mode = #tpu.pipeline_mode<synchronous>, transform_indices = @transform_1, window_bounds = array<i64: 3, 1, 80, 32>}, {pipeline_mode = #tpu.pipeline_mode<synchronous>, transform_indices = @transform_2, window_bounds = array<i64: 1, 32>}, {transform_indices = @transform_3, window_bounds = array<i64: 1, 8, 32>}]} {
    %cst = arith.constant 0.000000e+00 : f32
    %0 = vector.broadcast %cst : f32 to vector<8x32xf32>
    %c0 = arith.constant 0 : index
    %c0_0 = arith.constant 0 : index
    %c0_1 = arith.constant 0 : index
    %c0_2 = arith.constant 0 : index
    %c0_3 = arith.constant 0 : index
    %1 = vector.load %arg2[%c0, %c0_0, %c0_1, %c0_2, %c0_3] : memref<1x1x1x10x80xbf16, #tpu.memory_space<vmem>>, vector<1x1x1x8x80xbf16>
    %2 = vector.shape_cast %1 : vector<1x1x1x8x80xbf16> to vector<8x80xbf16>
    %c0_4 = arith.constant 0 : index
    %c0_5 = arith.constant 0 : index
    %c0_6 = arith.constant 0 : index
    %c0_7 = arith.constant 0 : index
    %3 = vector.load %arg3[%c0_4, %c0_5, %c0_6, %c0_7] : memref<3x1x80x32xbf16, #tpu.memory_space<vmem>>, vector<1x1x80x32xbf16>
    %4 = vector.shape_cast %3 : vector<1x1x80x32xbf16> to vector<80x32xbf16>
    %cst_8 = arith.constant dense<0.000000e+00> : vector<8x32xf32>
    %5 = tpu.matmul %2, %4, %cst_8 {dimension_numbers = #tpu.dot_dimension_numbers<[1], [0], [0], [1], [0, 0, 1, 1], [], []>} : vector<8x80xbf16>, vector<80x32xbf16>, vector<8x32xf32> -> vector<8x32xf32>
    %6 = arith.addf %0, %5 : vector<8x32xf32>
    %c0_9 = arith.constant 0 : index
    %c0_10 = arith.constant 0 : index
    %c0_11 = arith.constant 0 : index
    %c1 = arith.constant 1 : index
    %c0_12 = arith.constant 0 : index
    %7 = vector.load %arg2[%c0_9, %c0_10, %c0_11, %c1, %c0_12] : memref<1x1x1x10x80xbf16, #tpu.memory_space<vmem>>, vector<1x1x1x8x80xbf16>
    %8 = vector.shape_cast %7 : vector<1x1x1x8x80xbf16> to vector<8x80xbf16>
    %c1_13 = arith.constant 1 : index
    %c0_14 = arith.constant 0 : index
    %c0_15 = arith.constant 0 : index
    %c0_16 = arith.constant 0 : index
    %9 = vector.load %arg3[%c1_13, %c0_14, %c0_15, %c0_16] : memref<3x1x80x32xbf16, #tpu.memory_space<vmem>>, vector<1x1x80x32xbf16>
    %10 = vector.shape_cast %9 : vector<1x1x80x32xbf16> to vector<80x32xbf16>
    %cst_17 = arith.constant dense<0.000000e+00> : vector<8x32xf32>
    %11 = tpu.matmul %8, %10, %cst_17 {dimension_numbers = #tpu.dot_dimension_numbers<[1], [0], [0], [1], [0, 0, 1, 1], [], []>} : vector<8x80xbf16>, vector<80x32xbf16>, vector<8x32xf32> -> vector<8x32xf32>
    %12 = arith.addf %6, %11 : vector<8x32xf32>
    %c0_18 = arith.constant 0 : index
    %c0_19 = arith.constant 0 : index
    %c0_20 = arith.constant 0 : index
    %c2 = arith.constant 2 : index
    %c0_21 = arith.constant 0 : index
    %13 = vector.load %arg2[%c0_18, %c0_19, %c0_20, %c2, %c0_21] : memref<1x1x1x10x80xbf16, #tpu.memory_space<vmem>>, vector<1x1x1x8x80xbf16>
    %14 = vector.shape_cast %13 : vector<1x1x1x8x80xbf16> to vector<8x80xbf16>
    %c2_22 = arith.constant 2 : index
    %c0_23 = arith.constant 0 : index
    %c0_24 = arith.constant 0 : index
    %c0_25 = arith.constant 0 : index
    %15 = vector.load %arg3[%c2_22, %c0_23, %c0_24, %c0_25] : memref<3x1x80x32xbf16, #tpu.memory_space<vmem>>, vector<1x1x80x32xbf16>
    %16 = vector.shape_cast %15 : vector<1x1x80x32xbf16> to vector<80x32xbf16>
    %cst_26 = arith.constant dense<0.000000e+00> : vector<8x32xf32>
    %17 = tpu.matmul %14, %16, %cst_26 {dimension_numbers = #tpu.dot_dimension_numbers<[1], [0], [0], [1], [0, 0, 1, 1], [], []>} : vector<8x80xbf16>, vector<80x32xbf16>, vector<8x32xf32> -> vector<8x32xf32>
    %18 = arith.addf %12, %17 : vector<8x32xf32>
    %c0_27 = arith.constant 0 : index
    %c0_28 = arith.constant 0 : index
    %19 = vector.load %arg4[%c0_27, %c0_28] : memref<1x32xf32, #tpu.memory_space<vmem>>, vector<1x32xf32>
    %20 = vector.broadcast %19 : vector<1x32xf32> to vector<8x32xf32>
    %21 = arith.addf %18, %20 : vector<8x32xf32>
    %c0_29 = arith.constant 0 : index
    %c0_30 = arith.constant 0 : index
    %c0_31 = arith.constant 0 : index
    %22 = vector.load %arg5[%c0_29, %c0_30, %c0_31] : memref<1x8x32xf32, #tpu.memory_space<vmem>>, vector<1x8x32xf32>
    %23 = vector.shape_cast %22 : vector<1x8x32xf32> to vector<8x32xf32>
    %24 = vector.shape_cast %21 : vector<8x32xf32> to vector<1x8x32xf32>
    tpu.vector_store %arg5[%c0_29, %c0_30, %c0_31], %24 {strides = array<i32>} : memref<1x8x32xf32, #tpu.memory_space<vmem>>, vector<1x8x32xf32>,
    return
  }
  func.func @transform_0(%arg0: i32, %arg1: i32) -> (i32, i32, i32, i32, i32) {
    %c1_i32 = arith.constant 1 : i32
    %0 = arith.muli %arg0, %c1_i32 : i32
    %1 = arith.addi %0, %arg1 : i32
    %c0_i32 = arith.constant 0 : i32
    %c0_i32_0 = arith.constant 0 : i32
    %c0_i32_1 = arith.constant 0 : i32
    %c0_i32_2 = arith.constant 0 : i32
    %c0_i32_3 = arith.constant 0 : i32
    return %1, %c0_i32, %c0_i32_0, %c0_i32_1, %c0_i32_2 : i32, i32, i32, i32, i32
  }
  func.func @transform_1(%arg0: i32, %arg1: i32) -> (i32, i32, i32, i32) {
    %c0_i32 = arith.constant 0 : i32
    %c0_i32_0 = arith.constant 0 : i32
    %c0_i32_1 = arith.constant 0 : i32
    %c0_i32_2 = arith.constant 0 : i32
    %c0_i32_3 = arith.constant 0 : i32
    return %c0_i32, %c0_i32_0, %c0_i32_1, %c0_i32_2 : i32, i32, i32, i32
  }
  func.func @transform_2(%arg0: i32, %arg1: i32) -> (i32, i32) {
    %c0_i32 = arith.constant 0 : i32
    %c0_i32_0 = arith.constant 0 : i32
    %c0_i32_1 = arith.constant 0 : i32
    return %c0_i32, %c0_i32_0 : i32, i32
  }
  func.func @transform_3(%arg0: i32, %arg1: i32) -> (i32, i32, i32) {
    %c1_i32 = arith.constant 1 : i32
    %0 = arith.muli %arg0, %c1_i32 : i32
    %1 = arith.addi %0, %arg1 : i32
    %c0_i32 = arith.constant 0 : i32
    %c0_i32_0 = arith.constant 0 : i32
    %c0_i32_1 = arith.constant 0 : i32
    return %1, %c0_i32, %c0_i32_0 : i32, i32, i32
  }
}

</mosaic_0001>

<bundles_post_ra>
// kernel: tile.63
= control target key start
LH: loop header
LB: loop body
LE: loop exit
PB: predicated region body
PF: predicated region fallthrough
CT: control target
= control target key end

     0   :  { %s28_s0 = inlined_call_operand.vmem [shape: f32[8], index: 0, kind: input, shape index: {}]   ;;  %s29_s1 = inlined_call_operand.vmem [shape: f32[16,8], index: 1, kind: output, shape index: {}]  }
   0x1   :  { %v4_v0 = vld [vmem:[%s28_s0] ss:$0 sm:$0xff] }
   0x2   :  { %5 = vst [vmem:[%s29_s1] sm:$0xff] %v4_v0  ;;  %8 = vst [vmem:[%s29_s1 + $0x8] sm:$0xff] %v4_v0 }

// kernel: tile.64
= control target key start
LH: loop header
LB: loop body
LE: loop exit
PB: predicated region body
PF: predicated region fallthrough
CT: control target
= control target key end

     0   :  { %s131_s10 = smov 120   ;;  %s132_s11 = smov 104   ;;  %vm3_vm0 = vcmask 64512   ;;  %vm9_vm1 = vcmask 1048512   ;;  %vm15_vm2 = vcmask 982912   ;;  %vm21_vm3 = vcmask 917312   ;;  %s207_s0 = inlined_call_operand.vmem [shape: f32[16,8], index: 0, kind: input, shape index: {}]   ;;  %s208_s1 = inlined_call_operand.vmem [shape: f32[1,128], index: 1, kind: output, shape index: {}]  }
   0x1   :  { %v101_v0 = vld [vmem:[%s207_s0 + $0xf] sm:$0x1]   ;;  %v103_v1 = vld [vmem:[%s207_s0 + $0xd] sm:$0x1]   ;;  %v102_v2 = vld [vmem:[%s207_s0 + $0xe] sm:$0x1]  }
   0x2   :  { %7 = vrot.lane.b32.xlu0 %v101_v0, %s131_s10  ;;  %19 = vrot.lane.b32.xlu1 %v103_v1, %s132_s11  ;;  %v104_v3 = vld [vmem:[%s207_s0 + $0xc] sm:$0x1]   ;;  %s133_s16 = smov 112   ;;  %s134_s17 = smov 96   ;;  %v105_v4 = vld [vmem:[%s207_s0 + $0xb] sm:$0x1]  }
   0x3   :  { %v106_v5 = vld [vmem:[%s207_s0 + $0xa] sm:$0x1]   ;;  %v2_v6 = vld [vmem:[%s207_s0] sm:$0x1]   ;;  %s135_s24 = smov 88   ;;  %s136_s25 = smov 80  }
   0x4   :  { %4 = vst.msk [vmem:[#allocation0] sm:$0x1] %vm3_vm0, %v2_v6   ;;  %v107_v7 = vld [vmem:[%s207_s0 + $0x9] sm:$0x1]   ;;  %v108_v8 = vld [vmem:[%s207_s0 + $0x8] sm:$0x1]  }
   0x5   :  { %s137_s30 = smov 72   ;;  %s138_s2 = smov 64   ;;  %v109_v9 = vld [vmem:[%s207_s0 + $0x7] sm:$0x1]   ;;  %v110_v10 = vld [vmem:[%s207_s0 + $0x6] sm:$0x1]  }
   0x6   :  { %13 = vrot.lane.b32.xlu0 %v102_v2, %s133_s16  ;;  %25 = vrot.lane.b32.xlu1 %v104_v3, %s134_s17  ;;  %s139_s7 = smov 56   ;;  %s140_s8 = smov 48   ;;  %v111_v11 = vld [vmem:[%s207_s0 + $0x5] sm:$0x1]   ;;  %v112_v12 = vld [vmem:[%s207_s0 + $0x4] sm:$0x1]  }
   0x7   :  { %s141_s13 = smov 40   ;;  %s142_s14 = smov 32   ;;  %v113_v13 = vld [vmem:[%s207_s0 + $0x3] sm:$0x1]   ;;  %v114_v14 = vld [vmem:[%s207_s0 + $0x2] sm:$0x1]  }
   0x8   :  { %s143_s19 = smov 24   ;;  %s144_s20 = smov 16   ;;  %v115_v15 = vld [vmem:[%s207_s0 + $0x1] sm:$0x1]   ;;  %vm27_vm4 = vcmask 851712   ;;  %vm33_vm5 = vcmask 786112  }
   0x9   :  { %s145_s0 = smov 8   ;;  %vm39_vm6 = vcmask 720512   ;;  %vm45_vm7 = vcmask 654912   ;;  %vm51_vm8 = vcmask 589312   ;;  %vm57_vm9 = vcmask 523712  }
   0xa   :  { %31 = vrot.lane.b32.xlu0 %v105_v4, %s135_s24  ;;  %37 = vrot.lane.b32.xlu1 %v106_v5, %s136_s25  ;;  %vm63_vm10 = vcmask 458112   ;;  %vm69_vm11 = vcmask 392512   ;;  %vm75_vm12 = vcmask 326912   ;;  %vm81_vm13 = vcmask 261312  }
   0xb   :  { %vm87_vm14 = vcmask 195712   ;;  %vm93_vm15 = vcmask 130112  }
   0xe   :  { %43 = vrot.lane.b32.xlu0 %v107_v7, %s137_s30  ;;  %49 = vrot.lane.b32.xlu1 %v108_v8, %s138_s2 }
  0x12   :  { %55 = vrot.lane.b32.xlu0 %v109_v9, %s139_s7  ;;  %61 = vrot.lane.b32.xlu1 %v110_v10, %s140_s8 }
  0x16   :  { %67 = vrot.lane.b32.xlu0 %v111_v11, %s141_s13  ;;  %73 = vrot.lane.b32.xlu1 %v112_v12, %s142_s14 }
  0x1a   :  { %79 = vrot.lane.b32.xlu0 %v113_v13, %s143_s19  ;;  %85 = vrot.lane.b32.xlu1 %v114_v14, %s144_s20 }
  0x1e   :  { %91 = vrot.lane.b32.xlu0 %v115_v15, %s145_s0 }
  0x74   :  { %v8_v16 = vpop.permute.xlu0 %7   ;;  %v20_v17 = vpop.permute.xlu1 %19  }
  0x75   :  { %10 = vst.msk [vmem:[#allocation0] sm:$0x1] %vm9_vm1, %v8_v16  }
  0x78   :  { %v14_v18 = vpop.permute.xlu0 %13   ;;  %v26_v19 = vpop.permute.xlu1 %25  }
  0x79   :  { %16 = vst.msk [vmem:[#allocation0] sm:$0x1] %vm15_vm2, %v14_v18  }
  0x7a   :  { %22 = vst.msk [vmem:[#allocation0] sm:$0x1] %vm21_vm3, %v20_v17  }
  0x7b   :  { %28 = vst.msk [vmem:[#allocation0] sm:$0x1] %vm27_vm4, %v26_v19  }
  0x7c   :  { %v32_v20 = vpop.permute.xlu0 %31   ;;  %v38_v21 = vpop.permute.xlu1 %37  }
  0x7d   :  { %34 = vst.msk [vmem:[#allocation0] sm:$0x1] %vm33_vm5, %v32_v20  }
  0x7e   :  { %40 = vst.msk [vmem:[#allocation0] sm:$0x1] %vm39_vm6, %v38_v21  }
  0x80   :  { %v44_v22 = vpop.permute.xlu0 %43   ;;  %v50_v23 = vpop.permute.xlu1 %49  }
  0x81   :  { %46 = vst.msk [vmem:[#allocation0] sm:$0x1] %vm45_vm7, %v44_v22  }
  0x82   :  { %52 = vst.msk [vmem:[#allocation0] sm:$0x1] %vm51_vm8, %v50_v23  }
  0x84   :  { %v56_v24 = vpop.permute.xlu0 %55   ;;  %v62_v25 = vpop.permute.xlu1 %61  }
  0x85   :  { %58 = vst.msk [vmem:[#allocation0] sm:$0x1] %vm57_vm9, %v56_v24  }
  0x86   :  { %64 = vst.msk [vmem:[#allocation0] sm:$0x1] %vm63_vm10, %v62_v25  }
  0x88   :  { %v68_v26 = vpop.permute.xlu0 %67   ;;  %v74_v27 = vpop.permute.xlu1 %73  }
  0x89   :  { %70 = vst.msk [vmem:[#allocation0] sm:$0x1] %vm69_vm11, %v68_v26  }
  0x8a   :  { %76 = vst.msk [vmem:[#allocation0] sm:$0x1] %vm75_vm12, %v74_v27  }
  0x8c   :  { %v80_v28 = vpop.permute.xlu0 %79   ;;  %v86_v29 = vpop.permute.xlu1 %85  }
  0x8d   :  { %82 = vst.msk [vmem:[#allocation0] sm:$0x1] %vm81_vm13, %v80_v28  }
  0x8e   :  { %88 = vst.msk [vmem:[#allocation0] sm:$0x1] %vm87_vm14, %v86_v29  }
  0x90   :  { %v92_v30 = vpop.permute.xlu0 %91  }
  0x91   :  { %94 = vst.msk [vmem:[#allocation0] sm:$0x1] %vm93_vm15, %v92_v30  }
  0x98   :  { %v98_v31 = vld [vmem:[#allocation0] sm:$0x1] }
  0x99   :  { %100 = vst [vmem:[%s208_s1] sm:$0x1] %v98_v31 }

// kernel: encoder2d_forward.9
= control target key start
LH: loop header
LB: loop body
LE: loop exit
PB: predicated region body
PF: predicated region fallthrough
CT: control target
= control target key end

     0   :  { %s736_s12 = smov 0   ;;  %s738_s13 = smov 0   ;;  %s836_s0 = inlined_call_operand.vmem [shape: bf16[2,1,1,18,54], index: 0, kind: input, shape index: {}]   ;;  %s837_s1 = inlined_call_operand.vmem [shape: bf16[3,1,54,128], index: 1, kind: input, shape index: {}]   ;;  %s838_s2 = inlined_call_operand.vmem [shape: f32[1,128], index: 2, kind: input, shape index: {}]   ;;  %s839_s3 = inlined_call_operand.vmem [shape: bf16[2,16,128], index: 3, kind: output, shape index: {}]  }
   0x1   :  { %s740_s14 = smov 0  }
   0x2 LB: > { %s25_s15 = sadd.s32 1, %s708_s13  ;;  %p548_p0 = scmp.ge.s32.totalorder %s712_s14, 1  ;;  %s712_s14 = sphi %s740_s14, %s13_s14   ;;  %s708_s13 = sphi %s738_s13, %s841_s13   ;;  %s704_s12 = sphi %s736_s12, %s840_s12  }
   0x3   : > { %p27_p1 = scmp.ge.s32.totalorder %s25_s15, 2  ;;  %p155_p2 = scmp.lt.s32.totalorder %s712_s14, 3 }
   0x5   : > { %s843_s15 = smov (%p27_p1, %s25_s15), 0  ;;  %p156_p3 = pnand %p548_p0, %p155_p2 }
   0x6   : > { %v675_v0 = vld [vmem:[%s837_s1 + $0x1c] sm:$0xff] (!%p156_p3)   ;;  %v714_v1 = vmov (!%p156_p3), 0.0   ;;  %v677_v3 = vld [vmem:[%s837_s1 + $0x24] sm:$0xff] (!%p156_p3)   ;;  %p182_p4 = scmp.lt.s32.totalorder (!%p156_p3), %s704_s12, 1  ;;  %vm260_vm0 = vcmask (!%p156_p3), 1042432   ;;  %vm715_vm1 = vmmov (!%p156_p3), 0  }
   0x7   : > { %159 = sbr.rel (%p156_p3) target bundleno = 265 (0x109), region = 32  ;;  %612 = vmatprep.subr.bf16.mxu0 (!%p156_p3), %v714_v1  ;;  %624 = vmatprep.subr.bf16.mxu1 (!%p156_p3), %v714_v1  ;;  %v676_v2 = vld [vmem:[%s837_s1] sm:$0xff] (!%p156_p3)   ;;  %v678_v4 = vld [vmem:[%s837_s1 + $0x8] sm:$0xff] (!%p156_p3)   ;;  %v680_v6 = vld [vmem:[%s837_s1 + $0x10] sm:$0xff] (!%p156_p3)   ;;  %vm256_vm2 = vcmask (!%p156_p3), 441344   ;;  %vm384_vm4 = vcmask (!%p156_p3), 1046528  }
   0x8   : > { %613 = vmatpush3.bf16.msra.mxu0 (!%p156_p3), %v675_v0  ;;  %625 = vmatpush3.bf16.msra.mxu1 (!%p156_p3), %v676_v2  ;;  %v679_v5 = vld [vmem:[%s837_s1 + $0x2c] sm:$0xff] (!%p156_p3)   ;;  %v681_v7 = vld [vmem:[%s837_s1 + $0x34] ss:$0 sps:$4 sm:$0x77] (!%p156_p3)   ;;  %vm222_vm3 = vsmask.f32 (!%p156_p3), 7424 }
   0x9   : > { %614 = vmatprep.subr.bf16.mxu0 (!%p156_p3), %v714_v1  ;;  %626 = vmatprep.subr.bf16.mxu1 (!%p156_p3), %v714_v1  ;;  %v682_v8 = vld [vmem:[%s837_s1 + $0x18] ss:$0 sps:$4 sm:$0x77] (!%p156_p3)   ;;  %v262_v9 = vsel (!%p156_p3), %vm260_vm0, %v681_v7, 0  ;;  %v686_v23 = vld [vmem:[%s837_s1 + $0x40] sm:$0xff] (!%p156_p3)   ;;  %v687_v25 = vld [vmem:[%s837_s1 + $0x48] sm:$0xff] (!%p156_p3)  }
   0xa   : > { %620 = vmatprep.mubr.msk.bf16.mxu0 (!%p156_p3), %vm715_vm1, %v714_v1  ;;  %632 = vmatprep.mubr.msk.bf16.mxu1 (!%p156_p3), %vm715_vm1, %v714_v1  ;;  %v329_v12 = vsel (!%p156_p3), %vm260_vm0, %v682_v8, 0  ;;  %v685_v21 = vld [vmem:[%s837_s1 + $0x38] sm:$0xff] (!%p156_p3)   ;;  %v688_v27 = vld [vmem:[%s837_s1 + $0x50] ss:$0 sps:$4 sm:$0x77] (!%p156_p3)  }
   0xb   : > { %v413_v30 = vsel (!%p156_p3), %vm260_vm0, %v688_v27, 0  ;;  %v584_v45 = vld [vmem:[%s838_s2] ss:$0 sm:$0xff] (!%p156_p3) }
   0xc   : > { %615 = vmatpush3.bf16.msra.mxu0 (!%p156_p3), %v677_v3  ;;  %627 = vmatpush3.bf16.msra.mxu1 (!%p156_p3), %v678_v4 }
   0xd   : > { %616 = vmatprep.subr.bf16.mxu0 (!%p156_p3), %v714_v1  ;;  %628 = vmatprep.subr.bf16.mxu1 (!%p156_p3), %v714_v1 }
   0xe   : > { %s845_s12 = smov (!%p182_p4, %s704_s12), 1 }
   0xf   : > { %s648_s5 = smul.u32 12, %s845_s12  ;;  %s589_s23 = sshll.u32 %s845_s12, 3 }
  0x10   : > { %617 = vmatpush3.bf16.msra.mxu0 %v679_v5  ;;  %629 = vmatpush3.bf16.msra.mxu1 %v680_v6  ;;  %s193_s26 = scalar_lea.vmem %s839_s3, %s589_s23 }
  0x11   : > { %s186_s8 = scalar_lea.vmem %s836_s0, %s648_s5  ;;  %618 = vmatprep.subr.bf16.mxu0 %v714_v1  ;;  %630 = vmatprep.subr.bf16.mxu1 %v714_v1 }
  0x12   : > { %v196_v10 = vld [vmem:[%s186_s8] sm:$0xf]  ;;  %v197_v11 = vld [vmem:[%s186_s8 + $0x4] sm:$0xf] }
  0x13   : > { %v559_v13 = vcombine.low %v196_v10, %v197_v11  ;;  %v684_v14 = vld [vmem:[%s186_s8 + $0x8] ss:$0 sps:$4 sm:$0x11]   ;;  %v372_v24 = vld [vmem:[%s186_s8] sm:$0xe] }
  0x14   : > { %v231_v17 = vshll.u32 %v684_v14, 16  ;;  %619 = vmatpush3.bf16.msra.mxu0 %v262_v9  ;;  %631 = vmatpush3.bf16.msra.mxu1 %v329_v12  ;;  %v578_v26 = vcombine.low %v372_v24, %v197_v11  ;;  %v386_v29 = vrot.slane %v684_v14, 1 }
  0x15   : > { %v224_v15 = vshrl.u32 %v559_v13, 16  ;;  %v226_v16 = vshll.u32 %v559_v13, 16  ;;  %636 = vmatprep.subr.bf16.mxu0 %v714_v1 }
  0x16   : > { %v233_v19 = vrot.slane %v231_v17, 1  ;;  %v385_v28 = vrot.slane %v578_v26, 1 }
  0x17   : > { %v228_v18 = vrot.slane %v226_v16, 1  ;;  %633 = vmatmul.mubr.msk.bf16.vlgmr.msra.gmra.mrb[0].mxu1 %vm256_vm2, %v559_v13 }
  0x18   : > { %v387_v31 = vsel %vm384_vm4, %v385_v28, %v386_v29 }
  0x19   : > { %v229_v20 = vor.u32 %v228_v18, %v224_v15 }
  0x1b   : > { %v234_v22 = vsel %vm222_vm3, %v229_v20, %v233_v19 }
  0x1c   : > { %621 = vmatmul.mubr.msk.bf16.vlgmr.msra.gmra.mrb[0].mxu0 %vm256_vm2, %v234_v22 }
  0x1d   : > { %637 = vmatpush3.bf16.msra.mxu0 %v685_v21  ;;  %644 = vmatprep.mubr.msk.bf16.mxu0 %vm715_vm1, %v714_v1 }
  0x1e   : > { %638 = vmatprep.subr.bf16.mxu0 %v714_v1 }
  0x21   : > { %639 = vmatpush3.bf16.msra.mxu0 %v686_v23 }
  0x22   : > { %640 = vmatprep.subr.bf16.mxu0 %v714_v1 }
  0x25   : > { %641 = vmatpush3.bf16.msra.mxu0 %v687_v25 }
  0x26   : > { %642 = vmatprep.subr.bf16.mxu0 %v714_v1 }
  0x29   : > { %643 = vmatpush3.bf16.msra.mxu0 %v413_v30 }
  0x2c   : > { %645 = vmatmul.mubr.msk.bf16.vlgmr.msra.gmra.mrb[4].mxu0 %vm256_vm2, %v387_v31 }
  0xea   : > { %v365_v32 = vpop.f32.mrb[0].mxu1 }
  0xeb   : > { %v634_v33 = vpop.f32.mrb[1].mxu1 }
  0xec   : > { %v368_v35 = vpop.f32.mrb[2].mxu1 }
  0xed   : > { %v635_v38 = vpop.f32.mrb[3].mxu1 }
  0xef   : > { %v298_v34 = vpop.f32.mrb[0].mxu0 }
  0xf0   : > { %v366_v36 = vadd.f32 %v365_v32, %v298_v34  ;;  %v622_v37 = vpop.f32.mrb[1].mxu0 }
  0xf1   : > { %v301_v39 = vpop.f32.mrb[2].mxu0 }
  0xf2   : > { %v369_v40 = vadd.f32 %v368_v35, %v301_v39  ;;  %v623_v41 = vpop.f32.mrb[3].mxu0 }
  0xff   : > { %v449_v42 = vpop.f32.mrb[4].mxu0 }
 0x100   : > { %v456_v43 = vadd.f32 %v449_v42, %v366_v36  ;;  %v646_v44 = vpop.f32.mrb[5].mxu0 }
 0x101   : > { %v452_v46 = vpop.f32.mrb[6].mxu0 }
 0x102   : > { %v457_v47 = vadd.f32 %v452_v46, %v369_v40  ;;  %v647_v48 = vpop.f32.mrb[7].mxu0  ;;  %v465_v49 = vadd.f32 %v584_v45, %v456_v43 }
 0x104   : > { %v466_v50 = vadd.f32 %v584_v45, %v457_v47 }
 0x106   : > { %v595_v51 = vpack.c.bf16 %v466_v50, %v465_v49 }
 0x108   : > { %596 = vst [vmem:[%s193_s26] sm:$0xff] %v595_v51  }
 0x109 PF: > { %s13_s14 = sadd.s32 1, %s712_s14   ;;  %s840_s12 = smov %s708_s13 }
 0x10a   : > { %p10_p5 = scmp.ge.s32.totalorder %s13_s14, 4   ;;  %s841_s13 = smov %s843_s15 }
 0x10c   :  { %12 = sbr.rel (!%p10_p5) target bundleno = 2 (0x2), region = 64 }

// kernel: encoder2d_forward.10
= control target key start
LH: loop header
LB: loop body
LE: loop exit
PB: predicated region body
PF: predicated region fallthrough
CT: control target
= control target key end

     0   :  { %s1627_s15 = smov 0   ;;  %s1629_s16 = smov 0   ;;  %s1948_s0 = inlined_call_operand.vmem [shape: bf16[2,1,1,18,144], index: 0, kind: input, shape index: {}]   ;;  %s1949_s1 = inlined_call_operand.vmem [shape: bf16[3,1,144,128], index: 1, kind: input, shape index: {}]   ;;  %s1950_s2 = inlined_call_operand.vmem [shape: f32[1,128], index: 2, kind: input, shape index: {}]   ;;  %s1951_s3 = inlined_call_operand.vmem [shape: bf16[2,16,128], index: 3, kind: output, shape index: {0}]   ;;  %s1952_s4 = inlined_call_operand.vmem [shape: f32[2,2,8], index: 4, kind: output, shape index: {1}]  }
   0x1   :  { %s1631_s17 = smov 0  }
   0x2 LB: > { %s27_s18 = sadd.s32 1, %s1594_s16  ;;  %p1208_p0 = scmp.ge.s32.totalorder %s1598_s17, 1  ;;  %s1598_s17 = sphi %s1631_s17, %s15_s17   ;;  %s1594_s16 = sphi %s1629_s16, %s1970_s16   ;;  %s1590_s15 = sphi %s1627_s15, %s1969_s15  }
   0x3   : > { %p29_p1 = scmp.ge.s32.totalorder %s27_s18, 2  ;;  %p185_p2 = scmp.lt.s32.totalorder %s1598_s17, 3 }
   0x5   : > { %s1972_s18 = smov (%p29_p1, %s27_s18), 0  ;;  %p186_p3 = pnand %p1208_p0, %p185_p2 }
   0x6   : > { %v1543_v0 = vld [vmem:[%s1949_s1 + $0x48] sm:$0xff] (!%p186_p3)   ;;  %v1600_v1 = vmov (!%p186_p3), 0   ;;  %v1544_v2 = vld [vmem:[%s1949_s1] sm:$0xff] (!%p186_p3)   ;;  %v1545_v3 = vld [vmem:[%s1949_s1 + $0x50] sm:$0xff] (!%p186_p3)   ;;  %p219_p4 = scmp.lt.s32.totalorder (!%p186_p3), %s1590_s15, 1  ;;  %vm372_vm0 = vcmask (!%p186_p3), 130048   ;;  %v669_v58 = vlaneseq (!%p186_p3) }
   0x7   : > { %189 = sbr.rel (%p186_p3) target bundleno = 564 (0x234), region = 32  ;;  %376 = vmatprep.subr.bf16.mxu0 (!%p186_p3), %v1600_v1  ;;  %474 = vmatprep.subr.bf16.mxu1 (!%p186_p3), %v1600_v1  ;;  %v1546_v4 = vld [vmem:[%s1949_s1 + $0x8] sm:$0xff] (!%p186_p3)   ;;  %v1547_v5 = vld [vmem:[%s1949_s1 + $0x58] sm:$0xff] (!%p186_p3)   ;;  %v1548_v6 = vld [vmem:[%s1949_s1 + $0x10] sm:$0xff] (!%p186_p3)   ;;  %vm292_vm1 = vsmask.f32 (!%p186_p3), 7424 }
   0x8   : > { %377 = vmatpush1.bf16.msra.mxu0 (!%p186_p3), %v1543_v0  ;;  %475 = vmatpush1.bf16.msra.mxu1 (!%p186_p3), %v1544_v2  ;;  %v1549_v7 = vld [vmem:[%s1949_s1 + $0x60] sm:$0xff] (!%p186_p3)   ;;  %v1550_v8 = vld [vmem:[%s1949_s1 + $0x18] sm:$0xff] (!%p186_p3)   ;;  %v1551_v9 = vld [vmem:[%s1949_s1 + $0x68] sm:$0xff] (!%p186_p3)   ;;  %vm540_vm2 = vcmask (!%p186_p3), 1046528   ;;  %v670_v59 = vshrl.u32 (!%p186_p3), %v669_v58, 7  ;;  %v1782_v60 = vand.u32 (!%p186_p3), 127, %v669_v58 }
   0x9   : > { %378 = vmatprep.subr.bf16.mxu0 (!%p186_p3), %v1600_v1  ;;  %476 = vmatprep.subr.bf16.mxu1 (!%p186_p3), %v1600_v1  ;;  %v1552_v10 = vld [vmem:[%s1949_s1 + $0x20] sm:$0xff] (!%p186_p3)   ;;  %v1553_v11 = vld [vmem:[%s1949_s1 + $0x70] sm:$0xff] (!%p186_p3)   ;;  %v1554_v15 = vld [vmem:[%s1949_s1 + $0x28] sm:$0xff] (!%p186_p3)  }
   0xa   : > { %v1555_v22 = vld [vmem:[%s1949_s1 + $0x78] sm:$0xff] (!%p186_p3)   ;;  %v1556_v23 = vld [vmem:[%s1949_s1 + $0x30] sm:$0xff] (!%p186_p3)   ;;  %v1557_v28 = vld [vmem:[%s1949_s1 + $0x80] sm:$0xff] (!%p186_p3)   ;;  %v671_v61 = vadd.s32 (!%p186_p3), 8, %v670_v59  ;;  %v692_v62 = vand.u32 (!%p186_p3), 7, %v670_v59  ;;  %v672_v63 = vadd.s32 (!%p186_p3), 16, %v670_v59 }
   0xb   : > { %v1558_v33 = vld [vmem:[%s1949_s1 + $0x38] sm:$0xff] (!%p186_p3)   ;;  %v1559_v36 = vld [vmem:[%s1949_s1 + $0x88] sm:$0xff] (!%p186_p3)   ;;  %v1560_v40 = vld [vmem:[%s1949_s1 + $0x40] sm:$0xff] (!%p186_p3)   ;;  %v673_v0 = vadd.s32 (!%p186_p3), 24, %v670_v59  ;;  %v674_v2 = vadd.s32 (!%p186_p3), 32, %v670_v59 }
   0xc   : > { %379 = vmatpush1.bf16.msra.mxu0 (!%p186_p3), %v1545_v3  ;;  %477 = vmatpush1.bf16.msra.mxu1 (!%p186_p3), %v1546_v4  ;;  %v1565_v44 = vld [vmem:[%s1949_s1 + $0x90] sm:$0xff] (!%p186_p3)   ;;  %v1566_v46 = vld [vmem:[%s1949_s1 + $0x98] sm:$0xff] (!%p186_p3)   ;;  %v1567_v47 = vld [vmem:[%s1949_s1 + $0xa0] sm:$0xff] (!%p186_p3)   ;;  %v675_v3 = vadd.s32 (!%p186_p3), 40, %v670_v59  ;;  %v676_v4 = vadd.s32 (!%p186_p3), 48, %v670_v59  ;;  %vm880_vm3 = vcmp.eq.s32.totalorder (!%p186_p3), %v692_v62, %v1782_v60 }
   0xd   : > { %380 = vmatprep.subr.bf16.mxu0 (!%p186_p3), %v1600_v1  ;;  %478 = vmatprep.subr.bf16.mxu1 (!%p186_p3), %v1600_v1  ;;  %v1568_v48 = vld [vmem:[%s1949_s1 + $0xa8] sm:$0xff] (!%p186_p3)   ;;  %v1569_v49 = vld [vmem:[%s1949_s1 + $0xb0] sm:$0xff] (!%p186_p3)   ;;  %v1570_v50 = vld [vmem:[%s1949_s1 + $0xb8] sm:$0xff] (!%p186_p3)  }
   0xe   : > { %s1974_s15 = smov (!%p219_p4, %s1590_s15), 1  ;;  %v1571_v51 = vld [vmem:[%s1949_s1 + $0xc0] sm:$0xff]   ;;  %v1572_v52 = vld [vmem:[%s1949_s1 + $0xc8] sm:$0xff]   ;;  %v1573_v54 = vld [vmem:[%s1949_s1 + $0xd0] sm:$0xff]  }
   0xf   : > { %s1516_s9 = smul.u32 24, %s1974_s15  ;;  %s1212_s13 = sshll.u32 %s1974_s15, 1 }
  0x10   : > { %381 = vmatpush1.bf16.msra.mxu0 %v1547_v5  ;;  %479 = vmatpush1.bf16.msra.mxu1 %v1548_v6  ;;  %v677_v5 = vadd.s32 56, %v670_v59  ;;  %v699_v6 = vand.u32 7, %v671_v61 }
  0x11   : > { %382 = vmatprep.subr.bf16.mxu0 %v1600_v1  ;;  %480 = vmatprep.subr.bf16.mxu1 %v1600_v1  ;;  %s1690_s20 = scalar_lea.vmem %s1948_s0, %s1516_s9  ;;  %s1338_s9 = sshll.u32 %s1974_s15, 3 }
  0x12   : > { %v239_v12 = vld [vmem:[%s1690_s20] sm:$0xff]  ;;  %v1698_v13 = vld [vmem:[%s1690_s20 + $0x8] sm:$0xff]  ;;  %v259_v14 = vld [vmem:[%s1690_s20 + $0x10] sm:$0x11]  ;;  %vm881_vm4 = vcmp.eq.s32.totalorder %v699_v6, %v1782_v60  ;;  %s230_s12 = scalar_lea.vmem %s1951_s3, %s1338_s9 }
  0x13   : > { %v1232_v16 = vcombine.high %v239_v12, %v1698_v13  ;;  %v1234_v17 = vcombine.high %v259_v14, %v259_v14  ;;  %v1231_v18 = vcombine.low %v239_v12, %v1698_v13  ;;  %v1715_v24 = vcombine.low %v259_v14, %v259_v14  ;;  %v515_v35 = vld [vmem:[%s1690_s20] sm:$0xee]  ;;  %vm1788_vm7 = vmpackc.low %vm881_vm4, %vm880_vm3  ;;  %s236_s20 = scalar_lea.vmem %s1952_s4, %s1212_s13 }
  0x14   : > { %383 = vmatpush1.bf16.msra.mxu0 %v1549_v7  ;;  %481 = vmatpush1.bf16.msra.mxu1 %v1550_v8  ;;  %v1274_v39 = vcombine.high %v515_v35, %v1698_v13  ;;  %v1273_v53 = vcombine.low %v515_v35, %v1698_v13  ;;  %v713_v7 = vand.u32 7, %v673_v0  ;;  %v720_v8 = vand.u32 7, %v674_v2 }
  0x15   : > { %384 = vmatprep.subr.bf16.mxu0 %v1600_v1  ;;  %482 = vmatprep.subr.bf16.mxu1 %v1600_v1  ;;  %v306_v19 = vshrl.u32 %v1232_v16, 16  ;;  %v308_v20 = vshll.u32 %v1232_v16, 16  ;;  %v313_v21 = vshll.u32 %v1234_v17, 16  ;;  %v296_v25 = vshll.u32 %v1231_v18, 16 }
  0x16   : > { %1254 = vmatprep.mubr.msk.bf16.mxu1 %vm372_vm0, %v1232_v16  ;;  %v294_v30 = vshrl.u32 %v1231_v18, 16  ;;  %v301_v32 = vshll.u32 %v1715_v24, 16  ;;  %v544_v41 = vrot.slane %v1274_v39, 1  ;;  %v545_v42 = vrot.slane %v1234_v17, 1 }
  0x17   : > { %v310_v26 = vrot.slane %v308_v20, 1  ;;  %v315_v27 = vrot.slane %v313_v21, 1  ;;  %v298_v31 = vrot.slane %v296_v25, 1  ;;  %v541_v55 = vrot.slane %v1273_v53, 1 }
  0x18   : > { %385 = vmatpush1.bf16.msra.mxu0 %v1551_v9  ;;  %483 = vmatpush1.bf16.msra.mxu1 %v1552_v10  ;;  %v303_v38 = vrot.slane %v301_v32, 1  ;;  %v546_v45 = vsel %vm540_vm2, %v544_v41, %v545_v42  ;;  %v542_v56 = vrot.slane %v1715_v24, 1  ;;  %v727_v9 = vand.u32 7, %v675_v3 }
  0x19   : > { %386 = vmatprep.subr.bf16.mxu0 %v1600_v1  ;;  %484 = vmatprep.subr.bf16.mxu1 %v1600_v1  ;;  %v311_v29 = vor.u32 %v310_v26, %v306_v19  ;;  %v299_v37 = vor.u32 %v298_v31, %v294_v30  ;;  %vm883_vm6 = vcmp.eq.s32.totalorder %v713_v7, %v1782_v60  ;;  %v741_v12 = vand.u32 7, %v677_v5 }
  0x1a   : > { %v543_v57 = vsel %vm540_vm2, %v541_v55, %v542_v56  ;;  %v1601_v13 = vmov 1.0|1.0   ;;  %vm884_vm9 = vcmp.eq.s32.totalorder %v720_v8, %v1782_v60  ;;  %vm885_vm10 = vcmp.eq.s32.totalorder %v727_v9, %v1782_v60 }
  0x1b   : > { %v316_v34 = vsel %vm292_vm1, %v311_v29, %v315_v27  ;;  %v304_v43 = vsel %vm292_vm1, %v299_v37, %v303_v38  ;;  %v679_v16 = vadd.s32 72, %v670_v59  ;;  %vm1807_vm11 = vmpackc.low %vm885_vm10, %vm884_vm9  ;;  %vm887_vm13 = vcmp.eq.s32.totalorder %v741_v12, %v1782_v60 }
  0x1c   : > { %387 = vmatpush1.bf16.msra.mxu0 %v1553_v11  ;;  %485 = vmatpush1.bf16.msra.mxu1 %v1554_v15  ;;  %v734_v11 = vand.u32 7, %v676_v4  ;;  %v678_v15 = vadd.s32 64, %v670_v59  ;;  %v680_v20 = vadd.s32 80, %v670_v59  ;;  %v681_v21 = vadd.s32 88, %v670_v59 }
  0x1d   : > { %388 = vmatprep.subr.bf16.mxu0 %v1600_v1  ;;  %486 = vmatprep.subr.bf16.mxu1 %v1600_v1  ;;  %v755_v19 = vand.u32 7, %v679_v16  ;;  %v682_v27 = vadd.s32 96, %v670_v59  ;;  %v684_v31 = vadd.s32 112, %v670_v59  ;;  %v685_v32 = vadd.s32 120, %v670_v59 }
  0x1e   : > { %1244 = vmatprep.mubr.msk.bf16.mxu0 %vm372_vm0, %v316_v34  ;;  %vm886_vm12 = vcmp.eq.s32.totalorder %v734_v11, %v1782_v60  ;;  %v769_v24 = vand.u32 7, %v681_v21 }
  0x1f   : > { %vm1819_vm14 = vmpackc.low %vm887_vm13, %vm886_vm12  ;;  %v776_v29 = vand.u32 7, %v682_v27  ;;  %v790_v34 = vand.u32 7, %v684_v31  ;;  %v797_v35 = vand.u32 7, %v685_v32 }
  0x20   : > { %389 = vmatpush1.bf16.msra.mxu0 %v1555_v22  ;;  %487 = vmatpush1.bf16.msra.mxu1 %v1556_v23  ;;  %v762_v23 = vand.u32 7, %v680_v20  ;;  %vm891_vm3 = vcmp.eq.s32.totalorder %v769_v24, %v1782_v60 }
  0x21   : > { %390 = vmatprep.subr.bf16.mxu0 %v1600_v1  ;;  %488 = vmatprep.subr.bf16.mxu1 %v1600_v1  ;;  %vm894_vm10 = vcmp.eq.s32.totalorder %v790_v34, %v1782_v60  ;;  %vm895_vm12 = vcmp.eq.s32.totalorder %v797_v35, %v1782_v60 }
  0x22   : > { %vm890_vm2 = vcmp.eq.s32.totalorder %v762_v23, %v1782_v60  ;;  %vm1870_vm13 = vmpackc.low %vm895_vm12, %vm894_vm10 }
  0x23   : > { %vm1843_vm4 = vmpackc.low %vm891_vm3, %vm890_vm2 }
  0x24   : > { %391 = vmatpush1.bf16.msra.mxu0 %v1557_v28  ;;  %489 = vmatpush1.bf16.msra.mxu1 %v1558_v33  ;;  %v683_v28 = vadd.s32 104, %v670_v59 }
  0x25   : > { %392 = vmatprep.subr.bf16.mxu0 %v1600_v1  ;;  %490 = vmatprep.subr.bf16.mxu1 %v1600_v1 }
  0x26   : > { %v783_v30 = vand.u32 7, %v683_v28 }
  0x28   : > { %393 = vmatpush1.bf16.msra.mxu0 %v1559_v36  ;;  %491 = vmatpush1.bf16.msra.mxu1 %v1560_v40 }
  0x29   : > { %605 = vmatprep.subr.bf16.mxu0 %v1600_v1  ;;  %1453 = vmatprep.subr.msk.bf16.mxu1 %vm1788_vm7, %v1601_v13 }
  0x2b   : > { %409 = vmatmul.mubr.bf16.vlgmr.msra.gmra.mrb[0].mxu0 %v304_v43  ;;  %507 = vmatmul.mubr.bf16.vlgmr.msra.gmra.mrb[0].mxu1 %v1231_v18  ;;  %v748_v18 = vand.u32 7, %v678_v15 }
  0x2c   : > { %606 = vmatpush1.bf16.msra.mxu0 %v1565_v44  ;;  %1284 = vmatprep.mubr.msk.bf16.mxu0 %vm372_vm0, %v546_v45  ;;  %vm889_vm0 = vcmp.eq.s32.totalorder %v755_v19, %v1782_v60 }
  0x2d   : > { %607 = vmatprep.subr.bf16.mxu0 %v1600_v1  ;;  %1455 = vmatpush3.bf16.msk.msra.mxu1 %vm1788_vm7, %v1601_v13  ;;  %vm888_vm15 = vcmp.eq.s32.totalorder %v748_v18, %v1782_v60 }
  0x2e   : > { %vm1831_vm1 = vmpackc.low %vm889_vm0, %vm888_vm15 }
  0x30   : > { %608 = vmatpush1.bf16.msra.mxu0 %v1566_v46 }
  0x31   : > { %609 = vmatprep.subr.bf16.mxu0 %v1600_v1 }
  0x34   : > { %610 = vmatpush1.bf16.msra.mxu0 %v1567_v47 }
  0x35   : > { %611 = vmatprep.subr.bf16.mxu0 %v1600_v1 }
  0x38   : > { %612 = vmatpush1.bf16.msra.mxu0 %v1568_v48 }
  0x39   : > { %613 = vmatprep.subr.bf16.mxu0 %v1600_v1 }
  0x3c   : > { %614 = vmatpush1.bf16.msra.mxu0 %v1569_v49 }
  0x3d   : > { %615 = vmatprep.subr.bf16.mxu0 %v1600_v1 }
  0x40   : > { %616 = vmatpush1.bf16.msra.mxu0 %v1570_v50  ;;  %v1285_v50 = vld [vmem:[%s1950_s2] ss:$0 sm:$0xff] }
  0x41   : > { %617 = vmatprep.subr.bf16.mxu0 %v1600_v1 }
  0x44   : > { %618 = vmatpush1.bf16.msra.mxu0 %v1571_v51 }
  0x45   : > { %619 = vmatprep.subr.bf16.mxu0 %v1600_v1 }
  0x48   : > { %620 = vmatpush1.bf16.msra.mxu0 %v1572_v52 }
  0x49   : > { %621 = vmatprep.subr.bf16.mxu0 %v1600_v1  ;;  %v706_v1 = vand.u32 7, %v672_v63 }
  0x4b   : > { %vm882_vm5 = vcmp.eq.s32.totalorder %v706_v1, %v1782_v60 }
  0x4c   : > { %622 = vmatpush1.bf16.msra.mxu0 %v1573_v54  ;;  %vm1795_vm8 = vmpackc.low %vm883_vm6, %vm882_vm5  ;;  %vm892_vm5 = vcmp.eq.s32.totalorder %v776_v29, %v1782_v60  ;;  %vm893_vm6 = vcmp.eq.s32.totalorder %v783_v30, %v1782_v60 }
  0x4d   : > { %1457 = vmatprep.subr.msk.bf16.mxu1 %vm1795_vm8, %v1601_v13  ;;  %vm1858_vm9 = vmpackc.low %vm893_vm6, %vm892_vm5 }
  0x4e   : > { %1459 = vmatpush3.bf16.msk.msra.mxu1 %vm1795_vm8, %v1601_v13 }
  0x4f   : > { %638 = vmatmul.mubr.bf16.vlgmr.msra.gmra.mrb[4].mxu0 %v543_v57  ;;  %1461 = vmatprep.subr.msk.bf16.mxu1 %vm1807_vm11, %v1601_v13 }
  0x52   : > { %1463 = vmatpush3.bf16.msk.msra.mxu1 %vm1807_vm11, %v1601_v13 }
  0x53   : > { %1465 = vmatprep.subr.msk.bf16.mxu1 %vm1819_vm14, %v1601_v13 }
  0x56   : > { %1467 = vmatpush3.bf16.msk.msra.mxu1 %vm1819_vm14, %v1601_v13 }
  0x57   : > { %1469 = vmatprep.subr.msk.bf16.mxu1 %vm1831_vm1, %v1601_v13 }
  0x5a   : > { %1471 = vmatpush3.bf16.msk.msra.mxu1 %vm1831_vm1, %v1601_v13 }
  0x5b   : > { %1473 = vmatprep.subr.msk.bf16.mxu1 %vm1843_vm4, %v1601_v13 }
  0x5e   : > { %1475 = vmatpush3.bf16.msk.msra.mxu1 %vm1843_vm4, %v1601_v13 }
  0x5f   : > { %1477 = vmatprep.subr.msk.bf16.mxu1 %vm1858_vm9, %v1601_v13 }
  0x62   : > { %1479 = vmatpush3.bf16.msk.msra.mxu1 %vm1858_vm9, %v1601_v13 }
  0x63   : > { %1481 = vmatprep.subr.msk.bf16.mxu1 %vm1870_vm13, %v1601_v13 }
  0x66   : > { %1483 = vmatpush3.bf16.msk.msra.mxu1 %vm1870_vm13, %v1601_v13 }
  0x67   : > { %1485 = vmatprep.subr.msk.bf16.mxu1 %vm1788_vm7, %v1601_v13 }
  0xfe   : > { %v410_v37 = vpop.f32.mrb[0].mxu0  ;;  %v508_v38 = vpop.f32.mrb[0].mxu1 }
  0xff   : > { %v412_v39 = vpop.f32.mrb[1].mxu0  ;;  %v509_v40 = vadd.f32 %v508_v38, %v410_v37  ;;  %v510_v41 = vpop.f32.mrb[1].mxu1 }
 0x100   : > { %v413_v42 = vpop.f32.mrb[2].mxu0  ;;  %v511_v43 = vpop.f32.mrb[2].mxu1 }
 0x101   : > { %v415_v44 = vpop.f32.mrb[3].mxu0  ;;  %v512_v45 = vadd.f32 %v511_v43, %v413_v42  ;;  %v513_v46 = vpop.f32.mrb[3].mxu1 }
 0x122   : > { %v639_v47 = vpop.f32.mrb[4].mxu0 }
 0x123   : > { %v646_v48 = vadd.f32 %v639_v47, %v509_v40  ;;  %v641_v49 = vpop.f32.mrb[5].mxu0 }
 0x124   : > { %v642_v51 = vpop.f32.mrb[6].mxu0 }
 0x125   : > { %v647_v52 = vadd.f32 %v642_v51, %v512_v45  ;;  %v644_v53 = vpop.f32.mrb[7].mxu0  ;;  %v655_v54 = vadd.f32 %v1285_v50, %v646_v48 }
 0x127   : > { %v656_v55 = vadd.f32 %v1285_v50, %v647_v52 }
 0x129   : > { %v657_v56 = vpack.c.bf16 %v656_v55, %v655_v54 }
 0x12b   : > { %1345 = vst [vmem:[%s230_s12] sm:$0xff] %v657_v56   ;;  %v667_v57 = vunpack.c.l.bf16 %v657_v56  ;;  %v668_v58 = vunpack.c.h.bf16 %v657_v56 }
 0x12d   : > { %1414 = vmatprep.mubr.f32.mxu1 %v667_v57  ;;  %v1013_v59 = vmul.f32 %v667_v57, %v667_v57  ;;  %v1014_v60 = vmul.f32 %v668_v58, %v668_v58 }
 0x12e   : > { %1415 = vmatmul.mubr.f32.vlgmr.msra.gmra.mrb[4].mxu1 %v668_v58 }
 0x12f   : > { %1487 = vmatpush3.bf16.msk.msra.mxu1 %vm1788_vm7, %v1601_v13  ;;  %1449 = vmatprep.mubr.f32.mxu1 %v1013_v59  ;;  %vm1003_vm7 = vcmask 64512  }
 0x130   : > { %1489 = vmatprep.subr.msk.bf16.mxu1 %vm1795_vm8, %v1601_v13 }
 0x133   : > { %1491 = vmatpush3.bf16.msk.msra.mxu1 %vm1795_vm8, %v1601_v13  ;;  %vm1099_vm8 = vcmask 1040384  }
 0x134   : > { %1493 = vmatprep.subr.msk.bf16.mxu1 %vm1807_vm11, %v1601_v13 }
 0x137   : > { %1495 = vmatpush3.bf16.msk.msra.mxu1 %vm1807_vm11, %v1601_v13  ;;  %vm1101_vm11 = vcmask 58368  }
 0x138   : > { %1497 = vmatprep.subr.msk.bf16.mxu1 %vm1819_vm14, %v1601_v13 }
 0x13b   : > { %1499 = vmatpush3.bf16.msk.msra.mxu1 %vm1819_vm14, %v1601_v13 }
 0x13c   : > { %1501 = vmatprep.subr.msk.bf16.mxu1 %vm1831_vm1, %v1601_v13 }
 0x13f   : > { %1503 = vmatpush3.bf16.msk.msra.mxu1 %vm1831_vm1, %v1601_v13 }
 0x140   : > { %1505 = vmatprep.subr.msk.bf16.mxu1 %vm1843_vm4, %v1601_v13 }
 0x143   : > { %1507 = vmatpush3.bf16.msk.msra.mxu1 %vm1843_vm4, %v1601_v13 }
 0x144   : > { %1509 = vmatprep.subr.msk.bf16.mxu1 %vm1858_vm9, %v1601_v13 }
 0x147   : > { %1511 = vmatpush3.bf16.msk.msra.mxu1 %vm1858_vm9, %v1601_v13 }
 0x148   : > { %1513 = vmatprep.subr.msk.bf16.mxu1 %vm1870_vm13, %v1601_v13 }
 0x14b   : > { %1515 = vmatpush3.bf16.msk.msra.mxu1 %vm1870_vm13, %v1601_v13 }
 0x14e   : > { %1450 = vmatmul.mubr.f32.vlgmr.msra.gmra.mrb[6].mxu1 %v1014_v60 }
 0x201   : > { %v1416_v61 = vpop.f32.mrb[4].mxu1 }
 0x202   : > { %v1005_v62 = vsel %vm1003_vm7, %v1416_v61, 0.0  ;;  %v994_v63 = vpop.f32.mrb[5].mxu1 }
 0x203   : > { %v1004_v0 = vsel %vm1003_vm7, %v994_v63, 0.0 }
 0x204   : > { %v1006_v2 = vadd.f32 %v1005_v62, %v1004_v0 }
 0x206   : > { %v1007_v3 = vrot.slane %v1006_v2, 4 }
 0x208   : > { %v1008_v4 = vadd.f32 %v1007_v3, %v1006_v2 }
 0x20a   : > { %v1009_v8 = vrot.slane %v1008_v4, 2 }
 0x20c   : > { %v1010_v11 = vadd.f32 %v1009_v8, %v1008_v4 }
 0x20e   : > { %v1011_v14 = vrot.slane %v1010_v11, 1 }
 0x210   : > { %v1012_v17 = vadd.f32 %v1011_v14, %v1010_v11 }
 0x221   : > { %v1451_v5 = vpop.f32.mrb[6].mxu1 }
 0x222   : > { %v1091_v6 = vsel %vm1003_vm7, %v1451_v5, 0.0  ;;  %v1081_v1 = vpop.f32.mrb[7].mxu1 }
 0x223   : > { %v1090_v7 = vsel %vm1003_vm7, %v1081_v1, 0.0 }
 0x224   : > { %v1092_v9 = vadd.f32 %v1091_v6, %v1090_v7 }
 0x226   : > { %v1093_v10 = vrot.slane %v1092_v9, 4 }
 0x228   : > { %v1094_v12 = vadd.f32 %v1093_v10, %v1092_v9 }
 0x22a   : > { %v1095_v13 = vrot.slane %v1094_v12, 2 }
 0x22c   : > { %v1096_v15 = vadd.f32 %v1095_v13, %v1094_v12 }
 0x22e   : > { %v1097_v16 = vrot.slane %v1096_v15, 1 }
 0x230   : > { %v1098_v18 = vadd.f32 %v1097_v16, %v1096_v15 }
 0x232   : > { %v1100_v19 = vsel %vm1099_vm8, %v1012_v17, %v1098_v18 }
 0x233   : > { %1102 = vst.msk [vmem:[%s236_s20] sm:$0x3] %vm1101_vm11, %v1100_v19 }
 0x234 PF: > { %s15_s17 = sadd.s32 1, %s1598_s17   ;;  %s1969_s15 = smov %s1594_s16 }
 0x235   : > { %p12_p5 = scmp.ge.s32.totalorder %s15_s17, 4   ;;  %s1970_s16 = smov %s1972_s18 }
 0x237   :  { %14 = sbr.rel (!%p12_p5) target bundleno = 2 (0x2), region = 76 }

// kernel: encoder2d_forward.12
= control target key start
LH: loop header
LB: loop body
LE: loop exit
PB: predicated region body
PF: predicated region fallthrough
CT: control target
= control target key end

     0   :  { %s1103_s21 = smov 0   ;;  %s1105_s22 = smov 0   ;;  %s1288_s0 = inlined_call_operand.vmem [shape: bf16[2,1,1,18,144], index: 0, kind: input, shape index: {}]   ;;  %s1289_s1 = inlined_call_operand.vmem [shape: bf16[3,1,144,128], index: 1, kind: input, shape index: {}]   ;;  %s1290_s2 = inlined_call_operand.vmem [shape: f32[1,128], index: 2, kind: input, shape index: {}]   ;;  %s1291_s3 = inlined_call_operand.vmem [shape: f32[1,144], index: 3, kind: input, shape index: {}]   ;;  %s1292_s4 = inlined_call_operand.vmem [shape: f32[1,144], index: 4, kind: input, shape index: {}]   ;;  %s1293_s5 = inlined_call_operand.vmem [shape: bf16[2,16,128], index: 5, kind: input, shape index: {}]   ;;  %s1294_s6 = inlined_call_operand.vmem [shape: bf16[2,16,128], index: 6, kind: output, shape index: {}]  }
   0x1   :  { %s1107_s23 = smov 0  }
   0x2 LB: > { %s28_s24 = sadd.s32 1, %s1060_s22  ;;  %p894_p0 = scmp.ge.s32.totalorder %s1064_s23, 1  ;;  %s1064_s23 = sphi %s1107_s23, %s16_s23   ;;  %s1060_s22 = sphi %s1105_s22, %s1296_s22   ;;  %s1056_s21 = sphi %s1103_s21, %s1295_s21  }
   0x3   : > { %p30_p1 = scmp.ge.s32.totalorder %s28_s24, 2  ;;  %p244_p2 = scmp.lt.s32.totalorder %s1064_s23, 3 }
   0x5   : > { %s1298_s24 = smov (%p30_p1, %s28_s24), 0  ;;  %p245_p3 = pnand %p894_p0, %p244_p2 }
   0x6   : > { %v1015_v0 = vld [vmem:[%s1289_s1 + $0x48] sm:$0xff] (!%p245_p3)   ;;  %v1066_v1 = vmov (!%p245_p3), 0   ;;  %v1016_v2 = vld [vmem:[%s1289_s1] sm:$0xff] (!%p245_p3)   ;;  %v1017_v3 = vld [vmem:[%s1289_s1 + $0x50] sm:$0xff] (!%p245_p3)   ;;  %p283_p4 = scmp.lt.s32.totalorder (!%p245_p3), %s1056_s21, 1  ;;  %v315_v7 = vlaneseq (!%p245_p3)  ;;  %vm511_vm2 = vcmask (!%p245_p3), 130048  }
   0x7   : > { %248 = sbr.rel (%p245_p3) target bundleno = 304 (0x130), region = 44  ;;  %515 = vmatprep.subr.bf16.mxu0 (!%p245_p3), %v1066_v1  ;;  %612 = vmatprep.subr.bf16.mxu1 (!%p245_p3), %v1066_v1  ;;  %v1018_v4 = vld [vmem:[%s1289_s1 + $0x8] sm:$0xff] (!%p245_p3)   ;;  %v1019_v5 = vld [vmem:[%s1289_s1 + $0x58] sm:$0xff] (!%p245_p3)   ;;  %v1020_v6 = vld [vmem:[%s1289_s1 + $0x10] sm:$0xff] (!%p245_p3)   ;;  %vm676_vm4 = vcmask (!%p245_p3), 1046528   ;;  %vm1067_vm6 = vmmov (!%p245_p3), 1  }
   0x8   : > { %516 = vmatpush1.bf16.msra.mxu0 (!%p245_p3), %v1015_v0  ;;  %613 = vmatpush1.bf16.msra.mxu1 (!%p245_p3), %v1016_v2  ;;  %v1021_v8 = vld [vmem:[%s1289_s1 + $0x60] sm:$0xff] (!%p245_p3)   ;;  %v1022_v9 = vld [vmem:[%s1289_s1 + $0x18] sm:$0xff] (!%p245_p3)   ;;  %v1156_v10 = vshrl.u32 (!%p245_p3), %v315_v7, 7  ;;  %v1023_v11 = vld [vmem:[%s1289_s1 + $0x68] sm:$0xff] (!%p245_p3)   ;;  %vm431_vm5 = vsmask.f32 (!%p245_p3), 7424 }
   0x9   : > { %517 = vmatprep.subr.bf16.mxu0 (!%p245_p3), %v1066_v1  ;;  %614 = vmatprep.subr.bf16.mxu1 (!%p245_p3), %v1066_v1  ;;  %v1024_v12 = vld [vmem:[%s1289_s1 + $0x20] sm:$0xff] (!%p245_p3)   ;;  %v1025_v14 = vld [vmem:[%s1289_s1 + $0x70] sm:$0xff] (!%p245_p3)   ;;  %v1026_v20 = vld [vmem:[%s1289_s1 + $0x28] sm:$0xff] (!%p245_p3)  }
   0xa   : > { %v321_v13 = vsub.s32 (!%p245_p3), 1, %v1156_v10  ;;  %v317_v15 = vsub.s32 (!%p245_p3), 0, %v1156_v10  ;;  %v358_v19 = vadd.s32 (!%p245_p3), 16, %v1156_v10  ;;  %v313_v24 = vld [vmem:[%s1291_s3] sm:$0x3] (!%p245_p3)  ;;  %v1027_v33 = vld [vmem:[%s1289_s1 + $0x78] sm:$0xff] (!%p245_p3)  }
   0xb   : > { %v331_v25 = vld [vmem:[%s1292_s4] sm:$0x3] (!%p245_p3)  ;;  %v1028_v37 = vld [vmem:[%s1289_s1 + $0x30] sm:$0xff] (!%p245_p3)   ;;  %vm360_vm0 = vcmp.eq.s32.totalorder (!%p245_p3), %v1156_v10, 0  ;;  %v1030_v51 = vld [vmem:[%s1289_s1 + $0x38] sm:$0xff] (!%p245_p3)  }
   0xc   : > { %518 = vmatpush1.bf16.msra.mxu0 (!%p245_p3), %v1017_v3  ;;  %615 = vmatpush1.bf16.msra.mxu1 (!%p245_p3), %v1018_v4  ;;  %v322_v27 = vrot.slane (!%p245_p3), %v313_v24, %v321_v13  ;;  %v340_v28 = vrot.slane (!%p245_p3), %v331_v25, %v321_v13  ;;  %v318_v31 = vrot.slane (!%p245_p3), %v313_v24, %v317_v15  ;;  %vm371_vm1 = vcmp.eq.s32.totalorder (!%p245_p3), %v358_v19, 17  ;;  %v1029_v47 = vld [vmem:[%s1289_s1 + $0x80] sm:$0xff] (!%p245_p3)   ;;  %v1031_v61 = vld [vmem:[%s1289_s1 + $0x88] sm:$0xff] (!%p245_p3)   ;;  %vm938_vm3 = vmneg (!%p245_p3), %vm360_vm0 }
   0xd   : > { %519 = vmatprep.subr.bf16.mxu0 (!%p245_p3), %v1066_v1  ;;  %616 = vmatprep.subr.bf16.mxu1 (!%p245_p3), %v1066_v1  ;;  %v336_v32 = vrot.slane (!%p245_p3), %v331_v25, %v317_v15  ;;  %v1032_v0 = vld [vmem:[%s1289_s1 + $0x40] sm:$0xff] (!%p245_p3)   ;;  %vm939_vm7 = vmpackc.low (!%p245_p3), %vm1067_vm6, %vm938_vm3  ;;  %v1033_v10 = vld [vmem:[%s1289_s1 + $0x90] sm:$0xff] (!%p245_p3)  }
   0xe   : > { %s1300_s21 = smov (!%p283_p4, %s1056_s21), 1  ;;  %v1037_v24 = vld [vmem:[%s1289_s1 + $0xb0] sm:$0xff]   ;;  %v1038_v25 = vld [vmem:[%s1289_s1 + $0xb8] sm:$0xff]  }
   0xf   : > { %s988_s17 = smul.u32 24, %s1300_s21  ;;  %s975_s27 = sshll.u32 %s1300_s21, 3 }
  0x10   : > { %520 = vmatpush1.bf16.msra.mxu0 %v1019_v5  ;;  %617 = vmatpush1.bf16.msra.mxu1 %v1020_v6  ;;  %s294_s30 = scalar_lea.vmem %s1293_s5, %s975_s27  ;;  %s301_s10 = scalar_lea.vmem %s1294_s6, %s975_s27 }
  0x11   : > { %521 = vmatprep.subr.bf16.mxu0 %v1066_v1  ;;  %618 = vmatprep.subr.bf16.mxu1 %v1066_v1  ;;  %s287_s28 = scalar_lea.vmem %s1288_s0, %s988_s17 }
  0x12   : > { %v304_v16 = vld [vmem:[%s287_s28] sm:$0xff]  ;;  %v305_v17 = vld [vmem:[%s287_s28 + $0x8] sm:$0xff]  ;;  %v306_v18 = vld [vmem:[%s287_s28 + $0x10] sm:$0x11] }
  0x13   : > { %v308_v21 = vunpack.c.h.bf16 %v304_v16  ;;  %v310_v22 = vunpack.c.h.bf16 %v305_v17  ;;  %v312_v23 = vunpack.c.h.bf16 %v306_v18  ;;  %v307_v26 = vunpack.c.l.bf16 %v304_v16 }
  0x14   : > { %522 = vmatpush1.bf16.msra.mxu0 %v1021_v8  ;;  %619 = vmatpush1.bf16.msra.mxu1 %v1022_v9  ;;  %v309_v29 = vunpack.c.l.bf16 %v305_v17  ;;  %v311_v30 = vunpack.c.l.bf16 %v306_v18 }
  0x15   : > { %523 = vmatprep.subr.bf16.mxu0 %v1066_v1  ;;  %620 = vmatprep.subr.bf16.mxu1 %v1066_v1  ;;  %v326_v34 = vmul.f32 %v322_v27, %v308_v21  ;;  %v328_v35 = vmul.f32 %v322_v27, %v310_v22  ;;  %v330_v36 = vmul.f32 %v322_v27, %v312_v23  ;;  %v1034_v21 = vld [vmem:[%s1289_s1 + $0x98] sm:$0xff]   ;;  %v1035_v22 = vld [vmem:[%s1289_s1 + $0xa0] sm:$0xff]   ;;  %v1036_v23 = vld [vmem:[%s1289_s1 + $0xa8] sm:$0xff]  }
  0x16   : > { %v325_v38 = vmul.f32 %v318_v31, %v307_v26  ;;  %v327_v39 = vmul.f32 %v318_v31, %v309_v29  ;;  %v329_v40 = vmul.f32 %v318_v31, %v311_v30  ;;  %v1039_v26 = vld [vmem:[%s1289_s1 + $0xc0] sm:$0xff]   ;;  %v1040_v27 = vld [vmem:[%s1289_s1 + $0xc8] sm:$0xff]  }
  0x17   : > { %v344_v41 = vadd.f32 %v340_v28, %v326_v34  ;;  %v346_v42 = vadd.f32 %v340_v28, %v328_v35  ;;  %v348_v43 = vadd.f32 %v340_v28, %v330_v36  ;;  %v1041_v28 = vld [vmem:[%s1289_s1 + $0xd0] sm:$0xff]  }
  0x18   : > { %524 = vmatpush1.bf16.msra.mxu0 %v1023_v11  ;;  %621 = vmatpush1.bf16.msra.mxu1 %v1024_v12  ;;  %v343_v44 = vadd.f32 %v336_v32, %v325_v38  ;;  %v345_v45 = vadd.f32 %v336_v32, %v327_v39  ;;  %v347_v46 = vadd.f32 %v336_v32, %v329_v40 }
  0x19   : > { %525 = vmatprep.subr.bf16.mxu0 %v1066_v1  ;;  %622 = vmatprep.subr.bf16.mxu1 %v1066_v1  ;;  %v350_v48 = vmax.f32 %v344_v41, 0.0  ;;  %v352_v49 = vmax.f32 %v346_v42, 0.0  ;;  %v354_v50 = vmax.f32 %v348_v43, 0.0  ;;  %v970_v43 = vld [vmem:[%s1290_s2] ss:$0 sm:$0xff] }
  0x1a   : > { %v349_v52 = vmax.f32 %v343_v44, 0.0  ;;  %v351_v53 = vmax.f32 %v345_v45, 0.0  ;;  %v353_v54 = vmax.f32 %v347_v46, 0.0 }
  0x1b   : > { %v385_v55 = vsel %vm360_vm0, 0.0, %v350_v48  ;;  %v389_v56 = vsel %vm371_vm1, 0.0, %v354_v50 }
  0x1c   : > { %526 = vmatpush1.bf16.msra.mxu0 %v1025_v14  ;;  %623 = vmatpush1.bf16.msra.mxu1 %v1026_v20  ;;  %v391_v57 = vpack.c.bf16 %v352_v49, %v385_v55  ;;  %v393_v58 = vpack.c.bf16 %v389_v56, %v389_v56  ;;  %v384_v59 = vsel %vm360_vm0, 0.0, %v349_v52  ;;  %v388_v60 = vsel %vm371_vm1, 0.0, %v353_v54 }
  0x1d   : > { %527 = vmatprep.subr.bf16.mxu0 %v1066_v1  ;;  %624 = vmatprep.subr.bf16.mxu1 %v1066_v1  ;;  %v1212_v62 = vpack.c.bf16 %v351_v53, %v384_v59  ;;  %v1214_v63 = vpack.c.bf16 %v388_v60, %v388_v60  ;;  %v940_v15 = vpack.c.bf16 %v351_v53, %v349_v52 }
  0x1e   : > { %v445_v2 = vshrl.u32 %v391_v57, 16  ;;  %v447_v3 = vshll.u32 %v391_v57, 16  ;;  %v452_v4 = vshll.u32 %v393_v58, 16  ;;  %937 = vmatprep.mubr.msk.bf16.mxu1 %vm511_vm2, %v391_v57  ;;  %v680_v11 = vrot.slane %v391_v57, 1 }
  0x1f   : > { %v433_v5 = vshrl.u32 %v1212_v62, 16  ;;  %v435_v6 = vshll.u32 %v1212_v62, 16  ;;  %v440_v7 = vshll.u32 %v1214_v63, 16  ;;  %v681_v12 = vrot.slane %v393_v58, 1 }
  0x20   : > { %528 = vmatpush1.bf16.msra.mxu0 %v1027_v33  ;;  %625 = vmatpush1.bf16.msra.mxu1 %v1028_v37  ;;  %v449_v8 = vrot.slane %v447_v3, 1  ;;  %v454_v9 = vrot.slane %v452_v4, 1  ;;  %v677_v29 = vrot.slane %v1212_v62, 1  ;;  %v678_v30 = vrot.slane %v1214_v63, 1 }
  0x21   : > { %529 = vmatprep.subr.bf16.mxu0 %v1066_v1  ;;  %626 = vmatprep.subr.bf16.mxu1 %v1066_v1  ;;  %v437_v13 = vrot.slane %v435_v6, 1  ;;  %v442_v14 = vrot.slane %v440_v7, 1  ;;  %v682_v19 = vsel %vm676_vm4, %v680_v11, %v681_v12 }
  0x22   : > { %v450_v16 = vor.u32 %v449_v8, %v445_v2  ;;  %v679_v31 = vsel %vm676_vm4, %v677_v29, %v678_v30 }
  0x23   : > { %v438_v17 = vor.u32 %v437_v13, %v433_v5 }
  0x24   : > { %530 = vmatpush1.bf16.msra.mxu0 %v1029_v47  ;;  %627 = vmatpush1.bf16.msra.mxu1 %v1030_v51  ;;  %v455_v18 = vsel %vm431_vm5, %v450_v16, %v454_v9 }
  0x25   : > { %531 = vmatprep.subr.bf16.mxu0 %v1066_v1  ;;  %628 = vmatprep.subr.bf16.mxu1 %v1066_v1  ;;  %v443_v20 = vsel %vm431_vm5, %v438_v17, %v442_v14 }
  0x26   : > { %927 = vmatprep.mubr.msk.bf16.mxu0 %vm511_vm2, %v455_v18 }
  0x28   : > { %532 = vmatpush1.bf16.msra.mxu0 %v1031_v61  ;;  %629 = vmatpush1.bf16.msra.mxu1 %v1032_v0 }
  0x29   : > { %741 = vmatprep.subr.bf16.mxu0 %v1066_v1 }
  0x2b   : > { %941 = vmatmul.mubr.msk.bf16.vlgmr.msra.gmra.mrb[0].mxu1 %vm939_vm7, %v940_v15  ;;  %548 = vmatmul.mubr.bf16.vlgmr.msra.gmra.mrb[0].mxu0 %v443_v20 }
  0x2c   : > { %742 = vmatpush1.bf16.msra.mxu0 %v1033_v10  ;;  %969 = vmatprep.mubr.msk.bf16.mxu0 %vm511_vm2, %v682_v19 }
  0x2d   : > { %743 = vmatprep.subr.bf16.mxu0 %v1066_v1 }
  0x30   : > { %744 = vmatpush1.bf16.msra.mxu0 %v1034_v21 }
  0x31   : > { %745 = vmatprep.subr.bf16.mxu0 %v1066_v1 }
  0x34   : > { %746 = vmatpush1.bf16.msra.mxu0 %v1035_v22 }
  0x35   : > { %747 = vmatprep.subr.bf16.mxu0 %v1066_v1 }
  0x38   : > { %748 = vmatpush1.bf16.msra.mxu0 %v1036_v23 }
  0x39   : > { %749 = vmatprep.subr.bf16.mxu0 %v1066_v1 }
  0x3c   : > { %750 = vmatpush1.bf16.msra.mxu0 %v1037_v24 }
  0x3d   : > { %751 = vmatprep.subr.bf16.mxu0 %v1066_v1 }
  0x40   : > { %752 = vmatpush1.bf16.msra.mxu0 %v1038_v25 }
  0x41   : > { %753 = vmatprep.subr.bf16.mxu0 %v1066_v1 }
  0x44   : > { %754 = vmatpush1.bf16.msra.mxu0 %v1039_v26 }
  0x45   : > { %755 = vmatprep.subr.bf16.mxu0 %v1066_v1 }
  0x48   : > { %756 = vmatpush1.bf16.msra.mxu0 %v1040_v27 }
  0x49   : > { %757 = vmatprep.subr.bf16.mxu0 %v1066_v1  ;;  %v980_v1 = vld [vmem:[%s294_s30] sm:$0xff]  }
  0x4a   : > { %v981_v45 = vunpack.c.l.bf16 %v980_v1  ;;  %v982_v50 = vunpack.c.h.bf16 %v980_v1 }
  0x4c   : > { %758 = vmatpush1.bf16.msra.mxu0 %v1041_v28 }
  0x4f   : > { %774 = vmatmul.mubr.bf16.vlgmr.msra.gmra.mrb[4].mxu0 %v679_v31 }
  0xfe   : > { %v646_v32 = vpop.f32.mrb[0].mxu1  ;;  %v549_v33 = vpop.f32.mrb[0].mxu0 }
  0xff   : > { %v648_v34 = vpop.f32.mrb[1].mxu1  ;;  %v647_v35 = vadd.f32 %v646_v32, %v549_v33  ;;  %v551_v36 = vpop.f32.mrb[1].mxu0 }
 0x100   : > { %v649_v37 = vpop.f32.mrb[2].mxu1  ;;  %v552_v38 = vpop.f32.mrb[2].mxu0 }
 0x101   : > { %v651_v39 = vpop.f32.mrb[3].mxu1  ;;  %v650_v40 = vadd.f32 %v649_v37, %v552_v38  ;;  %v554_v41 = vpop.f32.mrb[3].mxu0 }
 0x122   : > { %v775_v42 = vpop.f32.mrb[4].mxu0 }
 0x123   : > { %v782_v44 = vadd.f32 %v775_v42, %v647_v35  ;;  %v777_v46 = vpop.f32.mrb[5].mxu0 }
 0x124   : > { %v778_v47 = vpop.f32.mrb[6].mxu0 }
 0x125   : > { %v791_v48 = vadd.f32 %v970_v43, %v782_v44  ;;  %v783_v49 = vadd.f32 %v778_v47, %v650_v40  ;;  %v780_v51 = vpop.f32.mrb[7].mxu0 }
 0x127   : > { %v797_v52 = vadd.f32 %v981_v45, %v791_v48  ;;  %v792_v53 = vadd.f32 %v970_v43, %v783_v49 }
 0x129   : > { %v798_v54 = vadd.f32 %v982_v50, %v792_v53  ;;  %v799_v55 = vmax.f32 %v797_v52, 0.0 }
 0x12b   : > { %v800_v56 = vmax.f32 %v798_v54, 0.0 }
 0x12d   : > { %v986_v57 = vpack.c.bf16 %v800_v56, %v799_v55 }
 0x12f   : > { %987 = vst [vmem:[%s301_s10] sm:$0xff] %v986_v57  }
 0x130 PF: > { %s16_s23 = sadd.s32 1, %s1064_s23   ;;  %s1295_s21 = smov %s1060_s22 }
 0x131   : > { %p13_p5 = scmp.ge.s32.totalorder %s16_s23, 4   ;;  %s1296_s22 = smov %s1298_s24 }
 0x133   :  { %15 = sbr.rel (!%p13_p5) target bundleno = 2 (0x2), region = 79 }

// kernel: encoder2d_forward.11
= control target key start
LH: loop header
LB: loop body
LE: loop exit
PB: predicated region body
PF: predicated region fallthrough
CT: control target
= control target key end

     0   :  { %s1752_s21 = smov 0   ;;  %s1754_s22 = smov 0   ;;  %s2107_s0 = inlined_call_operand.vmem [shape: bf16[2,1,1,18,144], index: 0, kind: input, shape index: {}]   ;;  %s2108_s1 = inlined_call_operand.vmem [shape: bf16[3,1,144,128], index: 1, kind: input, shape index: {}]   ;;  %s2109_s2 = inlined_call_operand.vmem [shape: f32[1,128], index: 2, kind: input, shape index: {}]   ;;  %s2110_s3 = inlined_call_operand.vmem [shape: f32[1,144], index: 3, kind: input, shape index: {}]   ;;  %s2111_s4 = inlined_call_operand.vmem [shape: f32[1,144], index: 4, kind: input, shape index: {}]   ;;  %s2112_s5 = inlined_call_operand.vmem [shape: bf16[2,16,128], index: 5, kind: output, shape index: {0}]   ;;  %s2113_s6 = inlined_call_operand.vmem [shape: f32[2,2,8], index: 6, kind: output, shape index: {1}]  }
   0x1   :  { %s1756_s23 = smov 0  }
   0x2 LB: > { %s29_s24 = sadd.s32 1, %s1708_s22  ;;  %p1329_p0 = scmp.ge.s32.totalorder %s1712_s23, 1  ;;  %s1712_s23 = sphi %s1756_s23, %s17_s23   ;;  %s1708_s22 = sphi %s1754_s22, %s2131_s22   ;;  %s1704_s21 = sphi %s1752_s21, %s2130_s21  }
   0x3   : > { %p31_p1 = scmp.ge.s32.totalorder %s29_s24, 2  ;;  %p235_p2 = scmp.lt.s32.totalorder %s1712_s23, 3 }
   0x5   : > { %s2133_s24 = smov (%p31_p1, %s29_s24), 0  ;;  %p236_p3 = pnand %p1329_p0, %p235_p2 }
   0x6   : > { %v1663_v0 = vld [vmem:[%s2108_s1 + $0x48] sm:$0xff] (!%p236_p3)   ;;  %v1714_v1 = vmov (!%p236_p3), 0   ;;  %v1664_v2 = vld [vmem:[%s2108_s1] sm:$0xff] (!%p236_p3)   ;;  %v1665_v3 = vld [vmem:[%s2108_s1 + $0x50] sm:$0xff] (!%p236_p3)   ;;  %p273_p4 = scmp.lt.s32.totalorder (!%p236_p3), %s1704_s21, 1  ;;  %v304_v7 = vlaneseq (!%p236_p3)  ;;  %vm500_vm2 = vcmask (!%p236_p3), 130048  }
   0x7   : > { %239 = sbr.rel (%p236_p3) target bundleno = 564 (0x234), region = 40  ;;  %504 = vmatprep.subr.bf16.mxu0 (!%p236_p3), %v1714_v1  ;;  %601 = vmatprep.subr.bf16.mxu1 (!%p236_p3), %v1714_v1  ;;  %v1666_v4 = vld [vmem:[%s2108_s1 + $0x8] sm:$0xff] (!%p236_p3)   ;;  %v1667_v5 = vld [vmem:[%s2108_s1 + $0x58] sm:$0xff] (!%p236_p3)   ;;  %v1668_v6 = vld [vmem:[%s2108_s1 + $0x10] sm:$0xff] (!%p236_p3)   ;;  %vm665_vm4 = vcmask (!%p236_p3), 1046528   ;;  %vm1715_vm6 = vmmov (!%p236_p3), 1  }
   0x8   : > { %505 = vmatpush1.bf16.msra.mxu0 (!%p236_p3), %v1663_v0  ;;  %602 = vmatpush1.bf16.msra.mxu1 (!%p236_p3), %v1664_v2  ;;  %v1669_v8 = vld [vmem:[%s2108_s1 + $0x60] sm:$0xff] (!%p236_p3)   ;;  %v1670_v9 = vld [vmem:[%s2108_s1 + $0x18] sm:$0xff] (!%p236_p3)   ;;  %v1806_v10 = vshrl.u32 (!%p236_p3), %v304_v7, 7  ;;  %v1671_v11 = vld [vmem:[%s2108_s1 + $0x68] sm:$0xff] (!%p236_p3)   ;;  %vm420_vm5 = vsmask.f32 (!%p236_p3), 7424 }
   0x9   : > { %506 = vmatprep.subr.bf16.mxu0 (!%p236_p3), %v1714_v1  ;;  %603 = vmatprep.subr.bf16.mxu1 (!%p236_p3), %v1714_v1  ;;  %v1672_v12 = vld [vmem:[%s2108_s1 + $0x20] sm:$0xff] (!%p236_p3)   ;;  %v1673_v14 = vld [vmem:[%s2108_s1 + $0x70] sm:$0xff] (!%p236_p3)   ;;  %v1674_v20 = vld [vmem:[%s2108_s1 + $0x28] sm:$0xff] (!%p236_p3)  }
   0xa   : > { %v310_v13 = vsub.s32 (!%p236_p3), 1, %v1806_v10  ;;  %v306_v15 = vsub.s32 (!%p236_p3), 0, %v1806_v10  ;;  %v1825_v19 = vadd.s32 (!%p236_p3), 16, %v1806_v10  ;;  %v302_v24 = vld [vmem:[%s2110_s3] sm:$0x3] (!%p236_p3)  ;;  %v1675_v33 = vld [vmem:[%s2108_s1 + $0x78] sm:$0xff] (!%p236_p3)  }
   0xb   : > { %v320_v25 = vld [vmem:[%s2111_s4] sm:$0x3] (!%p236_p3)  ;;  %v1676_v37 = vld [vmem:[%s2108_s1 + $0x30] sm:$0xff] (!%p236_p3)   ;;  %vm349_vm0 = vcmp.eq.s32.totalorder (!%p236_p3), %v1806_v10, 0  ;;  %v1678_v51 = vld [vmem:[%s2108_s1 + $0x38] sm:$0xff] (!%p236_p3)  }
   0xc   : > { %507 = vmatpush1.bf16.msra.mxu0 (!%p236_p3), %v1665_v3  ;;  %604 = vmatpush1.bf16.msra.mxu1 (!%p236_p3), %v1666_v4  ;;  %v311_v27 = vrot.slane (!%p236_p3), %v302_v24, %v310_v13  ;;  %v329_v28 = vrot.slane (!%p236_p3), %v320_v25, %v310_v13  ;;  %v307_v31 = vrot.slane (!%p236_p3), %v302_v24, %v306_v15  ;;  %vm360_vm1 = vcmp.eq.s32.totalorder (!%p236_p3), %v1825_v19, 17  ;;  %v1677_v47 = vld [vmem:[%s2108_s1 + $0x80] sm:$0xff] (!%p236_p3)   ;;  %v1679_v61 = vld [vmem:[%s2108_s1 + $0x88] sm:$0xff] (!%p236_p3)   ;;  %vm1372_vm3 = vmneg (!%p236_p3), %vm349_vm0 }
   0xd   : > { %508 = vmatprep.subr.bf16.mxu0 (!%p236_p3), %v1714_v1  ;;  %605 = vmatprep.subr.bf16.mxu1 (!%p236_p3), %v1714_v1  ;;  %v325_v32 = vrot.slane (!%p236_p3), %v320_v25, %v306_v15  ;;  %v1680_v0 = vld [vmem:[%s2108_s1 + $0x40] sm:$0xff] (!%p236_p3)   ;;  %vm1373_vm7 = vmpackc.low (!%p236_p3), %vm1715_vm6, %vm1372_vm3  ;;  %v1682_v24 = vld [vmem:[%s2108_s1 + $0x98] sm:$0xff] (!%p236_p3)  }
   0xe   : > { %s2135_s21 = smov (!%p273_p4, %s1704_s21), 1  ;;  %v1683_v25 = vld [vmem:[%s2108_s1 + $0xa0] sm:$0xff]  }
   0xf   : > { %s1635_s17 = smul.u32 24, %s2135_s21  ;;  %s1457_s29 = sshll.u32 %s2135_s21, 3 }
  0x10   : > { %509 = vmatpush1.bf16.msra.mxu0 %v1667_v5  ;;  %606 = vmatpush1.bf16.msra.mxu1 %v1668_v6  ;;  %s284_s8 = scalar_lea.vmem %s2112_s5, %s1457_s29  ;;  %s1333_s9 = sshll.u32 %s2135_s21, 1 }
  0x11   : > { %510 = vmatprep.subr.bf16.mxu0 %v1714_v1  ;;  %607 = vmatprep.subr.bf16.mxu1 %v1714_v1  ;;  %s277_s28 = scalar_lea.vmem %s2107_s0, %s1635_s17  ;;  %s290_s12 = scalar_lea.vmem %s2113_s6, %s1333_s9 }
  0x12   : > { %v293_v16 = vld [vmem:[%s277_s28] sm:$0xff]  ;;  %v294_v17 = vld [vmem:[%s277_s28 + $0x8] sm:$0xff]  ;;  %v295_v18 = vld [vmem:[%s277_s28 + $0x10] sm:$0x11] }
  0x13   : > { %v297_v21 = vunpack.c.h.bf16 %v293_v16  ;;  %v299_v22 = vunpack.c.h.bf16 %v294_v17  ;;  %v301_v23 = vunpack.c.h.bf16 %v295_v18  ;;  %v296_v26 = vunpack.c.l.bf16 %v293_v16 }
  0x14   : > { %511 = vmatpush1.bf16.msra.mxu0 %v1669_v8  ;;  %608 = vmatpush1.bf16.msra.mxu1 %v1670_v9  ;;  %v298_v29 = vunpack.c.l.bf16 %v294_v17  ;;  %v300_v30 = vunpack.c.l.bf16 %v295_v18 }
  0x15   : > { %512 = vmatprep.subr.bf16.mxu0 %v1714_v1  ;;  %609 = vmatprep.subr.bf16.mxu1 %v1714_v1  ;;  %v315_v34 = vmul.f32 %v311_v27, %v297_v21  ;;  %v317_v35 = vmul.f32 %v311_v27, %v299_v22  ;;  %v319_v36 = vmul.f32 %v311_v27, %v301_v23  ;;  %v1685_v27 = vld [vmem:[%s2108_s1 + $0xb0] sm:$0xff]  }
  0x16   : > { %v314_v38 = vmul.f32 %v307_v31, %v296_v26  ;;  %v316_v39 = vmul.f32 %v307_v31, %v298_v29  ;;  %v318_v40 = vmul.f32 %v307_v31, %v300_v30  ;;  %v1684_v26 = vld [vmem:[%s2108_s1 + $0xa8] sm:$0xff]   ;;  %v1687_v29 = vld [vmem:[%s2108_s1 + $0xc0] sm:$0xff]   ;;  %v1689_v31 = vld [vmem:[%s2108_s1 + $0xd0] sm:$0xff]  }
  0x17   : > { %v333_v41 = vadd.f32 %v329_v28, %v315_v34  ;;  %v335_v42 = vadd.f32 %v329_v28, %v317_v35  ;;  %v337_v43 = vadd.f32 %v329_v28, %v319_v36  ;;  %v1686_v28 = vld [vmem:[%s2108_s1 + $0xb8] sm:$0xff]   ;;  %v1688_v30 = vld [vmem:[%s2108_s1 + $0xc8] sm:$0xff]   ;;  %v346_v35 = vadd.s32 8, %v1806_v10 }
  0x18   : > { %513 = vmatpush1.bf16.msra.mxu0 %v1671_v11  ;;  %610 = vmatpush1.bf16.msra.mxu1 %v1672_v12  ;;  %v332_v44 = vadd.f32 %v325_v32, %v314_v38  ;;  %v334_v45 = vadd.f32 %v325_v32, %v316_v39  ;;  %v336_v46 = vadd.f32 %v325_v32, %v318_v40  ;;  %v1926_v36 = vand.u32 127, %v304_v7 }
  0x19   : > { %514 = vmatprep.subr.bf16.mxu0 %v1714_v1  ;;  %611 = vmatprep.subr.bf16.mxu1 %v1714_v1  ;;  %v339_v48 = vmax.f32 %v333_v41, 0.0  ;;  %v341_v49 = vmax.f32 %v335_v42, 0.0  ;;  %v343_v50 = vmax.f32 %v337_v43, 0.0  ;;  %v794_v38 = vadd.s32 24, %v1806_v10 }
  0x1a   : > { %v338_v52 = vmax.f32 %v332_v44, 0.0  ;;  %v340_v53 = vmax.f32 %v334_v45, 0.0  ;;  %v342_v54 = vmax.f32 %v336_v46, 0.0  ;;  %v827_v39 = vand.u32 7, %v1825_v19 }
  0x1b   : > { %v374_v55 = vsel %vm349_vm0, 0.0, %v339_v48  ;;  %v378_v56 = vsel %vm360_vm1, 0.0, %v343_v50  ;;  %v795_v40 = vadd.s32 32, %v1806_v10  ;;  %v796_v41 = vadd.s32 40, %v1806_v10 }
  0x1c   : > { %515 = vmatpush1.bf16.msra.mxu0 %v1673_v14  ;;  %612 = vmatpush1.bf16.msra.mxu1 %v1674_v20  ;;  %v380_v57 = vpack.c.bf16 %v341_v49, %v374_v55  ;;  %v382_v58 = vpack.c.bf16 %v378_v56, %v378_v56  ;;  %v373_v59 = vsel %vm349_vm0, 0.0, %v338_v52  ;;  %v377_v60 = vsel %vm360_vm1, 0.0, %v342_v54  ;;  %v1681_v20 = vld [vmem:[%s2108_s1 + $0x90] sm:$0xff]  }
  0x1d   : > { %516 = vmatprep.subr.bf16.mxu0 %v1714_v1  ;;  %613 = vmatprep.subr.bf16.mxu1 %v1714_v1  ;;  %v1867_v62 = vpack.c.bf16 %v340_v53, %v373_v59  ;;  %v1869_v63 = vpack.c.bf16 %v377_v60, %v377_v60  ;;  %v1374_v16 = vpack.c.bf16 %v340_v53, %v338_v52  ;;  %v797_v42 = vadd.s32 48, %v1806_v10 }
  0x1e   : > { %v434_v2 = vshrl.u32 %v380_v57, 16  ;;  %v436_v3 = vshll.u32 %v380_v57, 16  ;;  %v441_v4 = vshll.u32 %v382_v58, 16  ;;  %1371 = vmatprep.mubr.msk.bf16.mxu1 %vm500_vm2, %v380_v57  ;;  %v669_v12 = vrot.slane %v380_v57, 1 }
  0x1f   : > { %v422_v5 = vshrl.u32 %v1867_v62, 16  ;;  %v424_v6 = vshll.u32 %v1867_v62, 16  ;;  %v429_v8 = vshll.u32 %v1869_v63, 16  ;;  %v670_v13 = vrot.slane %v382_v58, 1 }
  0x20   : > { %517 = vmatpush1.bf16.msra.mxu0 %v1675_v33  ;;  %614 = vmatpush1.bf16.msra.mxu1 %v1676_v37  ;;  %v438_v9 = vrot.slane %v436_v3, 1  ;;  %v443_v11 = vrot.slane %v441_v4, 1  ;;  %v666_v32 = vrot.slane %v1867_v62, 1  ;;  %v667_v33 = vrot.slane %v1869_v63, 1 }
  0x21   : > { %518 = vmatprep.subr.bf16.mxu0 %v1714_v1  ;;  %615 = vmatprep.subr.bf16.mxu1 %v1714_v1  ;;  %v426_v14 = vrot.slane %v424_v6, 1  ;;  %v431_v15 = vrot.slane %v429_v8, 1  ;;  %v671_v22 = vsel %vm665_vm4, %v669_v12, %v670_v13  ;;  %v813_v37 = vand.u32 7, %v1806_v10 }
  0x22   : > { %v439_v17 = vor.u32 %v438_v9, %v434_v2  ;;  %v668_v34 = vsel %vm665_vm4, %v666_v32, %v667_v33  ;;  %v798_v43 = vadd.s32 56, %v1806_v10  ;;  %v834_v44 = vand.u32 7, %v794_v38 }
  0x23   : > { %v427_v18 = vor.u32 %v426_v14, %v422_v5  ;;  %vm1001_vm8 = vcmp.eq.s32.totalorder %v813_v37, %v1926_v36  ;;  %vm1003_vm9 = vcmp.eq.s32.totalorder %v827_v39, %v1926_v36  ;;  %v841_v7 = vand.u32 7, %v795_v40 }
  0x24   : > { %519 = vmatpush1.bf16.msra.mxu0 %v1677_v47  ;;  %616 = vmatpush1.bf16.msra.mxu1 %v1678_v51  ;;  %v444_v21 = vsel %vm420_vm5, %v439_v17, %v443_v11  ;;  %v848_v45 = vand.u32 7, %v796_v41  ;;  %vm1004_vm12 = vcmp.eq.s32.totalorder %v834_v44, %v1926_v36  ;;  %v855_v46 = vand.u32 7, %v797_v42 }
  0x25   : > { %520 = vmatprep.subr.bf16.mxu0 %v1714_v1  ;;  %617 = vmatprep.subr.bf16.mxu1 %v1714_v1  ;;  %v432_v23 = vsel %vm420_vm5, %v427_v18, %v431_v15  ;;  %v862_v47 = vand.u32 7, %v798_v43  ;;  %v1716_v48 = vmov 1.0|1.0   ;;  %vm1946_vm13 = vmpackc.low %vm1004_vm12, %vm1003_vm9  ;;  %vm1005_vm14 = vcmp.eq.s32.totalorder %v841_v7, %v1926_v36 }
  0x26   : > { %1361 = vmatprep.mubr.msk.bf16.mxu0 %vm500_vm2, %v444_v21  ;;  %vm1006_vm15 = vcmp.eq.s32.totalorder %v848_v45, %v1926_v36  ;;  %v799_v50 = vadd.s32 64, %v1806_v10  ;;  %v800_v51 = vadd.s32 72, %v1806_v10  ;;  %vm1007_vm1 = vcmp.eq.s32.totalorder %v855_v46, %v1926_v36 }
  0x27   : > { %vm1960_vm0 = vmpackc.low %vm1006_vm15, %vm1005_vm14  ;;  %v801_v55 = vadd.s32 80, %v1806_v10  ;;  %v802_v56 = vadd.s32 88, %v1806_v10  ;;  %v803_v62 = vadd.s32 96, %v1806_v10  ;;  %v804_v63 = vadd.s32 104, %v1806_v10 }
  0x28   : > { %521 = vmatpush1.bf16.msra.mxu0 %v1679_v61  ;;  %618 = vmatpush1.bf16.msra.mxu1 %v1680_v0  ;;  %v869_v53 = vand.u32 7, %v799_v50  ;;  %v876_v54 = vand.u32 7, %v800_v51  ;;  %v805_v3 = vadd.s32 112, %v1806_v10  ;;  %v806_v4 = vadd.s32 120, %v1806_v10 }
  0x29   : > { %730 = vmatprep.subr.bf16.mxu0 %v1714_v1  ;;  %v883_v58 = vand.u32 7, %v801_v55  ;;  %v890_v59 = vand.u32 7, %v802_v56  ;;  %v897_v0 = vand.u32 7, %v803_v62  ;;  %v904_v2 = vand.u32 7, %v804_v63 }
  0x2a   : > { %vm1009_vm4 = vcmp.eq.s32.totalorder %v869_v53, %v1926_v36  ;;  %vm1010_vm5 = vcmp.eq.s32.totalorder %v876_v54, %v1926_v36  ;;  %v911_v6 = vand.u32 7, %v805_v3  ;;  %v918_v8 = vand.u32 7, %v806_v4 }
  0x2b   : > { %1375 = vmatmul.mubr.msk.bf16.vlgmr.msra.gmra.mrb[0].mxu1 %vm1373_vm7, %v1374_v16  ;;  %537 = vmatmul.mubr.bf16.vlgmr.msra.gmra.mrb[0].mxu0 %v432_v23  ;;  %vm1986_vm6 = vmpackc.low %vm1010_vm5, %vm1009_vm4  ;;  %vm1011_vm7 = vcmp.eq.s32.totalorder %v883_v58, %v1926_v36  ;;  %vm1014_vm12 = vcmp.eq.s32.totalorder %v904_v2, %v1926_v36 }
  0x2c   : > { %731 = vmatpush1.bf16.msra.mxu0 %v1681_v20  ;;  %1403 = vmatprep.mubr.msk.bf16.mxu0 %vm500_vm2, %v671_v22  ;;  %vm1008_vm2 = vcmp.eq.s32.totalorder %v862_v47, %v1926_v36  ;;  %vm1015_vm15 = vcmp.eq.s32.totalorder %v911_v6, %v1926_v36 }
  0x2d   : > { %732 = vmatprep.subr.bf16.mxu0 %v1714_v1  ;;  %vm1974_vm3 = vmpackc.low %vm1008_vm2, %vm1007_vm1  ;;  %vm1016_vm1 = vcmp.eq.s32.totalorder %v918_v8, %v1926_v36 }
  0x2e   : > { %vm2029_vm2 = vmpackc.low %vm1016_vm1, %vm1015_vm15 }
  0x30   : > { %733 = vmatpush1.bf16.msra.mxu0 %v1682_v24  ;;  %v1404_v24 = vld [vmem:[%s2109_s2] ss:$0 sm:$0xff] }
  0x31   : > { %734 = vmatprep.subr.bf16.mxu0 %v1714_v1 }
  0x34   : > { %735 = vmatpush1.bf16.msra.mxu0 %v1683_v25 }
  0x35   : > { %736 = vmatprep.subr.bf16.mxu0 %v1714_v1 }
  0x38   : > { %737 = vmatpush1.bf16.msra.mxu0 %v1684_v26 }
  0x39   : > { %738 = vmatprep.subr.bf16.mxu0 %v1714_v1 }
  0x3c   : > { %739 = vmatpush1.bf16.msra.mxu0 %v1685_v27 }
  0x3d   : > { %740 = vmatprep.subr.bf16.mxu0 %v1714_v1 }
  0x40   : > { %741 = vmatpush1.bf16.msra.mxu0 %v1686_v28 }
  0x41   : > { %742 = vmatprep.subr.bf16.mxu0 %v1714_v1 }
  0x44   : > { %743 = vmatpush1.bf16.msra.mxu0 %v1687_v29 }
  0x45   : > { %744 = vmatprep.subr.bf16.mxu0 %v1714_v1 }
  0x48   : > { %745 = vmatpush1.bf16.msra.mxu0 %v1688_v30 }
  0x49   : > { %746 = vmatprep.subr.bf16.mxu0 %v1714_v1  ;;  %v820_v1 = vand.u32 7, %v346_v35 }
  0x4b   : > { %vm1002_vm10 = vcmp.eq.s32.totalorder %v820_v1, %v1926_v36 }
  0x4c   : > { %747 = vmatpush1.bf16.msra.mxu0 %v1689_v31  ;;  %vm1938_vm11 = vmpackc.low %vm1002_vm10, %vm1001_vm8  ;;  %vm1012_vm8 = vcmp.eq.s32.totalorder %v890_v59, %v1926_v36  ;;  %vm1013_vm10 = vcmp.eq.s32.totalorder %v897_v0, %v1926_v36 }
  0x4d   : > { %1572 = vmatprep.subr.msk.bf16.mxu1 %vm1938_vm11, %v1716_v48  ;;  %vm1998_vm9 = vmpackc.low %vm1012_vm8, %vm1011_vm7 }
  0x4e   : > { %1574 = vmatpush3.bf16.msk.msra.mxu1 %vm1938_vm11, %v1716_v48  ;;  %vm2017_vm14 = vmpackc.low %vm1014_vm12, %vm1013_vm10 }
  0x4f   : > { %763 = vmatmul.mubr.bf16.vlgmr.msra.gmra.mrb[4].mxu0 %v668_v34  ;;  %1576 = vmatprep.subr.msk.bf16.mxu1 %vm1946_vm13, %v1716_v48 }
  0x52   : > { %1578 = vmatpush3.bf16.msk.msra.mxu1 %vm1946_vm13, %v1716_v48 }
  0x53   : > { %1580 = vmatprep.subr.msk.bf16.mxu1 %vm1960_vm0, %v1716_v48 }
  0x56   : > { %1582 = vmatpush3.bf16.msk.msra.mxu1 %vm1960_vm0, %v1716_v48 }
  0x57   : > { %1584 = vmatprep.subr.msk.bf16.mxu1 %vm1974_vm3, %v1716_v48 }
  0x5a   : > { %1586 = vmatpush3.bf16.msk.msra.mxu1 %vm1974_vm3, %v1716_v48 }
  0x5b   : > { %1588 = vmatprep.subr.msk.bf16.mxu1 %vm1986_vm6, %v1716_v48 }
  0x5e   : > { %1590 = vmatpush3.bf16.msk.msra.mxu1 %vm1986_vm6, %v1716_v48 }
  0x5f   : > { %1592 = vmatprep.subr.msk.bf16.mxu1 %vm1998_vm9, %v1716_v48 }
  0x62   : > { %1594 = vmatpush3.bf16.msk.msra.mxu1 %vm1998_vm9, %v1716_v48 }
  0x63   : > { %1596 = vmatprep.subr.msk.bf16.mxu1 %vm2017_vm14, %v1716_v48 }
  0x66   : > { %1598 = vmatpush3.bf16.msk.msra.mxu1 %vm2017_vm14, %v1716_v48 }
  0x67   : > { %1600 = vmatprep.subr.msk.bf16.mxu1 %vm2029_vm2, %v1716_v48 }
  0x6a   : > { %1602 = vmatpush3.bf16.msk.msra.mxu1 %vm2029_vm2, %v1716_v48 }
  0x6b   : > { %1604 = vmatprep.subr.msk.bf16.mxu1 %vm1938_vm11, %v1716_v48 }
  0xfe   : > { %v635_v9 = vpop.f32.mrb[0].mxu1  ;;  %v538_v11 = vpop.f32.mrb[0].mxu0 }
  0xff   : > { %v637_v12 = vpop.f32.mrb[1].mxu1  ;;  %v636_v13 = vadd.f32 %v635_v9, %v538_v11  ;;  %v540_v14 = vpop.f32.mrb[1].mxu0 }
 0x100   : > { %v638_v15 = vpop.f32.mrb[2].mxu1  ;;  %v541_v16 = vpop.f32.mrb[2].mxu0 }
 0x101   : > { %v640_v17 = vpop.f32.mrb[3].mxu1  ;;  %v639_v18 = vadd.f32 %v638_v15, %v541_v16  ;;  %v543_v20 = vpop.f32.mrb[3].mxu0 }
 0x122   : > { %v764_v21 = vpop.f32.mrb[4].mxu0 }
 0x123   : > { %v771_v22 = vadd.f32 %v764_v21, %v636_v13  ;;  %v766_v23 = vpop.f32.mrb[5].mxu0 }
 0x124   : > { %v767_v25 = vpop.f32.mrb[6].mxu0 }
 0x125   : > { %v772_v26 = vadd.f32 %v767_v25, %v639_v18  ;;  %v769_v27 = vpop.f32.mrb[7].mxu0  ;;  %v780_v28 = vadd.f32 %v1404_v24, %v771_v22 }
 0x127   : > { %v781_v29 = vadd.f32 %v1404_v24, %v772_v26 }
 0x129   : > { %v782_v30 = vpack.c.bf16 %v781_v29, %v780_v28 }
 0x12b   : > { %1464 = vst [vmem:[%s284_s8] sm:$0xff] %v782_v30   ;;  %v792_v31 = vunpack.c.l.bf16 %v782_v30  ;;  %v793_v32 = vunpack.c.h.bf16 %v782_v30 }
 0x12d   : > { %1533 = vmatprep.mubr.f32.mxu1 %v792_v31  ;;  %v1134_v33 = vmul.f32 %v792_v31, %v792_v31  ;;  %v1135_v34 = vmul.f32 %v793_v32, %v793_v32 }
 0x12e   : > { %1534 = vmatmul.mubr.f32.vlgmr.msra.gmra.mrb[4].mxu1 %v793_v32 }
 0x12f   : > { %1606 = vmatpush3.bf16.msk.msra.mxu1 %vm1938_vm11, %v1716_v48  ;;  %1568 = vmatprep.mubr.f32.mxu1 %v1134_v33  ;;  %vm1124_vm11 = vcmask 64512  }
 0x130   : > { %1608 = vmatprep.subr.msk.bf16.mxu1 %vm1946_vm13, %v1716_v48 }
 0x133   : > { %1610 = vmatpush3.bf16.msk.msra.mxu1 %vm1946_vm13, %v1716_v48  ;;  %vm1220_vm13 = vcmask 1040384  }
 0x134   : > { %1612 = vmatprep.subr.msk.bf16.mxu1 %vm1960_vm0, %v1716_v48 }
 0x137   : > { %1614 = vmatpush3.bf16.msk.msra.mxu1 %vm1960_vm0, %v1716_v48  ;;  %vm1222_vm0 = vcmask 58368  }
 0x138   : > { %1616 = vmatprep.subr.msk.bf16.mxu1 %vm1974_vm3, %v1716_v48 }
 0x13b   : > { %1618 = vmatpush3.bf16.msk.msra.mxu1 %vm1974_vm3, %v1716_v48 }
 0x13c   : > { %1620 = vmatprep.subr.msk.bf16.mxu1 %vm1986_vm6, %v1716_v48 }
 0x13f   : > { %1622 = vmatpush3.bf16.msk.msra.mxu1 %vm1986_vm6, %v1716_v48 }
 0x140   : > { %1624 = vmatprep.subr.msk.bf16.mxu1 %vm1998_vm9, %v1716_v48 }
 0x143   : > { %1626 = vmatpush3.bf16.msk.msra.mxu1 %vm1998_vm9, %v1716_v48 }
 0x144   : > { %1628 = vmatprep.subr.msk.bf16.mxu1 %vm2017_vm14, %v1716_v48 }
 0x147   : > { %1630 = vmatpush3.bf16.msk.msra.mxu1 %vm2017_vm14, %v1716_v48 }
 0x148   : > { %1632 = vmatprep.subr.msk.bf16.mxu1 %vm2029_vm2, %v1716_v48 }
 0x14b   : > { %1634 = vmatpush3.bf16.msk.msra.mxu1 %vm2029_vm2, %v1716_v48 }
 0x14e   : > { %1569 = vmatmul.mubr.f32.vlgmr.msra.gmra.mrb[6].mxu1 %v1135_v34 }
 0x201   : > { %v1535_v35 = vpop.f32.mrb[4].mxu1 }
 0x202   : > { %v1126_v36 = vsel %vm1124_vm11, %v1535_v35, 0.0  ;;  %v1115_v37 = vpop.f32.mrb[5].mxu1 }
 0x203   : > { %v1125_v38 = vsel %vm1124_vm11, %v1115_v37, 0.0 }
 0x204   : > { %v1127_v39 = vadd.f32 %v1126_v36, %v1125_v38 }
 0x206   : > { %v1128_v40 = vrot.slane %v1127_v39, 4 }
 0x208   : > { %v1129_v41 = vadd.f32 %v1128_v40, %v1127_v39 }
 0x20a   : > { %v1130_v7 = vrot.slane %v1129_v41, 2 }
 0x20c   : > { %v1131_v46 = vadd.f32 %v1130_v7, %v1129_v41 }
 0x20e   : > { %v1132_v49 = vrot.slane %v1131_v46, 1 }
 0x210   : > { %v1133_v52 = vadd.f32 %v1132_v49, %v1131_v46 }
 0x221   : > { %v1570_v1 = vpop.f32.mrb[6].mxu1 }
 0x222   : > { %v1212_v42 = vsel %vm1124_vm11, %v1570_v1, 0.0  ;;  %v1202_v43 = vpop.f32.mrb[7].mxu1 }
 0x223   : > { %v1211_v44 = vsel %vm1124_vm11, %v1202_v43, 0.0 }
 0x224   : > { %v1213_v45 = vadd.f32 %v1212_v42, %v1211_v44 }
 0x226   : > { %v1214_v19 = vrot.slane %v1213_v45, 4 }
 0x228   : > { %v1215_v47 = vadd.f32 %v1214_v19, %v1213_v45 }
 0x22a   : > { %v1216_v48 = vrot.slane %v1215_v47, 2 }
 0x22c   : > { %v1217_v50 = vadd.f32 %v1216_v48, %v1215_v47 }
 0x22e   : > { %v1218_v51 = vrot.slane %v1217_v50, 1 }
 0x230   : > { %v1219_v53 = vadd.f32 %v1218_v51, %v1217_v50 }
 0x232   : > { %v1221_v54 = vsel %vm1220_vm13, %v1133_v52, %v1219_v53 }
 0x233   : > { %1223 = vst.msk [vmem:[%s290_s12] sm:$0x3] %vm1222_vm0, %v1221_v54 }
 0x234 PF: > { %s17_s23 = sadd.s32 1, %s1712_s23   ;;  %s2130_s21 = smov %s1708_s22 }
 0x235   : > { %p14_p5 = scmp.ge.s32.totalorder %s17_s23, 4   ;;  %s2131_s22 = smov %s2133_s24 }
 0x237   :  { %16 = sbr.rel (!%p14_p5) target bundleno = 2 (0x2), region = 84 }

// kernel: encoder2d_forward.13
= control target key start
LH: loop header
LB: loop body
LE: loop exit
PB: predicated region body
PF: predicated region fallthrough
CT: control target
= control target key end

     0   :  { %s1132_s12 = smov 0   ;;  %s1134_s13 = smov 0   ;;  %s1324_s0 = inlined_call_operand.vmem [shape: bf16[2,2,2,9,72], index: 0, kind: input, shape index: {}]   ;;  %s1325_s1 = inlined_call_operand.vmem [shape: bf16[3,2,72,64], index: 1, kind: input, shape index: {}]   ;;  %s1326_s2 = inlined_call_operand.vmem [shape: f32[1,64], index: 2, kind: input, shape index: {}]   ;;  %s1327_s3 = inlined_call_operand.vmem [shape: bf16[2,8,64], index: 3, kind: output, shape index: {}]  }
   0x1   :  { %s1136_s14 = smov 0  }
   0x2 LB: > { %s25_s15 = sadd.s32 1, %s1104_s13  ;;  %p812_p0 = scmp.ge.s32.totalorder %s1108_s14, 1  ;;  %s1108_s14 = sphi %s1136_s14, %s13_s14   ;;  %s1104_s13 = sphi %s1134_s13, %s1329_s13   ;;  %s1100_s12 = sphi %s1132_s12, %s1328_s12  }
   0x3   : > { %p27_p1 = scmp.ge.s32.totalorder %s25_s15, 2  ;;  %p155_p2 = scmp.lt.s32.totalorder %s1108_s14, 3 }
   0x5   : > { %s1331_s15 = smov (%p27_p1, %s25_s15), 0  ;;  %p156_p3 = pnand %p812_p0, %p155_p2 }
   0x6   : > { %v1054_v0 = vld [vmem:[%s1325_s1 + $0x24] sm:$0xff] (!%p156_p3)   ;;  %v1110_v1 = vmov (!%p156_p3), 0.0   ;;  %v1056_v3 = vld [vmem:[%s1325_s1 + $0x2c] sm:$0xff] (!%p156_p3)   ;;  %p181_p4 = scmp.lt.s32.totalorder (!%p156_p3), %s1100_s12, 1  ;;  %vm1111_vm0 = vmmov (!%p156_p3), 0   ;;  %v1058_v5 = vld [vmem:[%s1325_s1 + $0x34] sm:$0xff] (!%p156_p3)  }
   0x7   : > { %159 = sbr.rel (%p156_p3) target bundleno = 288 (0x120), region = 32  ;;  %944 = vmatprep.subr.bf16.mxu0 (!%p156_p3), %v1110_v1  ;;  %958 = vmatprep.subr.bf16.mxu1 (!%p156_p3), %v1110_v1  ;;  %v1055_v2 = vld [vmem:[%s1325_s1] sm:$0xff] (!%p156_p3)   ;;  %v1057_v4 = vld [vmem:[%s1325_s1 + $0x8] sm:$0xff] (!%p156_p3)   ;;  %v1059_v6 = vld [vmem:[%s1325_s1 + $0x10] sm:$0xff] (!%p156_p3)   ;;  %vm247_vm1 = vcmask (!%p156_p3), 1043456   ;;  %vm243_vm2 = vcmask (!%p156_p3), 588800  }
   0x8   : > { %945 = vmatpush3.bf16.msra.mxu0 (!%p156_p3), %v1054_v0  ;;  %959 = vmatpush3.bf16.msra.mxu1 (!%p156_p3), %v1055_v2  ;;  %v1060_v7 = vld [vmem:[%s1325_s1 + $0x3c] sm:$0xff] (!%p156_p3)   ;;  %v1062_v9 = vld [vmem:[%s1325_s1 + $0x44] ss:$0 sps:$4 sm:$0xff] (!%p156_p3)   ;;  %v1064_v14 = vld [vmem:[%s1325_s1 + $0x48] sm:$0xff] (!%p156_p3)   ;;  %vm741_vm3 = vcmask (!%p156_p3), 519168  }
   0x9   : > { %946 = vmatprep.subr.bf16.mxu0 (!%p156_p3), %v1110_v1  ;;  %960 = vmatprep.subr.bf16.mxu1 (!%p156_p3), %v1110_v1  ;;  %v1061_v8 = vld [vmem:[%s1325_s1 + $0x18] sm:$0xff] (!%p156_p3)   ;;  %v1063_v10 = vld [vmem:[%s1325_s1 + $0x20] ss:$0 sps:$4 sm:$0xff] (!%p156_p3)   ;;  %v249_v11 = vsel (!%p156_p3), %vm247_vm1, %v1062_v9, 0  ;;  %v1065_v16 = vld [vmem:[%s1325_s1 + $0x6c] sm:$0xff] (!%p156_p3)  }
   0xa   : > { %954 = vmatprep.mubr.msk.bf16.mxu0 (!%p156_p3), %vm1111_vm0, %v1110_v1  ;;  %968 = vmatprep.mubr.msk.bf16.mxu1 (!%p156_p3), %vm1111_vm0, %v1110_v1  ;;  %v322_v12 = vsel (!%p156_p3), %vm247_vm1, %v1063_v10, 0  ;;  %v1066_v17 = vld [vmem:[%s1325_s1 + $0x50] sm:$0xff] (!%p156_p3)   ;;  %v1068_v19 = vld [vmem:[%s1325_s1 + $0x58] sm:$0xff] (!%p156_p3)   ;;  %v1070_v21 = vld [vmem:[%s1325_s1 + $0x60] sm:$0xff] (!%p156_p3)  }
   0xb   : > { %v1067_v18 = vld [vmem:[%s1325_s1 + $0x74] sm:$0xff] (!%p156_p3)   ;;  %v1069_v20 = vld [vmem:[%s1325_s1 + $0x7c] sm:$0xff] (!%p156_p3)   ;;  %v1071_v22 = vld [vmem:[%s1325_s1 + $0x84] sm:$0xff] (!%p156_p3)  }
   0xc   : > { %947 = vmatpush3.bf16.msra.mxu0 (!%p156_p3), %v1056_v3  ;;  %961 = vmatpush3.bf16.msra.mxu1 (!%p156_p3), %v1057_v4  ;;  %v1072_v23 = vld [vmem:[%s1325_s1 + $0x68] ss:$0 sps:$4 sm:$0xff] (!%p156_p3)   ;;  %v1073_v24 = vld [vmem:[%s1325_s1 + $0x8c] ss:$0 sps:$4 sm:$0xff] (!%p156_p3)   ;;  %v1074_v28 = vld [vmem:[%s1325_s1 + $0x90] sm:$0xff] (!%p156_p3)  }
   0xd   : > { %948 = vmatprep.subr.bf16.mxu0 (!%p156_p3), %v1110_v1  ;;  %962 = vmatprep.subr.bf16.mxu1 (!%p156_p3), %v1110_v1  ;;  %v407_v25 = vsel (!%p156_p3), %vm247_vm1, %v1072_v23, 0  ;;  %v493_v26 = vsel (!%p156_p3), %vm247_vm1, %v1073_v24, 0  ;;  %v1075_v30 = vld [vmem:[%s1325_s1 + $0xb4] sm:$0xff] (!%p156_p3)   ;;  %v1077_v32 = vld [vmem:[%s1325_s1 + $0xbc] sm:$0xff] (!%p156_p3)   ;;  %v1079_v36 = vld [vmem:[%s1325_s1 + $0xc4] sm:$0xff] (!%p156_p3)  }
   0xe   : > { %s1333_s12 = smov (!%p181_p4, %s1100_s12), 1  ;;  %v1076_v31 = vld [vmem:[%s1325_s1 + $0x98] sm:$0xff]   ;;  %v1078_v34 = vld [vmem:[%s1325_s1 + $0xa0] sm:$0xff]   ;;  %v1080_v38 = vld [vmem:[%s1325_s1 + $0xa8] sm:$0xff]  }
   0xf   : > { %s907_s5 = sshll.u32 %s1333_s12, 5  ;;  %v1081_v40 = vld [vmem:[%s1325_s1 + $0xcc] sm:$0xff]   ;;  %v1083_v42 = vld [vmem:[%s1325_s1 + $0xd4] ss:$0 sps:$4 sm:$0xff]   ;;  %v904_v10 = vld [vmem:[%s1326_s2] ss:$0 sm:$0xff] }
  0x10   : > { %949 = vmatpush3.bf16.msra.mxu0 %v1058_v5  ;;  %963 = vmatpush3.bf16.msra.mxu1 %v1059_v6  ;;  %s1198_s16 = scalar_lea.vmem %s1324_s0, %s907_s5  ;;  %v1082_v41 = vld [vmem:[%s1325_s1 + $0xb0] ss:$0 sps:$4 sm:$0xff]   ;;  %v689_v48 = vsel %vm247_vm1, %v1083_v42, 0  ;;  %s815_s9 = sshll.u32 %s1333_s12, 2 }
  0x11   : > { %950 = vmatprep.subr.bf16.mxu0 %v1110_v1  ;;  %964 = vmatprep.subr.bf16.mxu1 %v1110_v1  ;;  %v816_v13 = vld [vmem:[%s1198_s16 + $0x8] sm:$0xf]  ;;  %v194_v15 = vld [vmem:[%s1198_s16] sm:$0xf]  ;;  %v838_v27 = vld [vmem:[%s1198_s16 + $0x10] sm:$0xf]  ;;  %s191_s17 = scalar_lea.vmem %s1327_s3, %s815_s9 }
  0x12   : > { %v854_v29 = vld [vmem:[%s1198_s16 + $0x18] sm:$0xf]  ;;  %v1084_v33 = vld [vmem:[%s1198_s16] sm:$0x1f]   ;;  %v1085_v35 = vld [vmem:[%s1198_s16 + $0x8] sm:$0x1f]  }
  0x13   : > { %v556_v37 = vshll.u32 %v1084_v33, 16  ;;  %v654_v39 = vshll.u32 %v1085_v35, 16  ;;  %v554_v43 = vshrl.u32 %v1084_v33, 16  ;;  %v652_v45 = vshrl.u32 %v1085_v35, 16 }
  0x14   : > { %951 = vmatpush3.bf16.msra.mxu0 %v1060_v7  ;;  %965 = vmatpush3.bf16.msra.mxu1 %v1061_v8  ;;  %v591_v47 = vsel %vm247_vm1, %v1082_v41, 0 }
  0x15   : > { %952 = vmatprep.subr.bf16.mxu0 %v1110_v1  ;;  %966 = vmatprep.subr.bf16.mxu1 %v1110_v1  ;;  %v558_v44 = vrot.slane %v556_v37, 1  ;;  %v656_v46 = vrot.slane %v654_v39, 1 }
  0x17   : > { %v559_v49 = vor.u32 %v558_v44, %v554_v43  ;;  %v657_v50 = vor.u32 %v656_v46, %v652_v45 }
  0x18   : > { %953 = vmatpush3.bf16.msra.mxu0 %v249_v11  ;;  %967 = vmatpush3.bf16.msra.mxu1 %v322_v12 }
  0x19   : > { %972 = vmatprep.subr.bf16.mxu0 %v1110_v1  ;;  %986 = vmatprep.subr.bf16.mxu1 %v1110_v1 }
  0x1b   : > { %955 = vmatmul.mubr.msk.bf16.vlgmr.msra.gmra.mrb[0].mxu0 %vm243_vm2, %v816_v13  ;;  %969 = vmatmul.mubr.msk.bf16.vlgmr.msra.gmra.mrb[0].mxu1 %vm243_vm2, %v194_v15 }
  0x1c   : > { %973 = vmatpush3.bf16.msra.mxu0 %v1064_v14  ;;  %987 = vmatpush3.bf16.msra.mxu1 %v1065_v16 }
  0x1d   : > { %974 = vmatprep.subr.bf16.mxu0 %v1110_v1  ;;  %988 = vmatprep.subr.bf16.mxu1 %v1110_v1 }
  0x1e   : > { %982 = vmatprep.mubr.msk.bf16.mxu0 %vm1111_vm0, %v1110_v1  ;;  %996 = vmatprep.mubr.msk.bf16.mxu1 %vm1111_vm0, %v1110_v1 }
  0x20   : > { %975 = vmatpush3.bf16.msra.mxu0 %v1066_v17  ;;  %989 = vmatpush3.bf16.msra.mxu1 %v1067_v18 }
  0x21   : > { %976 = vmatprep.subr.bf16.mxu0 %v1110_v1  ;;  %990 = vmatprep.subr.bf16.mxu1 %v1110_v1 }
  0x24   : > { %977 = vmatpush3.bf16.msra.mxu0 %v1068_v19  ;;  %991 = vmatpush3.bf16.msra.mxu1 %v1069_v20 }
  0x25   : > { %978 = vmatprep.subr.bf16.mxu0 %v1110_v1  ;;  %992 = vmatprep.subr.bf16.mxu1 %v1110_v1 }
  0x28   : > { %979 = vmatpush3.bf16.msra.mxu0 %v1070_v21  ;;  %993 = vmatpush3.bf16.msra.mxu1 %v1071_v22 }
  0x29   : > { %980 = vmatprep.subr.bf16.mxu0 %v1110_v1  ;;  %994 = vmatprep.subr.bf16.mxu1 %v1110_v1 }
  0x2c   : > { %981 = vmatpush3.bf16.msra.mxu0 %v407_v25  ;;  %995 = vmatpush3.bf16.msra.mxu1 %v493_v26 }
  0x2d   : > { %1000 = vmatprep.subr.bf16.mxu0 %v1110_v1  ;;  %1014 = vmatprep.subr.bf16.mxu1 %v1110_v1 }
  0x2f   : > { %983 = vmatmul.mubr.msk.bf16.vlgmr.msra.gmra.mrb[4].mxu0 %vm243_vm2, %v838_v27  ;;  %997 = vmatmul.mubr.msk.bf16.vlgmr.msra.gmra.mrb[4].mxu1 %vm243_vm2, %v854_v29 }
  0x30   : > { %1001 = vmatpush3.bf16.msra.mxu0 %v1074_v28  ;;  %1015 = vmatpush3.bf16.msra.mxu1 %v1075_v30 }
  0x31   : > { %1002 = vmatprep.subr.bf16.mxu0 %v1110_v1  ;;  %1016 = vmatprep.subr.bf16.mxu1 %v1110_v1 }
  0x32   : > { %1010 = vmatprep.mubr.msk.bf16.mxu0 %vm1111_vm0, %v1110_v1  ;;  %1024 = vmatprep.mubr.msk.bf16.mxu1 %vm1111_vm0, %v1110_v1 }
  0x34   : > { %1003 = vmatpush3.bf16.msra.mxu0 %v1076_v31  ;;  %1017 = vmatpush3.bf16.msra.mxu1 %v1077_v32 }
  0x35   : > { %1004 = vmatprep.subr.bf16.mxu0 %v1110_v1  ;;  %1018 = vmatprep.subr.bf16.mxu1 %v1110_v1 }
  0x38   : > { %1005 = vmatpush3.bf16.msra.mxu0 %v1078_v34  ;;  %1019 = vmatpush3.bf16.msra.mxu1 %v1079_v36 }
  0x39   : > { %1006 = vmatprep.subr.bf16.mxu0 %v1110_v1  ;;  %1020 = vmatprep.subr.bf16.mxu1 %v1110_v1 }
  0x3c   : > { %1007 = vmatpush3.bf16.msra.mxu0 %v1080_v38  ;;  %1021 = vmatpush3.bf16.msra.mxu1 %v1081_v40 }
  0x3d   : > { %1008 = vmatprep.subr.bf16.mxu0 %v1110_v1  ;;  %1022 = vmatprep.subr.bf16.mxu1 %v1110_v1 }
  0x40   : > { %1009 = vmatpush3.bf16.msra.mxu0 %v591_v47  ;;  %1023 = vmatpush3.bf16.msra.mxu1 %v689_v48 }
  0x43   : > { %1011 = vmatmul.mubr.msk.bf16.vlgmr.msra.gmra.mrb[8].mxu0 %vm243_vm2, %v559_v49  ;;  %1025 = vmatmul.mubr.msk.bf16.vlgmr.msra.gmra.mrb[8].mxu1 %vm243_vm2, %v657_v50 }
  0xee   : > { %v285_v51 = vpop.f32.mrb[0].mxu0  ;;  %v358_v52 = vpop.f32.mrb[0].mxu1 }
  0xef   : > { %v956_v53 = vpop.f32.mrb[1].mxu0  ;;  %v359_v54 = vadd.f32 %v358_v52, %v285_v51  ;;  %v970_v55 = vpop.f32.mrb[1].mxu1 }
  0xf0   : > { %v288_v56 = vpop.f32.mrb[2].mxu0  ;;  %v361_v57 = vpop.f32.mrb[2].mxu1 }
  0xf1   : > { %v957_v58 = vpop.f32.mrb[3].mxu0  ;;  %v971_v59 = vpop.f32.mrb[3].mxu1 }
 0x102   : > { %v443_v60 = vpop.f32.mrb[4].mxu0  ;;  %v529_v62 = vpop.f32.mrb[4].mxu1 }
 0x103   : > { %v449_v61 = vadd.f32 %v443_v60, %v359_v54  ;;  %v984_v63 = vpop.f32.mrb[5].mxu0  ;;  %v998_v0 = vpop.f32.mrb[5].mxu1 }
 0x104   : > { %v446_v1 = vpop.f32.mrb[6].mxu0  ;;  %v532_v3 = vpop.f32.mrb[6].mxu1 }
 0x105   : > { %v535_v2 = vadd.f32 %v529_v62, %v449_v61  ;;  %v985_v4 = vpop.f32.mrb[7].mxu0  ;;  %v999_v5 = vpop.f32.mrb[7].mxu1 }
 0x116   : > { %v627_v6 = vpop.f32.mrb[8].mxu0  ;;  %v725_v8 = vpop.f32.mrb[8].mxu1 }
 0x117   : > { %v633_v7 = vadd.f32 %v627_v6, %v535_v2  ;;  %v1012_v9 = vpop.f32.mrb[9].mxu0  ;;  %v1026_v11 = vpop.f32.mrb[9].mxu1 }
 0x118   : > { %v630_v12 = vpop.f32.mrb[10].mxu0  ;;  %v728_v14 = vpop.f32.mrb[10].mxu1 }
 0x119   : > { %v731_v13 = vadd.f32 %v725_v8, %v633_v7  ;;  %v1013_v15 = vpop.f32.mrb[11].mxu0  ;;  %v1027_v16 = vpop.f32.mrb[11].mxu1 }
 0x11b   : > { %v739_v17 = vadd.f32 %v904_v10, %v731_v13 }
 0x11d   : > { %v740_v18 = vpack.c.bf16 %v739_v17, %v739_v17 }
 0x11f   : > { %742 = vst.msk [vmem:[%s191_s17] sm:$0xf] %vm741_vm3, %v740_v18 }
 0x120 PF: > { %s13_s14 = sadd.s32 1, %s1108_s14   ;;  %s1328_s12 = smov %s1104_s13 }
 0x121   : > { %p10_p5 = scmp.ge.s32.totalorder %s13_s14, 4   ;;  %s1329_s13 = smov %s1331_s15 }
 0x123   :  { %12 = sbr.rel (!%p10_p5) target bundleno = 2 (0x2), region = 70 }

// kernel: encoder2d_forward.14
= control target key start
LH: loop header
LB: loop body
LE: loop exit
PB: predicated region body
PF: predicated region fallthrough
CT: control target
= control target key end

     0   :  { %s1235_s15 = smov 0   ;;  %s1237_s16 = smov 0   ;;  %s1453_s0 = inlined_call_operand.vmem [shape: bf16[2,1,1,10,80], index: 0, kind: input, shape index: {}]   ;;  %s1454_s1 = inlined_call_operand.vmem [shape: bf16[3,1,80,64], index: 1, kind: input, shape index: {}]   ;;  %s1455_s2 = inlined_call_operand.vmem [shape: f32[1,64], index: 2, kind: input, shape index: {}]   ;;  %s1456_s3 = inlined_call_operand.vmem [shape: bf16[2,8,64], index: 3, kind: output, shape index: {0}]   ;;  %s1457_s4 = inlined_call_operand.vmem [shape: f32[2,2,8], index: 4, kind: output, shape index: {1}]  }
   0x1   :  { %s1239_s17 = smov 0  }
   0x2 LB: > { %s27_s18 = sadd.s32 1, %s1200_s16  ;;  %p922_p0 = scmp.ge.s32.totalorder %s1204_s17, 1  ;;  %s1204_s17 = sphi %s1239_s17, %s15_s17   ;;  %s1200_s16 = sphi %s1237_s16, %s1475_s16   ;;  %s1196_s15 = sphi %s1235_s15, %s1474_s15  }
   0x3   : > { %p29_p1 = scmp.ge.s32.totalorder %s27_s18, 2  ;;  %p185_p2 = scmp.lt.s32.totalorder %s1204_s17, 3 }
   0x5   : > { %s1477_s18 = smov (%p29_p1, %s27_s18), 0  ;;  %p186_p3 = pnand %p922_p0, %p185_p2 }
   0x6   : > { %v1165_v0 = vld [vmem:[%s1454_s1 + $0x28] sm:$0xff] (!%p186_p3)   ;;  %v1206_v1 = vmov (!%p186_p3), 0.0   ;;  %v1166_v2 = vld [vmem:[%s1454_s1] sm:$0xff] (!%p186_p3)   ;;  %v1167_v3 = vld [vmem:[%s1454_s1 + $0x30] sm:$0xff] (!%p186_p3)   ;;  %vm1207_vm0 = vmmov (!%p186_p3), 0   ;;  %p218_p4 = scmp.lt.s32.totalorder (!%p186_p3), %s1196_s15, 1  ;;  %v521_v26 = vlaneseq (!%p186_p3) }
   0x7   : > { %189 = sbr.rel (%p186_p3) target bundleno = 510 (0x1fe), region = 32  ;;  %1033 = vmatprep.subr.bf16.mxu0 (!%p186_p3), %v1206_v1  ;;  %1047 = vmatprep.subr.bf16.mxu1 (!%p186_p3), %v1206_v1  ;;  %v1168_v4 = vld [vmem:[%s1454_s1 + $0x8] sm:$0xff] (!%p186_p3)   ;;  %v1169_v5 = vld [vmem:[%s1454_s1 + $0x38] sm:$0xff] (!%p186_p3)   ;;  %v1170_v6 = vld [vmem:[%s1454_s1 + $0x10] sm:$0xff] (!%p186_p3)   ;;  %vm302_vm1 = vcmask (!%p186_p3), 654336   ;;  %v1208_v27 = vmov (!%p186_p3), 0.0|0.0  }
   0x8   : > { %1034 = vmatpush3.bf16.msra.mxu0 (!%p186_p3), %v1165_v0  ;;  %1043 = vmatprep.mubr.msk.bf16.mxu0 (!%p186_p3), %vm1207_vm0, %v1206_v1  ;;  %v1171_v7 = vld [vmem:[%s1454_s1 + $0x40] sm:$0xff] (!%p186_p3)   ;;  %v1172_v10 = vld [vmem:[%s1454_s1 + $0x18] sm:$0xff] (!%p186_p3)   ;;  %v1173_v12 = vld [vmem:[%s1454_s1 + $0x48] sm:$0xff] (!%p186_p3)   ;;  %v522_v28 = vshrl.u32 (!%p186_p3), %v521_v26, 7  ;;  %v531_v29 = vand.u32 (!%p186_p3), 127, %v521_v26  ;;  %vm518_vm14 = vcmask (!%p186_p3), 519168  }
   0x9   : > { %1048 = vmatpush3.bf16.msra.mxu1 (!%p186_p3), %v1166_v2  ;;  %1035 = vmatprep.subr.bf16.mxu0 (!%p186_p3), %v1206_v1  ;;  %v1174_v15 = vld [vmem:[%s1454_s1 + $0x20] sm:$0xff] (!%p186_p3)   ;;  %v1176_v18 = vld [vmem:[%s1454_s1 + $0x50] sm:$0xff] (!%p186_p3)   ;;  %v1177_v19 = vld [vmem:[%s1454_s1 + $0x58] sm:$0xff] (!%p186_p3)   ;;  %v1209_v41 = vmov (!%p186_p3), 1.0|1.0   ;;  %vm652_vm15 = vcmask (!%p186_p3), 523264  }
   0xa   : > { %1049 = vmatprep.subr.bf16.mxu1 (!%p186_p3), %v1206_v1  ;;  %1057 = vmatprep.mubr.msk.bf16.mxu1 (!%p186_p3), %vm1207_vm0, %v1206_v1  ;;  %v1178_v20 = vld [vmem:[%s1454_s1 + $0x60] sm:$0xff] (!%p186_p3)   ;;  %v1179_v21 = vld [vmem:[%s1454_s1 + $0x68] sm:$0xff] (!%p186_p3)   ;;  %v1180_v24 = vld [vmem:[%s1454_s1 + $0x70] sm:$0xff] (!%p186_p3)   ;;  %v523_v30 = vadd.s32 (!%p186_p3), 8, %v522_v28  ;;  %v536_v31 = vand.u32 (!%p186_p3), 7, %v522_v28  ;;  %v524_v32 = vadd.s32 (!%p186_p3), 16, %v522_v28 }
   0xb   : > { %v525_v33 = vadd.s32 (!%p186_p3), 24, %v522_v28  ;;  %v526_v42 = vadd.s32 (!%p186_p3), 32, %v522_v28  ;;  %v527_v43 = vadd.s32 (!%p186_p3), 40, %v522_v28  ;;  %v528_v48 = vadd.s32 (!%p186_p3), 48, %v522_v28  ;;  %v967_v0 = vld [vmem:[%s1455_s2] ss:$0 sm:$0xff] (!%p186_p3) }
   0xc   : > { %1036 = vmatpush3.bf16.msra.mxu0 (!%p186_p3), %v1167_v3  ;;  %v543_v34 = vand.u32 (!%p186_p3), 7, %v523_v30  ;;  %vm1336_vm2 = vcmp.eq.s32.totalorder (!%p186_p3), %v536_v31, %v531_v29  ;;  %v550_v36 = vand.u32 (!%p186_p3), 7, %v524_v32  ;;  %v529_v49 = vadd.s32 (!%p186_p3), 56, %v522_v28 }
   0xd   : > { %1050 = vmatpush3.bf16.msra.mxu1 (!%p186_p3), %v1168_v4  ;;  %1037 = vmatprep.subr.bf16.mxu0 (!%p186_p3), %v1206_v1  ;;  %v557_v37 = vand.u32 (!%p186_p3), 7, %v525_v33  ;;  %v564_v44 = vand.u32 (!%p186_p3), 7, %v526_v42  ;;  %v571_v45 = vand.u32 (!%p186_p3), 7, %v527_v43  ;;  %v578_v50 = vand.u32 (!%p186_p3), 7, %v528_v48 }
   0xe   : > { %s1479_s15 = smov (!%p218_p4, %s1196_s15), 1  ;;  %1051 = vmatprep.subr.bf16.mxu1 %v1206_v1  ;;  %vm1340_vm3 = vcmp.eq.s32.totalorder %v543_v34, %v531_v29  ;;  %vm1344_vm4 = vcmp.eq.s32.totalorder %v550_v36, %v531_v29  ;;  %v585_v51 = vand.u32 7, %v529_v49 }
   0xf   : > { %s996_s29 = sshll.u32 %s1479_s15, 3  ;;  %vm1348_vm5 = vcmp.eq.s32.totalorder %v557_v37, %v531_v29  ;;  %vm1114_vm6 = vmpackc.low %vm1340_vm3, %vm1336_vm2  ;;  %vm1372_vm8 = vcmp.eq.s32.totalorder %v564_v44, %v531_v29  ;;  %vm1376_vm9 = vcmp.eq.s32.totalorder %v571_v45, %v531_v29  ;;  %vm1390_vm11 = vcmp.eq.s32.totalorder %v578_v50, %v531_v29  ;;  %s925_s7 = sshll.u32 %s1479_s15, 2 }
  0x10   : > { %s1286_s8 = scalar_lea.vmem %s1453_s0, %s996_s29  ;;  %1038 = vmatpush3.bf16.msra.mxu0 %v1169_v5  ;;  %vm1117_vm7 = vmpackc.low %vm1348_vm5, %vm1344_vm4  ;;  %vm1394_vm12 = vcmp.eq.s32.totalorder %v585_v51, %v531_v29  ;;  %s228_s10 = scalar_lea.vmem %s1456_s3, %s925_s7  ;;  %vm817_vm2 = vcmask 58368  }
  0x11   : > { %v237_v8 = vld [vmem:[%s1286_s8] sm:$0xf]  ;;  %v248_v9 = vld [vmem:[%s1286_s8 + $0x4] sm:$0x1]  ;;  %1052 = vmatpush3.bf16.msra.mxu1 %v1170_v6  ;;  %1039 = vmatprep.subr.bf16.mxu0 %v1206_v1  ;;  %vm1120_vm10 = vmpackc.low %vm1376_vm9, %vm1372_vm8  ;;  %s926_s11 = sshll.u32 %s1479_s15, 1 }
  0x12   : > { %v937_v11 = vcombine.low %v237_v8, %v248_v9  ;;  %1053 = vmatprep.subr.bf16.mxu1 %v1206_v1  ;;  %v419_v22 = vld [vmem:[%s1286_s8] sm:$0xe]  ;;  %vm1123_vm13 = vmpackc.low %vm1394_vm12, %vm1390_vm11  ;;  %s234_s14 = scalar_lea.vmem %s1457_s4, %s926_s11 }
  0x13   : > { %v960_v23 = vcombine.low %v419_v22, %v248_v9 }
  0x14   : > { %v266_v13 = vshrl.u32 %v937_v11, 16  ;;  %v268_v14 = vshll.u32 %v937_v11, 16  ;;  %1040 = vmatpush3.bf16.msra.mxu0 %v1171_v7 }
  0x15   : > { %1054 = vmatpush3.bf16.msra.mxu1 %v1172_v10  ;;  %1041 = vmatprep.subr.bf16.mxu0 %v1206_v1  ;;  %v434_v25 = vrot.slane %v960_v23, 1 }
  0x16   : > { %v270_v16 = vrot.slane %v268_v14, 1  ;;  %1055 = vmatprep.subr.bf16.mxu1 %v1206_v1 }
  0x18   : > { %v271_v17 = vor.u32 %v270_v16, %v266_v13  ;;  %1042 = vmatpush3.bf16.msra.mxu0 %v1173_v12 }
  0x19   : > { %1056 = vmatpush3.bf16.msra.mxu1 %v1174_v15  ;;  %1061 = vmatprep.subr.bf16.mxu0 %v1206_v1 }
  0x1a   : > { %1113 = vmatprep.subr.bf16.mxu1 %v1208_v27 }
  0x1b   : > { %1044 = vmatmul.mubr.msk.bf16.vlgmr.msra.gmra.mrb[0].mxu0 %vm302_vm1, %v271_v17 }
  0x1c   : > { %1058 = vmatmul.mubr.msk.bf16.vlgmr.msra.gmra.mrb[0].mxu1 %vm302_vm1, %v237_v8  ;;  %1062 = vmatpush3.bf16.msra.mxu0 %v1176_v18 }
  0x1d   : > { %1063 = vmatprep.subr.bf16.mxu0 %v1206_v1  ;;  %1071 = vmatprep.mubr.msk.bf16.mxu0 %vm1207_vm0, %v1206_v1 }
  0x1e   : > { %1091 = vmatprep.mubr.msk.f32.mxu1 %vm1207_vm0, %v1206_v1  ;;  %1115 = vmatpush3.bf16.msk.msra.mxu1 %vm1114_vm6, %v1209_v41 }
  0x1f   : > { %1116 = vmatprep.subr.bf16.mxu1 %v1208_v27 }
  0x20   : > { %1064 = vmatpush3.bf16.msra.mxu0 %v1177_v19 }
  0x21   : > { %1065 = vmatprep.subr.bf16.mxu0 %v1206_v1 }
  0x22   : > { %1118 = vmatpush3.bf16.msk.msra.mxu1 %vm1117_vm7, %v1209_v41 }
  0x23   : > { %1119 = vmatprep.subr.bf16.mxu1 %v1208_v27 }
  0x24   : > { %1066 = vmatpush3.bf16.msra.mxu0 %v1178_v20 }
  0x25   : > { %1067 = vmatprep.subr.bf16.mxu0 %v1206_v1 }
  0x26   : > { %1121 = vmatpush3.bf16.msk.msra.mxu1 %vm1120_vm10, %v1209_v41 }
  0x27   : > { %1122 = vmatprep.subr.bf16.mxu1 %v1208_v27 }
  0x28   : > { %1068 = vmatpush3.bf16.msra.mxu0 %v1179_v21 }
  0x29   : > { %1069 = vmatprep.subr.bf16.mxu0 %v1206_v1 }
  0x2a   : > { %1124 = vmatpush3.bf16.msk.msra.mxu1 %vm1123_vm13, %v1209_v41 }
  0x2b   : > { %1125 = vmatprep.subr.bf16.mxu1 %v1208_v27 }
  0x2c   : > { %1070 = vmatpush3.bf16.msra.mxu0 %v1180_v24 }
  0x2f   : > { %1072 = vmatmul.mubr.msk.bf16.vlgmr.msra.gmra.mrb[4].mxu0 %vm302_vm1, %v434_v25  ;;  %vm815_vm1 = vcmask 1040384  }
  0xee   : > { %v340_v54 = vpop.f32.mrb[0].mxu0 }
  0xef   : > { %v1045_v55 = vpop.f32.mrb[1].mxu0  ;;  %v413_v56 = vpop.f32.mrb[0].mxu1 }
  0xf0   : > { %v414_v57 = vadd.f32 %v413_v56, %v340_v54  ;;  %v343_v58 = vpop.f32.mrb[2].mxu0  ;;  %v1059_v59 = vpop.f32.mrb[1].mxu1 }
  0xf1   : > { %v1046_v60 = vpop.f32.mrb[3].mxu0  ;;  %v416_v61 = vpop.f32.mrb[2].mxu1 }
  0xf2   : > { %v1060_v62 = vpop.f32.mrb[3].mxu1 }
 0x102   : > { %v502_v63 = vpop.f32.mrb[4].mxu0 }
 0x103   : > { %v508_v2 = vadd.f32 %v502_v63, %v414_v57  ;;  %v1073_v3 = vpop.f32.mrb[5].mxu0 }
 0x104   : > { %v505_v4 = vpop.f32.mrb[6].mxu0 }
 0x105   : > { %v516_v5 = vadd.f32 %v967_v0, %v508_v2  ;;  %v1074_v6 = vpop.f32.mrb[7].mxu0 }
 0x107   : > { %v517_v7 = vpack.c.bf16 %v516_v5, %v516_v5 }
 0x109   : > { %519 = vst.msk [vmem:[%s228_s10] sm:$0xf] %vm518_vm14, %v517_v7  ;;  %v520_v8 = vunpack.c.l.bf16 %v517_v7 }
 0x10b   : > { %1092 = vmatmul.mubr.msk.f32.vlgmr.msra.gmra.mrb[4].mxu1 %vm652_vm15, %v520_v8 }
 0x10c   : > { %1127 = vmatpush3.bf16.msk.msra.mxu1 %vm1114_vm6, %v1209_v41  ;;  %1110 = vmatprep.mubr.msk.f32.mxu1 %vm1207_vm0, %v1206_v1  ;;  %v734_v1 = vmul.f32 %v520_v8, %v520_v8  ;;  %vm726_vm0 = vcmask 64512  }
 0x10d   : > { %1128 = vmatprep.subr.bf16.mxu1 %v1208_v27 }
 0x110   : > { %1130 = vmatpush3.bf16.msk.msra.mxu1 %vm1117_vm7, %v1209_v41 }
 0x111   : > { %1131 = vmatprep.subr.bf16.mxu1 %v1208_v27 }
 0x114   : > { %1133 = vmatpush3.bf16.msk.msra.mxu1 %vm1120_vm10, %v1209_v41 }
 0x115   : > { %1134 = vmatprep.subr.bf16.mxu1 %v1208_v27 }
 0x118   : > { %1136 = vmatpush3.bf16.msk.msra.mxu1 %vm1123_vm13, %v1209_v41 }
 0x11b   : > { %1111 = vmatmul.mubr.msk.f32.vlgmr.msra.gmra.mrb[6].mxu1 %vm652_vm15, %v734_v1 }
 0x1de   : > { %v722_v9 = vpop.f32.mrb[4].mxu1 }
 0x1df   : > { %v1093_v10 = vpop.f32.mrb[5].mxu1  ;;  %v727_v11 = vsel %vm726_vm0, %v722_v9, 0.0 }
 0x1e0   : > { %v728_v12 = vrot.slane %v727_v11, 4 }
 0x1e2   : > { %v729_v13 = vadd.f32 %v728_v12, %v727_v11 }
 0x1e4   : > { %v730_v14 = vrot.slane %v729_v13, 2 }
 0x1e6   : > { %v731_v19 = vadd.f32 %v730_v14, %v729_v13 }
 0x1e8   : > { %v732_v22 = vrot.slane %v731_v19, 1 }
 0x1ea   : > { %v733_v25 = vadd.f32 %v732_v22, %v731_v19 }
 0x1ee   : > { %v804_v15 = vpop.f32.mrb[6].mxu1 }
 0x1ef   : > { %v808_v16 = vsel %vm726_vm0, %v804_v15, 0.0  ;;  %v1112_v17 = vpop.f32.mrb[7].mxu1 }
 0x1f0   : > { %v809_v18 = vrot.slane %v808_v16, 4 }
 0x1f2   : > { %v810_v20 = vadd.f32 %v809_v18, %v808_v16 }
 0x1f4   : > { %v811_v21 = vrot.slane %v810_v20, 2 }
 0x1f6   : > { %v812_v23 = vadd.f32 %v811_v21, %v810_v20 }
 0x1f8   : > { %v813_v24 = vrot.slane %v812_v23, 1 }
 0x1fa   : > { %v814_v26 = vadd.f32 %v813_v24, %v812_v23 }
 0x1fc   : > { %v816_v27 = vsel %vm815_vm1, %v733_v25, %v814_v26 }
 0x1fd   : > { %818 = vst.msk [vmem:[%s234_s14] sm:$0x3] %vm817_vm2, %v816_v27 }
 0x1fe PF: > { %s15_s17 = sadd.s32 1, %s1204_s17   ;;  %s1474_s15 = smov %s1200_s16 }
 0x1ff   : > { %p12_p5 = scmp.ge.s32.totalorder %s15_s17, 4   ;;  %s1475_s16 = smov %s1477_s18 }
 0x201   :  { %14 = sbr.rel (!%p12_p5) target bundleno = 2 (0x2), region = 76 }

// kernel: tile.103
= control target key start
LH: loop header
LB: loop body
LE: loop exit
PB: predicated region body
PF: predicated region fallthrough
CT: control target
= control target key end

     0   :  { %s22_s0 = inlined_call_operand.vmem [shape: f32[8], index: 0, kind: input, shape index: {}]   ;;  %s23_s1 = inlined_call_operand.vmem [shape: f32[8,8], index: 1, kind: output, shape index: {}]  }
   0x1   :  { %v4_v0 = vld [vmem:[%s22_s0] ss:$0 sm:$0xff] }
   0x2   :  { %5 = vst [vmem:[%s23_s1] sm:$0xff] %v4_v0 }

// kernel: tile.104
= control target key start
LH: loop header
LB: loop body
LE: loop exit
PB: predicated region body
PF: predicated region fallthrough
CT: control target
= control target key end

     0   :  { %s67_s10 = smov 56   ;;  %s68_s11 = smov 40   ;;  %vm3_vm0 = vcmask 64512   ;;  %vm9_vm1 = vcmask 523712   ;;  %vm15_vm2 = vcmask 458112   ;;  %vm21_vm3 = vcmask 392512   ;;  %s111_s0 = inlined_call_operand.vmem [shape: f32[8,8], index: 0, kind: input, shape index: {}]   ;;  %s112_s1 = inlined_call_operand.vmem [shape: f32[1,64], index: 1, kind: output, shape index: {}]  }
   0x1   :  { %v53_v0 = vld [vmem:[%s111_s0 + $0x7] sm:$0x1]   ;;  %v55_v1 = vld [vmem:[%s111_s0 + $0x5] sm:$0x1]   ;;  %v54_v2 = vld [vmem:[%s111_s0 + $0x6] sm:$0x1]  }
   0x2   :  { %7 = vrot.lane.b32.xlu0 %v53_v0, %s67_s10  ;;  %19 = vrot.lane.b32.xlu1 %v55_v1, %s68_s11  ;;  %v56_v3 = vld [vmem:[%s111_s0 + $0x4] sm:$0x1]   ;;  %v2_v4 = vld [vmem:[%s111_s0] sm:$0x1]   ;;  %s69_s18 = smov 48   ;;  %s70_s19 = smov 32  }
   0x3   :  { %4 = vst.msk [vmem:[#allocation0] sm:$0x1] %vm3_vm0, %v2_v4   ;;  %v57_v5 = vld [vmem:[%s111_s0 + $0x3] sm:$0x1]   ;;  %v58_v6 = vld [vmem:[%s111_s0 + $0x2] sm:$0x1]  }
   0x4   :  { %s71_s24 = smov 24   ;;  %s72_s25 = smov 16   ;;  %v59_v7 = vld [vmem:[%s111_s0 + $0x1] sm:$0x1]   ;;  %vm27_vm4 = vcmask 326912   ;;  %vm33_vm5 = vcmask 261312  }
   0x5   :  { %s73_s0 = smov 8   ;;  %vm39_vm6 = vcmask 195712   ;;  %vm45_vm7 = vcmask 130112  }
   0x6   :  { %13 = vrot.lane.b32.xlu0 %v54_v2, %s69_s18  ;;  %25 = vrot.lane.b32.xlu1 %v56_v3, %s70_s19 }
   0xa   :  { %31 = vrot.lane.b32.xlu0 %v57_v5, %s71_s24  ;;  %37 = vrot.lane.b32.xlu1 %v58_v6, %s72_s25 }
   0xe   :  { %43 = vrot.lane.b32.xlu0 %v59_v7, %s73_s0 }
  0x74   :  { %v8_v8 = vpop.permute.xlu0 %7   ;;  %v20_v9 = vpop.permute.xlu1 %19  }
  0x75   :  { %10 = vst.msk [vmem:[#allocation0] sm:$0x1] %vm9_vm1, %v8_v8  }
  0x78   :  { %v14_v10 = vpop.permute.xlu0 %13   ;;  %v26_v11 = vpop.permute.xlu1 %25  }
  0x79   :  { %16 = vst.msk [vmem:[#allocation0] sm:$0x1] %vm15_vm2, %v14_v10  }
  0x7a   :  { %22 = vst.msk [vmem:[#allocation0] sm:$0x1] %vm21_vm3, %v20_v9  }
  0x7b   :  { %28 = vst.msk [vmem:[#allocation0] sm:$0x1] %vm27_vm4, %v26_v11  }
  0x7c   :  { %v32_v12 = vpop.permute.xlu0 %31   ;;  %v38_v13 = vpop.permute.xlu1 %37  }
  0x7d   :  { %34 = vst.msk [vmem:[#allocation0] sm:$0x1] %vm33_vm5, %v32_v12  }
  0x7e   :  { %40 = vst.msk [vmem:[#allocation0] sm:$0x1] %vm39_vm6, %v38_v13  }
  0x80   :  { %v44_v14 = vpop.permute.xlu0 %43  }
  0x81   :  { %46 = vst.msk [vmem:[#allocation0] sm:$0x1] %vm45_vm7, %v44_v14  }
  0x88   :  { %v50_v15 = vld [vmem:[#allocation0] sm:$0x1] }
  0x89   :  { %52 = vst [vmem:[%s112_s1] sm:$0x1] %v50_v15 }

// kernel: encoder2d_forward.15
= control target key start
LH: loop header
LB: loop body
LE: loop exit
PB: predicated region body
PF: predicated region fallthrough
CT: control target
= control target key end

     0   :  { %s1331_s21 = smov 0   ;;  %s1333_s22 = smov 0   ;;  %s1563_s0 = inlined_call_operand.vmem [shape: bf16[2,1,1,10,80], index: 0, kind: input, shape index: {}]   ;;  %s1564_s1 = inlined_call_operand.vmem [shape: bf16[3,1,80,64], index: 1, kind: input, shape index: {}]   ;;  %s1565_s2 = inlined_call_operand.vmem [shape: f32[1,64], index: 2, kind: input, shape index: {}]   ;;  %s1566_s3 = inlined_call_operand.vmem [shape: f32[1,80], index: 3, kind: input, shape index: {}]   ;;  %s1567_s4 = inlined_call_operand.vmem [shape: f32[1,80], index: 4, kind: input, shape index: {}]   ;;  %s1568_s5 = inlined_call_operand.vmem [shape: bf16[2,8,64], index: 5, kind: output, shape index: {0}]   ;;  %s1569_s6 = inlined_call_operand.vmem [shape: f32[2,2,8], index: 6, kind: output, shape index: {1}]  }
   0x1   :  { %s1335_s23 = smov 0  }
   0x2 LB: > { %s29_s24 = sadd.s32 1, %s1286_s22  ;;  %p1010_p0 = scmp.ge.s32.totalorder %s1290_s23, 1  ;;  %s1290_s23 = sphi %s1335_s23, %s17_s23   ;;  %s1286_s22 = sphi %s1333_s22, %s1587_s22   ;;  %s1282_s21 = sphi %s1331_s21, %s1586_s21  }
   0x3   : > { %p31_p1 = scmp.ge.s32.totalorder %s29_s24, 2  ;;  %p235_p2 = scmp.lt.s32.totalorder %s1290_s23, 3 }
   0x5   : > { %s1589_s24 = smov (%p31_p1, %s29_s24), 0  ;;  %p236_p3 = pnand %p1010_p0, %p235_p2 }
   0x6   : > { %v1253_v0 = vld [vmem:[%s1564_s1 + $0x28] sm:$0xff] (!%p236_p3)   ;;  %v1292_v1 = vmov (!%p236_p3), 0.0   ;;  %v1254_v2 = vld [vmem:[%s1564_s1] sm:$0xff] (!%p236_p3)   ;;  %v1255_v3 = vld [vmem:[%s1564_s1 + $0x30] sm:$0xff] (!%p236_p3)   ;;  %vm1293_vm0 = vmmov (!%p236_p3), 0   ;;  %p272_p4 = scmp.lt.s32.totalorder (!%p236_p3), %s1282_s21, 1  ;;  %v315_v5 = vlaneseq (!%p236_p3) }
   0x7   : > { %239 = sbr.rel (%p236_p3) target bundleno = 518 (0x206), region = 40  ;;  %1121 = vmatprep.subr.bf16.mxu0 (!%p236_p3), %v1292_v1  ;;  %1135 = vmatprep.subr.bf16.mxu1 (!%p236_p3), %v1292_v1  ;;  %v1256_v4 = vld [vmem:[%s1564_s1 + $0x8] sm:$0xff] (!%p236_p3)   ;;  %v1257_v6 = vld [vmem:[%s1564_s1 + $0x38] sm:$0xff] (!%p236_p3)   ;;  %v1258_v7 = vld [vmem:[%s1564_s1 + $0x10] sm:$0xff] (!%p236_p3)   ;;  %vm397_vm3 = vcmask (!%p236_p3), 654336   ;;  %v1294_v42 = vmov (!%p236_p3), 0.0|0.0  }
   0x8   : > { %1122 = vmatpush3.bf16.msra.mxu0 (!%p236_p3), %v1253_v0  ;;  %1131 = vmatprep.mubr.msk.bf16.mxu0 (!%p236_p3), %vm1293_vm0, %v1292_v1  ;;  %v1383_v8 = vshrl.u32 (!%p236_p3), %v315_v5, 7  ;;  %v1259_v9 = vld [vmem:[%s1564_s1 + $0x40] sm:$0xff] (!%p236_p3)   ;;  %v1260_v13 = vld [vmem:[%s1564_s1 + $0x18] sm:$0xff] (!%p236_p3)   ;;  %v1261_v20 = vld [vmem:[%s1564_s1 + $0x48] sm:$0xff] (!%p236_p3)   ;;  %v619_v39 = vand.u32 (!%p236_p3), 127, %v315_v5 }
   0x9   : > { %1136 = vmatpush3.bf16.msra.mxu1 (!%p236_p3), %v1254_v2  ;;  %1123 = vmatprep.subr.bf16.mxu0 (!%p236_p3), %v1292_v1  ;;  %v1015_v12 = vld [vmem:[%s1566_s3] ss:$0 sm:$0xff] (!%p236_p3)  ;;  %v1263_v32 = vld [vmem:[%s1564_s1 + $0x50] sm:$0xff] (!%p236_p3)   ;;  %v1264_v34 = vld [vmem:[%s1564_s1 + $0x58] sm:$0xff] (!%p236_p3)   ;;  %v1295_v49 = vmov (!%p236_p3), 1.0|1.0  }
   0xa   : > { %1137 = vmatprep.subr.bf16.mxu1 (!%p236_p3), %v1292_v1  ;;  %1145 = vmatprep.mubr.msk.bf16.mxu1 (!%p236_p3), %vm1293_vm0, %v1292_v1  ;;  %v317_v16 = vadd.s32 (!%p236_p3), 8, %v1383_v8  ;;  %v1016_v17 = vld [vmem:[%s1567_s4] ss:$0 sm:$0xff] (!%p236_p3)  ;;  %vm319_vm1 = vcmp.eq.s32.totalorder (!%p236_p3), %v1383_v8, 0  ;;  %v1266_v36 = vld [vmem:[%s1564_s1 + $0x68] sm:$0xff] (!%p236_p3)   ;;  %v1267_v37 = vld [vmem:[%s1564_s1 + $0x70] sm:$0xff] (!%p236_p3)  }
   0xb   : > { %v1262_v21 = vld [vmem:[%s1564_s1 + $0x20] sm:$0xff] (!%p236_p3)   ;;  %v624_v40 = vand.u32 (!%p236_p3), 7, %v1383_v8  ;;  %v612_v43 = vadd.s32 (!%p236_p3), 16, %v1383_v8  ;;  %v613_v44 = vadd.s32 (!%p236_p3), 24, %v1383_v8  ;;  %v614_v52 = vadd.s32 (!%p236_p3), 32, %v1383_v8 }
   0xc   : > { %1124 = vmatpush3.bf16.msra.mxu0 (!%p236_p3), %v1255_v3  ;;  %vm327_vm2 = vcmp.eq.s32.totalorder (!%p236_p3), %v317_v16, 9  ;;  %v1265_v35 = vld [vmem:[%s1564_s1 + $0x60] sm:$0xff] (!%p236_p3)   ;;  %v631_v41 = vand.u32 (!%p236_p3), 7, %v317_v16  ;;  %v615_v53 = vadd.s32 (!%p236_p3), 40, %v1383_v8  ;;  %v616_v58 = vadd.s32 (!%p236_p3), 48, %v1383_v8 }
   0xd   : > { %1138 = vmatpush3.bf16.msra.mxu1 (!%p236_p3), %v1256_v4  ;;  %1125 = vmatprep.subr.bf16.mxu0 (!%p236_p3), %v1292_v1  ;;  %vm1442_vm4 = vcmp.eq.s32.totalorder (!%p236_p3), %v624_v40, %v619_v39  ;;  %v638_v47 = vand.u32 (!%p236_p3), 7, %v612_v43  ;;  %v645_v48 = vand.u32 (!%p236_p3), 7, %v613_v44  ;;  %v652_v54 = vand.u32 (!%p236_p3), 7, %v614_v52 }
   0xe   : > { %s1591_s21 = smov (!%p272_p4, %s1282_s21), 1  ;;  %1139 = vmatprep.subr.bf16.mxu1 %v1292_v1  ;;  %vm1446_vm5 = vcmp.eq.s32.totalorder %v631_v41, %v619_v39  ;;  %v659_v55 = vand.u32 7, %v615_v53  ;;  %v617_v59 = vadd.s32 56, %v1383_v8  ;;  %v666_v60 = vand.u32 7, %v616_v58 }
   0xf   : > { %s1084_s11 = sshll.u32 %s1591_s21, 3  ;;  %vm1202_vm6 = vmpackc.low %vm1446_vm5, %vm1442_vm4  ;;  %vm1460_vm7 = vcmp.eq.s32.totalorder %v638_v47, %v619_v39  ;;  %vm1464_vm8 = vcmp.eq.s32.totalorder %v645_v48, %v619_v39  ;;  %vm1480_vm10 = vcmp.eq.s32.totalorder %v652_v54, %v619_v39  ;;  %s1013_s25 = sshll.u32 %s1591_s21, 2  ;;  %vm905_vm4 = vcmask 58368  }
  0x10   : > { %s276_s16 = scalar_lea.vmem %s1563_s0, %s1084_s11  ;;  %1126 = vmatpush3.bf16.msra.mxu0 %v1257_v6  ;;  %vm1205_vm9 = vmpackc.low %vm1464_vm8, %vm1460_vm7  ;;  %vm1484_vm11 = vcmp.eq.s32.totalorder %v659_v55, %v619_v39  ;;  %v673_v61 = vand.u32 7, %v617_v59  ;;  %vm1500_vm13 = vcmp.eq.s32.totalorder %v666_v60, %v619_v39  ;;  %s282_s28 = scalar_lea.vmem %s1568_s5, %s1013_s25 }
  0x11   : > { %v291_v10 = vld [vmem:[%s276_s16] sm:$0xf]  ;;  %v292_v11 = vld [vmem:[%s276_s16 + $0x4] sm:$0x1]  ;;  %1140 = vmatpush3.bf16.msra.mxu1 %v1258_v7  ;;  %1127 = vmatprep.subr.bf16.mxu0 %v1292_v1  ;;  %vm1208_vm12 = vmpackc.low %vm1484_vm11, %vm1480_vm10  ;;  %s1014_s29 = sshll.u32 %s1591_s21, 1 }
  0x12   : > { %v293_v14 = vunpack.c.l.bf16 %v291_v10  ;;  %v294_v15 = vunpack.c.l.bf16 %v292_v11  ;;  %1141 = vmatprep.subr.bf16.mxu1 %v1292_v1  ;;  %vm1504_vm14 = vcmp.eq.s32.totalorder %v673_v61, %v619_v39  ;;  %v1055_v11 = vld [vmem:[%s1565_s2] ss:$0 sm:$0xff]  ;;  %s288_s8 = scalar_lea.vmem %s1569_s6, %s1014_s29 }
  0x13   : > { %vm1211_vm15 = vmpackc.low %vm1504_vm14, %vm1500_vm13 }
  0x14   : > { %v302_v18 = vmul.f32 %v1015_v12, %v293_v14  ;;  %v303_v19 = vmul.f32 %v1015_v12, %v294_v15  ;;  %1128 = vmatpush3.bf16.msra.mxu0 %v1259_v9 }
  0x15   : > { %1142 = vmatpush3.bf16.msra.mxu1 %v1260_v13  ;;  %1129 = vmatprep.subr.bf16.mxu0 %v1292_v1 }
  0x16   : > { %v311_v22 = vadd.f32 %v1016_v17, %v302_v18  ;;  %v312_v23 = vadd.f32 %v1016_v17, %v303_v19  ;;  %1143 = vmatprep.subr.bf16.mxu1 %v1292_v1 }
  0x18   : > { %v313_v24 = vmax.f32 %v311_v22, 0.0  ;;  %v314_v25 = vmax.f32 %v312_v23, 0.0  ;;  %1130 = vmatpush3.bf16.msra.mxu0 %v1261_v20 }
  0x19   : > { %1144 = vmatpush3.bf16.msra.mxu1 %v1262_v21  ;;  %1149 = vmatprep.subr.bf16.mxu0 %v1292_v1 }
  0x1a   : > { %v336_v26 = vsel %vm319_vm1, 0.0, %v313_v24  ;;  %v337_v27 = vsel %vm327_vm2, 0.0, %v314_v25  ;;  %1201 = vmatprep.subr.bf16.mxu1 %v1294_v42  ;;  %vm609_vm1 = vcmask 519168   ;;  %vm740_vm2 = vcmask 523264  }
  0x1b   : > { %v338_v28 = vpack.c.bf16 %v337_v27, %v336_v26 }
  0x1d   : > { %v361_v29 = vshrl.u32 %v338_v28, 16  ;;  %v363_v30 = vshll.u32 %v338_v28, 16  ;;  %1146 = vmatmul.mubr.msk.bf16.vlgmr.msra.gmra.mrb[0].mxu1 %vm397_vm3, %v338_v28  ;;  %v525_v38 = vrot.slane %v338_v28, 1 }
  0x1e   : > { %1179 = vmatprep.mubr.msk.f32.mxu1 %vm1293_vm0, %v1292_v1  ;;  %1203 = vmatpush3.bf16.msk.msra.mxu1 %vm1202_vm6, %v1295_v49 }
  0x1f   : > { %v365_v31 = vrot.slane %v363_v30, 1  ;;  %1204 = vmatprep.subr.bf16.mxu1 %v1294_v42 }
  0x21   : > { %v366_v33 = vor.u32 %v365_v31, %v361_v29 }
  0x22   : > { %1206 = vmatpush3.bf16.msk.msra.mxu1 %vm1205_vm9, %v1295_v49 }
  0x23   : > { %1132 = vmatmul.mubr.msk.bf16.vlgmr.msra.gmra.mrb[0].mxu0 %vm397_vm3, %v366_v33  ;;  %1207 = vmatprep.subr.bf16.mxu1 %v1294_v42 }
  0x24   : > { %1150 = vmatpush3.bf16.msra.mxu0 %v1263_v32  ;;  %1159 = vmatprep.mubr.msk.bf16.mxu0 %vm1293_vm0, %v1292_v1 }
  0x25   : > { %1151 = vmatprep.subr.bf16.mxu0 %v1292_v1 }
  0x26   : > { %1209 = vmatpush3.bf16.msk.msra.mxu1 %vm1208_vm12, %v1295_v49 }
  0x27   : > { %1210 = vmatprep.subr.bf16.mxu1 %v1294_v42 }
  0x28   : > { %1152 = vmatpush3.bf16.msra.mxu0 %v1264_v34 }
  0x29   : > { %1153 = vmatprep.subr.bf16.mxu0 %v1292_v1 }
  0x2a   : > { %1212 = vmatpush3.bf16.msk.msra.mxu1 %vm1211_vm15, %v1295_v49 }
  0x2b   : > { %1213 = vmatprep.subr.bf16.mxu1 %v1294_v42 }
  0x2c   : > { %1154 = vmatpush3.bf16.msra.mxu0 %v1265_v35 }
  0x2d   : > { %1155 = vmatprep.subr.bf16.mxu0 %v1292_v1 }
  0x30   : > { %1156 = vmatpush3.bf16.msra.mxu0 %v1266_v36 }
  0x31   : > { %1157 = vmatprep.subr.bf16.mxu0 %v1292_v1 }
  0x34   : > { %1158 = vmatpush3.bf16.msra.mxu0 %v1267_v37 }
  0x37   : > { %1160 = vmatmul.mubr.msk.bf16.vlgmr.msra.gmra.mrb[4].mxu0 %vm397_vm3, %v525_v38  ;;  %vm903_vm3 = vcmask 1040384  }
  0xf0   : > { %v507_v0 = vpop.f32.mrb[0].mxu1 }
  0xf1   : > { %v1147_v2 = vpop.f32.mrb[1].mxu1 }
  0xf2   : > { %v510_v3 = vpop.f32.mrb[2].mxu1 }
  0xf3   : > { %v1148_v4 = vpop.f32.mrb[3].mxu1 }
  0xf6   : > { %v435_v5 = vpop.f32.mrb[0].mxu0 }
  0xf7   : > { %v508_v6 = vadd.f32 %v507_v0, %v435_v5  ;;  %v1133_v7 = vpop.f32.mrb[1].mxu0 }
  0xf8   : > { %v438_v8 = vpop.f32.mrb[2].mxu0 }
  0xf9   : > { %v1134_v9 = vpop.f32.mrb[3].mxu0 }
 0x10a   : > { %v593_v10 = vpop.f32.mrb[4].mxu0 }
 0x10b   : > { %v599_v12 = vadd.f32 %v593_v10, %v508_v6  ;;  %v1161_v13 = vpop.f32.mrb[5].mxu0 }
 0x10c   : > { %v596_v14 = vpop.f32.mrb[6].mxu0 }
 0x10d   : > { %v607_v15 = vadd.f32 %v1055_v11, %v599_v12  ;;  %v1162_v16 = vpop.f32.mrb[7].mxu0 }
 0x10f   : > { %v608_v17 = vpack.c.bf16 %v607_v15, %v607_v15 }
 0x111   : > { %610 = vst.msk [vmem:[%s282_s28] sm:$0xf] %vm609_vm1, %v608_v17  ;;  %v611_v18 = vunpack.c.l.bf16 %v608_v17 }
 0x113   : > { %1180 = vmatmul.mubr.msk.f32.vlgmr.msra.gmra.mrb[4].mxu1 %vm740_vm2, %v611_v18 }
 0x114   : > { %1215 = vmatpush3.bf16.msk.msra.mxu1 %vm1202_vm6, %v1295_v49  ;;  %1198 = vmatprep.mubr.msk.f32.mxu1 %vm1293_vm0, %v1292_v1  ;;  %v822_v1 = vmul.f32 %v611_v18, %v611_v18  ;;  %vm814_vm0 = vcmask 64512  }
 0x115   : > { %1216 = vmatprep.subr.bf16.mxu1 %v1294_v42 }
 0x118   : > { %1218 = vmatpush3.bf16.msk.msra.mxu1 %vm1205_vm9, %v1295_v49 }
 0x119   : > { %1219 = vmatprep.subr.bf16.mxu1 %v1294_v42 }
 0x11c   : > { %1221 = vmatpush3.bf16.msk.msra.mxu1 %vm1208_vm12, %v1295_v49 }
 0x11d   : > { %1222 = vmatprep.subr.bf16.mxu1 %v1294_v42 }
 0x120   : > { %1224 = vmatpush3.bf16.msk.msra.mxu1 %vm1211_vm15, %v1295_v49 }
 0x123   : > { %1199 = vmatmul.mubr.msk.f32.vlgmr.msra.gmra.mrb[6].mxu1 %vm740_vm2, %v822_v1 }
 0x1e6   : > { %v810_v19 = vpop.f32.mrb[4].mxu1 }
 0x1e7   : > { %v1181_v20 = vpop.f32.mrb[5].mxu1  ;;  %v815_v21 = vsel %vm814_vm0, %v810_v19, 0.0 }
 0x1e8   : > { %v816_v22 = vrot.slane %v815_v21, 4 }
 0x1ea   : > { %v817_v23 = vadd.f32 %v816_v22, %v815_v21 }
 0x1ec   : > { %v818_v24 = vrot.slane %v817_v23, 2 }
 0x1ee   : > { %v819_v29 = vadd.f32 %v818_v24, %v817_v23 }
 0x1f0   : > { %v820_v32 = vrot.slane %v819_v29, 1 }
 0x1f2   : > { %v821_v35 = vadd.f32 %v820_v32, %v819_v29 }
 0x1f6   : > { %v892_v25 = vpop.f32.mrb[6].mxu1 }
 0x1f7   : > { %v896_v26 = vsel %vm814_vm0, %v892_v25, 0.0  ;;  %v1200_v27 = vpop.f32.mrb[7].mxu1 }
 0x1f8   : > { %v897_v28 = vrot.slane %v896_v26, 4 }
 0x1fa   : > { %v898_v30 = vadd.f32 %v897_v28, %v896_v26 }
 0x1fc   : > { %v899_v31 = vrot.slane %v898_v30, 2 }
 0x1fe   : > { %v900_v33 = vadd.f32 %v899_v31, %v898_v30 }
 0x200   : > { %v901_v34 = vrot.slane %v900_v33, 1 }
 0x202   : > { %v902_v36 = vadd.f32 %v901_v34, %v900_v33 }
 0x204   : > { %v904_v37 = vsel %vm903_vm3, %v821_v35, %v902_v36 }
 0x205   : > { %906 = vst.msk [vmem:[%s288_s8] sm:$0x3] %vm905_vm4, %v904_v37 }
 0x206 PF: > { %s17_s23 = sadd.s32 1, %s1290_s23   ;;  %s1586_s21 = smov %s1286_s22 }
 0x207   : > { %p14_p5 = scmp.ge.s32.totalorder %s17_s23, 4   ;;  %s1587_s22 = smov %s1589_s24 }
 0x209   :  { %16 = sbr.rel (!%p14_p5) target bundleno = 2 (0x2), region = 84 }

// kernel: encoder2d_forward.16
= control target key start
LH: loop header
LB: loop body
LE: loop exit
PB: predicated region body
PF: predicated region fallthrough
CT: control target
= control target key end

     0   :  { %s915_s21 = smov 0   ;;  %s917_s22 = smov 0   ;;  %s1033_s0 = inlined_call_operand.vmem [shape: bf16[2,1,1,10,80], index: 0, kind: input, shape index: {}]   ;;  %s1034_s1 = inlined_call_operand.vmem [shape: bf16[3,1,80,64], index: 1, kind: input, shape index: {}]   ;;  %s1035_s2 = inlined_call_operand.vmem [shape: f32[1,64], index: 2, kind: input, shape index: {}]   ;;  %s1036_s3 = inlined_call_operand.vmem [shape: f32[1,80], index: 3, kind: input, shape index: {}]   ;;  %s1037_s4 = inlined_call_operand.vmem [shape: f32[1,80], index: 4, kind: input, shape index: {}]   ;;  %s1038_s5 = inlined_call_operand.vmem [shape: bf16[2,8,64], index: 5, kind: input, shape index: {}]   ;;  %s1039_s6 = inlined_call_operand.vmem [shape: bf16[2,8,64], index: 6, kind: output, shape index: {}]  }
   0x1   :  { %s919_s23 = smov 0  }
   0x2 LB: > { %s28_s24 = sadd.s32 1, %s872_s22  ;;  %p704_p0 = scmp.ge.s32.totalorder %s876_s23, 1  ;;  %s876_s23 = sphi %s919_s23, %s16_s23   ;;  %s872_s22 = sphi %s917_s22, %s1041_s22   ;;  %s868_s21 = sphi %s915_s21, %s1040_s21  }
   0x3   : > { %p30_p1 = scmp.ge.s32.totalorder %s28_s24, 2  ;;  %p243_p2 = scmp.lt.s32.totalorder %s876_s23, 3 }
   0x5   : > { %s1043_s24 = smov (%p30_p1, %s28_s24), 0  ;;  %p244_p3 = pnand %p704_p0, %p243_p2 }
   0x6   : > { %v839_v0 = vld [vmem:[%s1034_s1 + $0x28] sm:$0xff] (!%p244_p3)   ;;  %v878_v1 = vmov (!%p244_p3), 0.0   ;;  %v840_v2 = vld [vmem:[%s1034_s1] sm:$0xff] (!%p244_p3)   ;;  %v841_v3 = vld [vmem:[%s1034_s1 + $0x30] sm:$0xff] (!%p244_p3)   ;;  %vm879_vm0 = vmmov (!%p244_p3), 0   ;;  %p280_p4 = scmp.lt.s32.totalorder (!%p244_p3), %s868_s21, 1  ;;  %v323_v5 = vlaneseq (!%p244_p3) }
   0x7   : > { %247 = sbr.rel (%p244_p3) target bundleno = 278 (0x116), region = 44  ;;  %771 = vmatprep.subr.bf16.mxu0 (!%p244_p3), %v878_v1  ;;  %785 = vmatprep.subr.bf16.mxu1 (!%p244_p3), %v878_v1  ;;  %v842_v4 = vld [vmem:[%s1034_s1 + $0x8] sm:$0xff] (!%p244_p3)   ;;  %v843_v6 = vld [vmem:[%s1034_s1 + $0x38] sm:$0xff] (!%p244_p3)   ;;  %v844_v7 = vld [vmem:[%s1034_s1 + $0x10] sm:$0xff] (!%p244_p3)   ;;  %vm405_vm3 = vcmask (!%p244_p3), 654336   ;;  %vm621_vm4 = vcmask (!%p244_p3), 519168  }
   0x8   : > { %772 = vmatpush3.bf16.msra.mxu0 (!%p244_p3), %v839_v0  ;;  %781 = vmatprep.mubr.msk.bf16.mxu0 (!%p244_p3), %vm879_vm0, %v878_v1  ;;  %v324_v8 = vshrl.u32 (!%p244_p3), %v323_v5, 7  ;;  %v845_v9 = vld [vmem:[%s1034_s1 + $0x40] sm:$0xff] (!%p244_p3)   ;;  %v846_v13 = vld [vmem:[%s1034_s1 + $0x18] sm:$0xff] (!%p244_p3)   ;;  %v847_v20 = vld [vmem:[%s1034_s1 + $0x48] sm:$0xff] (!%p244_p3)  }
   0x9   : > { %786 = vmatpush3.bf16.msra.mxu1 (!%p244_p3), %v840_v2  ;;  %773 = vmatprep.subr.bf16.mxu0 (!%p244_p3), %v878_v1  ;;  %v709_v12 = vld [vmem:[%s1036_s3] ss:$0 sm:$0xff] (!%p244_p3)  ;;  %v849_v32 = vld [vmem:[%s1034_s1 + $0x50] sm:$0xff] (!%p244_p3)   ;;  %v850_v34 = vld [vmem:[%s1034_s1 + $0x58] sm:$0xff] (!%p244_p3)  }
   0xa   : > { %787 = vmatprep.subr.bf16.mxu1 (!%p244_p3), %v878_v1  ;;  %795 = vmatprep.mubr.msk.bf16.mxu1 (!%p244_p3), %vm879_vm0, %v878_v1  ;;  %v325_v16 = vadd.s32 (!%p244_p3), 8, %v324_v8  ;;  %v710_v17 = vld [vmem:[%s1037_s4] ss:$0 sm:$0xff] (!%p244_p3)  ;;  %vm327_vm1 = vcmp.eq.s32.totalorder (!%p244_p3), %v324_v8, 0  ;;  %v852_v36 = vld [vmem:[%s1034_s1 + $0x68] sm:$0xff] (!%p244_p3)   ;;  %v853_v37 = vld [vmem:[%s1034_s1 + $0x70] sm:$0xff] (!%p244_p3)  }
   0xb   : > { %v848_v21 = vld [vmem:[%s1034_s1 + $0x20] sm:$0xff] (!%p244_p3)  }
   0xc   : > { %774 = vmatpush3.bf16.msra.mxu0 (!%p244_p3), %v841_v3  ;;  %vm335_vm2 = vcmp.eq.s32.totalorder (!%p244_p3), %v325_v16, 9  ;;  %v851_v35 = vld [vmem:[%s1034_s1 + $0x60] sm:$0xff] (!%p244_p3)  }
   0xd   : > { %788 = vmatpush3.bf16.msra.mxu1 (!%p244_p3), %v842_v4  ;;  %775 = vmatprep.subr.bf16.mxu0 (!%p244_p3), %v878_v1  ;;  %v749_v50 = vld [vmem:[%s1035_s2] ss:$0 sm:$0xff] (!%p244_p3) }
   0xe   : > { %s1045_s21 = smov (!%p280_p4, %s868_s21), 1  ;;  %789 = vmatprep.subr.bf16.mxu1 %v878_v1 }
   0xf   : > { %s752_s11 = sshll.u32 %s1045_s21, 3  ;;  %s707_s19 = sshll.u32 %s1045_s21, 2 }
  0x10   : > { %s284_s16 = scalar_lea.vmem %s1033_s0, %s752_s11  ;;  %776 = vmatpush3.bf16.msra.mxu0 %v843_v6  ;;  %s290_s26 = scalar_lea.vmem %s1038_s5, %s707_s19 }
  0x11   : > { %v299_v10 = vld [vmem:[%s284_s16] sm:$0xf]  ;;  %v300_v11 = vld [vmem:[%s284_s16 + $0x4] sm:$0x1]  ;;  %790 = vmatpush3.bf16.msra.mxu1 %v844_v7  ;;  %777 = vmatprep.subr.bf16.mxu0 %v878_v1  ;;  %s296_s30 = scalar_lea.vmem %s1039_s6, %s707_s19 }
  0x12   : > { %v301_v14 = vunpack.c.l.bf16 %v299_v10  ;;  %v302_v15 = vunpack.c.l.bf16 %v300_v11  ;;  %791 = vmatprep.subr.bf16.mxu1 %v878_v1  ;;  %v616_v48 = vld [vmem:[%s290_s26] sm:$0xf] }
  0x13   : > { %v617_v52 = vunpack.c.l.bf16 %v616_v48 }
  0x14   : > { %v310_v18 = vmul.f32 %v709_v12, %v301_v14  ;;  %v311_v19 = vmul.f32 %v709_v12, %v302_v15  ;;  %778 = vmatpush3.bf16.msra.mxu0 %v845_v9 }
  0x15   : > { %792 = vmatpush3.bf16.msra.mxu1 %v846_v13  ;;  %779 = vmatprep.subr.bf16.mxu0 %v878_v1 }
  0x16   : > { %v319_v22 = vadd.f32 %v710_v17, %v310_v18  ;;  %v320_v23 = vadd.f32 %v710_v17, %v311_v19  ;;  %793 = vmatprep.subr.bf16.mxu1 %v878_v1 }
  0x18   : > { %v321_v24 = vmax.f32 %v319_v22, 0.0  ;;  %v322_v25 = vmax.f32 %v320_v23, 0.0  ;;  %780 = vmatpush3.bf16.msra.mxu0 %v847_v20 }
  0x19   : > { %794 = vmatpush3.bf16.msra.mxu1 %v848_v21  ;;  %799 = vmatprep.subr.bf16.mxu0 %v878_v1 }
  0x1a   : > { %v344_v26 = vsel %vm327_vm1, 0.0, %v321_v24  ;;  %v345_v27 = vsel %vm335_vm2, 0.0, %v322_v25 }
  0x1b   : > { %v346_v28 = vpack.c.bf16 %v345_v27, %v344_v26 }
  0x1d   : > { %v369_v29 = vshrl.u32 %v346_v28, 16  ;;  %v371_v30 = vshll.u32 %v346_v28, 16  ;;  %796 = vmatmul.mubr.msk.bf16.vlgmr.msra.gmra.mrb[0].mxu1 %vm405_vm3, %v346_v28  ;;  %v533_v38 = vrot.slane %v346_v28, 1 }
  0x1f   : > { %v373_v31 = vrot.slane %v371_v30, 1 }
  0x21   : > { %v374_v33 = vor.u32 %v373_v31, %v369_v29 }
  0x23   : > { %782 = vmatmul.mubr.msk.bf16.vlgmr.msra.gmra.mrb[0].mxu0 %vm405_vm3, %v374_v33 }
  0x24   : > { %800 = vmatpush3.bf16.msra.mxu0 %v849_v32  ;;  %809 = vmatprep.mubr.msk.bf16.mxu0 %vm879_vm0, %v878_v1 }
  0x25   : > { %801 = vmatprep.subr.bf16.mxu0 %v878_v1 }
  0x28   : > { %802 = vmatpush3.bf16.msra.mxu0 %v850_v34 }
  0x29   : > { %803 = vmatprep.subr.bf16.mxu0 %v878_v1 }
  0x2c   : > { %804 = vmatpush3.bf16.msra.mxu0 %v851_v35 }
  0x2d   : > { %805 = vmatprep.subr.bf16.mxu0 %v878_v1 }
  0x30   : > { %806 = vmatpush3.bf16.msra.mxu0 %v852_v36 }
  0x31   : > { %807 = vmatprep.subr.bf16.mxu0 %v878_v1 }
  0x34   : > { %808 = vmatpush3.bf16.msra.mxu0 %v853_v37 }
  0x37   : > { %810 = vmatmul.mubr.msk.bf16.vlgmr.msra.gmra.mrb[4].mxu0 %vm405_vm3, %v533_v38 }
  0xf0   : > { %v515_v39 = vpop.f32.mrb[0].mxu1 }
  0xf1   : > { %v797_v40 = vpop.f32.mrb[1].mxu1 }
  0xf2   : > { %v518_v41 = vpop.f32.mrb[2].mxu1 }
  0xf3   : > { %v798_v42 = vpop.f32.mrb[3].mxu1 }
  0xf6   : > { %v443_v43 = vpop.f32.mrb[0].mxu0 }
  0xf7   : > { %v516_v44 = vadd.f32 %v515_v39, %v443_v43  ;;  %v783_v45 = vpop.f32.mrb[1].mxu0 }
  0xf8   : > { %v446_v46 = vpop.f32.mrb[2].mxu0 }
  0xf9   : > { %v784_v47 = vpop.f32.mrb[3].mxu0 }
 0x10a   : > { %v601_v49 = vpop.f32.mrb[4].mxu0 }
 0x10b   : > { %v607_v51 = vadd.f32 %v601_v49, %v516_v44  ;;  %v811_v53 = vpop.f32.mrb[5].mxu0 }
 0x10c   : > { %v604_v54 = vpop.f32.mrb[6].mxu0 }
 0x10d   : > { %v615_v55 = vadd.f32 %v749_v50, %v607_v51  ;;  %v812_v56 = vpop.f32.mrb[7].mxu0 }
 0x10f   : > { %v618_v57 = vadd.f32 %v617_v52, %v615_v55 }
 0x111   : > { %v619_v58 = vmax.f32 %v618_v57, 0.0 }
 0x113   : > { %v620_v59 = vpack.c.bf16 %v619_v58, %v619_v58 }
 0x115   : > { %622 = vst.msk [vmem:[%s296_s30] sm:$0xf] %vm621_vm4, %v620_v59 }
 0x116 PF: > { %s16_s23 = sadd.s32 1, %s876_s23   ;;  %s1040_s21 = smov %s872_s22 }
 0x117   : > { %p13_p5 = scmp.ge.s32.totalorder %s16_s23, 4   ;;  %s1041_s22 = smov %s1043_s24 }
 0x119   :  { %15 = sbr.rel (!%p13_p5) target bundleno = 2 (0x2), region = 79 }

// kernel: tile.118
= control target key start
LH: loop header
LB: loop body
LE: loop exit
PB: predicated region body
PF: predicated region fallthrough
CT: control target
= control target key end

     0   :  { %s22_s0 = inlined_call_operand.vmem [shape: f32[4], index: 0, kind: input, shape index: {}]   ;;  %s23_s1 = inlined_call_operand.vmem [shape: f32[8,4], index: 1, kind: output, shape index: {}]  }
   0x1   :  { %v4_v0 = vld [vmem:[%s22_s0] ss:$0 sm:$0xff] }
   0x2   :  { %5 = vst [vmem:[%s23_s1] sm:$0xff] %v4_v0 }

// kernel: tile.119
= control target key start
LH: loop header
LB: loop body
LE: loop exit
PB: predicated region body
PF: predicated region fallthrough
CT: control target
= control target key end

     0   :  { %s67_s10 = smov 28   ;;  %s68_s11 = smov 20   ;;  %vm3_vm0 = vcmask 31744   ;;  %vm9_vm1 = vcmask 261344   ;;  %vm15_vm2 = vcmask 228544   ;;  %vm21_vm3 = vcmask 195744   ;;  %s111_s0 = inlined_call_operand.vmem [shape: f32[8,4], index: 0, kind: input, shape index: {}]   ;;  %s112_s1 = inlined_call_operand.vmem [shape: f32[1,32], index: 1, kind: output, shape index: {}]  }
   0x1   :  { %v53_v0 = vld [vmem:[%s111_s0 + $0x7] sm:$0x1]   ;;  %v55_v1 = vld [vmem:[%s111_s0 + $0x5] sm:$0x1]   ;;  %v54_v2 = vld [vmem:[%s111_s0 + $0x6] sm:$0x1]  }
   0x2   :  { %7 = vrot.lane.b32.xlu0 %v53_v0, %s67_s10  ;;  %19 = vrot.lane.b32.xlu1 %v55_v1, %s68_s11  ;;  %v56_v3 = vld [vmem:[%s111_s0 + $0x4] sm:$0x1]   ;;  %v2_v4 = vld [vmem:[%s111_s0] sm:$0x1]   ;;  %s69_s18 = smov 24   ;;  %s70_s19 = smov 16  }
   0x3   :  { %4 = vst.msk [vmem:[#allocation0] sm:$0x1] %vm3_vm0, %v2_v4   ;;  %v57_v5 = vld [vmem:[%s111_s0 + $0x3] sm:$0x1]   ;;  %v58_v6 = vld [vmem:[%s111_s0 + $0x2] sm:$0x1]  }
   0x4   :  { %s71_s24 = smov 12   ;;  %s72_s25 = smov 8   ;;  %v59_v7 = vld [vmem:[%s111_s0 + $0x1] sm:$0x1]   ;;  %vm27_vm4 = vcmask 162944   ;;  %vm33_vm5 = vcmask 130144  }
   0x5   :  { %s73_s0 = smov 4   ;;  %vm39_vm6 = vcmask 97344   ;;  %vm45_vm7 = vcmask 64544  }
   0x6   :  { %13 = vrot.lane.b32.xlu0 %v54_v2, %s69_s18  ;;  %25 = vrot.lane.b32.xlu1 %v56_v3, %s70_s19 }
   0xa   :  { %31 = vrot.lane.b32.xlu0 %v57_v5, %s71_s24  ;;  %37 = vrot.lane.b32.xlu1 %v58_v6, %s72_s25 }
   0xe   :  { %43 = vrot.lane.b32.xlu0 %v59_v7, %s73_s0 }
  0x74   :  { %v8_v8 = vpop.permute.xlu0 %7   ;;  %v20_v9 = vpop.permute.xlu1 %19  }
  0x75   :  { %10 = vst.msk [vmem:[#allocation0] sm:$0x1] %vm9_vm1, %v8_v8  }
  0x78   :  { %v14_v10 = vpop.permute.xlu0 %13   ;;  %v26_v11 = vpop.permute.xlu1 %25  }
  0x79   :  { %16 = vst.msk [vmem:[#allocation0] sm:$0x1] %vm15_vm2, %v14_v10  }
  0x7a   :  { %22 = vst.msk [vmem:[#allocation0] sm:$0x1] %vm21_vm3, %v20_v9  }
  0x7b   :  { %28 = vst.msk [vmem:[#allocation0] sm:$0x1] %vm27_vm4, %v26_v11  }
  0x7c   :  { %v32_v12 = vpop.permute.xlu0 %31   ;;  %v38_v13 = vpop.permute.xlu1 %37  }
  0x7d   :  { %34 = vst.msk [vmem:[#allocation0] sm:$0x1] %vm33_vm5, %v32_v12  }
  0x7e   :  { %40 = vst.msk [vmem:[#allocation0] sm:$0x1] %vm39_vm6, %v38_v13  }
  0x80   :  { %v44_v14 = vpop.permute.xlu0 %43  }
  0x81   :  { %46 = vst.msk [vmem:[#allocation0] sm:$0x1] %vm45_vm7, %v44_v14  }
  0x88   :  { %v50_v15 = vld [vmem:[#allocation0] sm:$0x1] }
  0x89   :  { %52 = vst [vmem:[%s112_s1] sm:$0x1] %v50_v15 }

// kernel: encoder2d_forward.17
= control target key start
LH: loop header
LB: loop body
LE: loop exit
PB: predicated region body
PF: predicated region fallthrough
CT: control target
= control target key end

     0   :  { %s742_s12 = smov 0   ;;  %s744_s13 = smov 0   ;;  %s841_s0 = inlined_call_operand.vmem [shape: bf16[2,1,1,10,80], index: 0, kind: input, shape index: {}]   ;;  %s842_s1 = inlined_call_operand.vmem [shape: bf16[3,1,80,32], index: 1, kind: input, shape index: {}]   ;;  %s843_s2 = inlined_call_operand.vmem [shape: f32[1,32], index: 2, kind: input, shape index: {}]   ;;  %s844_s3 = inlined_call_operand.vmem [shape: f32[2,8,32], index: 3, kind: output, shape index: {}]  }
   0x1   :  { %s746_s14 = smov 0  }
   0x2 LB: > { %s25_s15 = sadd.s32 1, %s714_s13  ;;  %p545_p0 = scmp.ge.s32.totalorder %s718_s14, 1  ;;  %s718_s14 = sphi %s746_s14, %s13_s14   ;;  %s714_s13 = sphi %s744_s13, %s846_s13   ;;  %s710_s12 = sphi %s742_s12, %s845_s12  }
   0x3   : > { %p27_p1 = scmp.ge.s32.totalorder %s25_s15, 2  ;;  %p155_p2 = scmp.lt.s32.totalorder %s718_s14, 3 }
   0x5   : > { %s848_s15 = smov (%p27_p1, %s25_s15), 0  ;;  %p156_p3 = pnand %p545_p0, %p155_p2 }
   0x6   : > { %v679_v0 = vld [vmem:[%s842_s1 + $0x28] sm:$0xff] (!%p156_p3)   ;;  %v720_v1 = vmov (!%p156_p3), 0.0   ;;  %v680_v2 = vld [vmem:[%s842_s1] sm:$0xff] (!%p156_p3)   ;;  %v681_v3 = vld [vmem:[%s842_s1 + $0x30] sm:$0xff] (!%p156_p3)   ;;  %vm721_vm0 = vmmov (!%p156_p3), 0   ;;  %p181_p4 = scmp.lt.s32.totalorder (!%p156_p3), %s710_s12, 1 }
   0x7   : > { %159 = sbr.rel (%p156_p3) target bundleno = 264 (0x108), region = 32  ;;  %611 = vmatprep.subr.bf16.mxu0 (!%p156_p3), %v720_v1  ;;  %625 = vmatprep.subr.bf16.mxu1 (!%p156_p3), %v720_v1  ;;  %v682_v4 = vld [vmem:[%s842_s1 + $0x8] sm:$0xff] (!%p156_p3)   ;;  %v683_v5 = vld [vmem:[%s842_s1 + $0x38] sm:$0xff] (!%p156_p3)   ;;  %v684_v6 = vld [vmem:[%s842_s1 + $0x10] sm:$0xff] (!%p156_p3)   ;;  %vm259_vm1 = vcmask (!%p156_p3), 654336   ;;  %vm474_vm2 = vcmask (!%p156_p3), 261120  }
   0x8   : > { %612 = vmatpush3.bf16.msra.mxu0 (!%p156_p3), %v679_v0  ;;  %621 = vmatprep.mubr.msk.bf16.mxu0 (!%p156_p3), %vm721_vm0, %v720_v1  ;;  %v685_v7 = vld [vmem:[%s842_s1 + $0x40] sm:$0xff] (!%p156_p3)   ;;  %v686_v10 = vld [vmem:[%s842_s1 + $0x18] sm:$0xff] (!%p156_p3)   ;;  %v687_v12 = vld [vmem:[%s842_s1 + $0x48] sm:$0xff] (!%p156_p3)  }
   0x9   : > { %626 = vmatpush3.bf16.msra.mxu1 (!%p156_p3), %v680_v2  ;;  %613 = vmatprep.subr.bf16.mxu0 (!%p156_p3), %v720_v1  ;;  %v688_v15 = vld [vmem:[%s842_s1 + $0x20] sm:$0xff] (!%p156_p3)   ;;  %v690_v18 = vld [vmem:[%s842_s1 + $0x50] sm:$0xff] (!%p156_p3)   ;;  %v691_v19 = vld [vmem:[%s842_s1 + $0x58] sm:$0xff] (!%p156_p3)  }
   0xa   : > { %627 = vmatprep.subr.bf16.mxu1 (!%p156_p3), %v720_v1  ;;  %635 = vmatprep.mubr.msk.bf16.mxu1 (!%p156_p3), %vm721_vm0, %v720_v1  ;;  %v692_v20 = vld [vmem:[%s842_s1 + $0x60] sm:$0xff] (!%p156_p3)   ;;  %v693_v21 = vld [vmem:[%s842_s1 + $0x68] sm:$0xff] (!%p156_p3)   ;;  %v694_v24 = vld [vmem:[%s842_s1 + $0x70] sm:$0xff] (!%p156_p3)  }
   0xb   : > { %v589_v36 = vld [vmem:[%s843_s2] ss:$0 sm:$0xff] (!%p156_p3) }
   0xc   : > { %614 = vmatpush3.bf16.msra.mxu0 (!%p156_p3), %v681_v3 }
   0xd   : > { %628 = vmatpush3.bf16.msra.mxu1 (!%p156_p3), %v682_v4  ;;  %615 = vmatprep.subr.bf16.mxu0 (!%p156_p3), %v720_v1 }
   0xe   : > { %s850_s12 = smov (!%p181_p4, %s710_s12), 1  ;;  %629 = vmatprep.subr.bf16.mxu1 %v720_v1 }
   0xf   : > { %s592_s26 = sshll.u32 %s850_s12, 3 }
  0x10   : > { %s788_s4 = scalar_lea.vmem %s841_s0, %s592_s26  ;;  %616 = vmatpush3.bf16.msra.mxu0 %v683_v5  ;;  %s191_s5 = scalar_lea.vmem %s844_s3, %s592_s26 }
  0x11   : > { %v194_v8 = vld [vmem:[%s788_s4] sm:$0xf]  ;;  %v205_v9 = vld [vmem:[%s788_s4 + $0x4] sm:$0x1]  ;;  %630 = vmatpush3.bf16.msra.mxu1 %v684_v6  ;;  %617 = vmatprep.subr.bf16.mxu0 %v720_v1 }
  0x12   : > { %v559_v11 = vcombine.low %v194_v8, %v205_v9  ;;  %631 = vmatprep.subr.bf16.mxu1 %v720_v1  ;;  %v376_v22 = vld [vmem:[%s788_s4] sm:$0xe] }
  0x13   : > { %v582_v23 = vcombine.low %v376_v22, %v205_v9 }
  0x14   : > { %v223_v13 = vshrl.u32 %v559_v11, 16  ;;  %v225_v14 = vshll.u32 %v559_v11, 16  ;;  %618 = vmatpush3.bf16.msra.mxu0 %v685_v7 }
  0x15   : > { %632 = vmatpush3.bf16.msra.mxu1 %v686_v10  ;;  %619 = vmatprep.subr.bf16.mxu0 %v720_v1  ;;  %v391_v25 = vrot.slane %v582_v23, 1 }
  0x16   : > { %v227_v16 = vrot.slane %v225_v14, 1  ;;  %633 = vmatprep.subr.bf16.mxu1 %v720_v1 }
  0x18   : > { %v228_v17 = vor.u32 %v227_v16, %v223_v13  ;;  %620 = vmatpush3.bf16.msra.mxu0 %v687_v12 }
  0x19   : > { %634 = vmatpush3.bf16.msra.mxu1 %v688_v15  ;;  %639 = vmatprep.subr.bf16.mxu0 %v720_v1 }
  0x1b   : > { %622 = vmatmul.mubr.msk.bf16.vlgmr.msra.gmra.mrb[0].mxu0 %vm259_vm1, %v228_v17 }
  0x1c   : > { %636 = vmatmul.mubr.msk.bf16.vlgmr.msra.gmra.mrb[0].mxu1 %vm259_vm1, %v194_v8  ;;  %640 = vmatpush3.bf16.msra.mxu0 %v690_v18 }
  0x1d   : > { %641 = vmatprep.subr.bf16.mxu0 %v720_v1  ;;  %649 = vmatprep.mubr.msk.bf16.mxu0 %vm721_vm0, %v720_v1 }
  0x20   : > { %642 = vmatpush3.bf16.msra.mxu0 %v691_v19 }
  0x21   : > { %643 = vmatprep.subr.bf16.mxu0 %v720_v1 }
  0x24   : > { %644 = vmatpush3.bf16.msra.mxu0 %v692_v20 }
  0x25   : > { %645 = vmatprep.subr.bf16.mxu0 %v720_v1 }
  0x28   : > { %646 = vmatpush3.bf16.msra.mxu0 %v693_v21 }
  0x29   : > { %647 = vmatprep.subr.bf16.mxu0 %v720_v1 }
  0x2c   : > { %648 = vmatpush3.bf16.msra.mxu0 %v694_v24 }
  0x2f   : > { %650 = vmatmul.mubr.msk.bf16.vlgmr.msra.gmra.mrb[4].mxu0 %vm259_vm1, %v391_v25 }
  0xee   : > { %v297_v26 = vpop.f32.mrb[0].mxu0 }
  0xef   : > { %v623_v27 = vpop.f32.mrb[1].mxu0  ;;  %v370_v28 = vpop.f32.mrb[0].mxu1 }
  0xf0   : > { %v371_v29 = vadd.f32 %v370_v28, %v297_v26  ;;  %v300_v30 = vpop.f32.mrb[2].mxu0  ;;  %v637_v31 = vpop.f32.mrb[1].mxu1 }
  0xf1   : > { %v624_v32 = vpop.f32.mrb[3].mxu0  ;;  %v373_v33 = vpop.f32.mrb[2].mxu1 }
  0xf2   : > { %v638_v34 = vpop.f32.mrb[3].mxu1 }
 0x102   : > { %v459_v35 = vpop.f32.mrb[4].mxu0 }
 0x103   : > { %v465_v37 = vadd.f32 %v459_v35, %v371_v29  ;;  %v651_v38 = vpop.f32.mrb[5].mxu0 }
 0x104   : > { %v462_v39 = vpop.f32.mrb[6].mxu0 }
 0x105   : > { %v473_v40 = vadd.f32 %v589_v36, %v465_v37  ;;  %v652_v41 = vpop.f32.mrb[7].mxu0 }
 0x107   : > { %475 = vst.msk [vmem:[%s191_s5] sm:$0xff] %vm474_vm2, %v473_v40 }
 0x108 PF: > { %s13_s14 = sadd.s32 1, %s718_s14   ;;  %s845_s12 = smov %s714_s13 }
 0x109   : > { %p10_p5 = scmp.ge.s32.totalorder %s13_s14, 4   ;;  %s846_s13 = smov %s848_s15 }
 0x10b   :  { %12 = sbr.rel (!%p10_p5) target bundleno = 2 (0x2), region = 64 }

</bundles_post_ra>
